<compile_context>
chip_gen: v6e
topology: v6e:2x2x1
jax: 0.10.0
libtpu: 0.0.40
codegen_flags: <defaults>
</compile_context>

<pallas_src>
import functools

import jax
import jax.numpy as jnp
from jax.experimental import pallas as pl
from jax.experimental.pallas import tpu as pltpu


_INV_SQRT2 = 0.7071067811865476


def _erf(x):
    # Abramowitz & Stegun 7.1.26 rational approximation, |error| < 1.5e-7.
    # Built only from ops with guaranteed Mosaic lowerings (abs/exp/div/where)
    # so the fused kernel does not depend on lax.erf having a TPU lowering.
    # TODO(synk): switch to jax.lax.erf in-kernel once its Mosaic lowering is
    # confirmed on all target generations (restores bit-level nn.GELU parity;
    # current deviation is ~1e-7, far below float32 working precision here).
    p = 0.3275911
    a1, a2, a3, a4, a5 = (0.254829592, -0.284496736, 1.421413741,
                          -1.453152027, 1.061405429)
    ax = jnp.abs(x)
    t = 1.0 / (1.0 + p * ax)
    poly = t * (a1 + t * (a2 + t * (a3 + t * (a4 + t * a5))))
    y = 1.0 - poly * jnp.exp(-ax * ax)
    return jnp.where(x >= 0, y, -y)


def _gelu_exact(x):
    # Matches torch.nn.GELU() (erf formulation), up to the erf approx above.
    return 0.5 * x * (1.0 + _erf(x * _INV_SQRT2))


# ------------------------------ fused kernel ------------------------------- #

def _fused_kernel(win_ref, wdb_ref, bd_ref, w1_ref, b1_ref, w2_ref, b2_ref,
                  kflat_ref, expt_ref, out_ref, *, inv_hw):
    """Entire WinKernel_Reweight forward in one kernel.

    win_ref   : (B, win_num, dim*HW)        windows, (dim, spatial) flattened
    wdb_ref   : (win_num, dim*HW)           downchannel weight broadcast on HW
    bd_ref    : (1, win_num)                downchannel bias
    w1_ref    : (4*win_num, win_num)        linear1 weight
    b1_ref    : (1, 4*win_num)              linear1 bias
    w2_ref    : (win_num, 4*win_num)        linear2 weight
    b2_ref    : (1, win_num)                linear2 bias
    kflat_ref : (1, win_num*dim*kk)         depthwise kernels, flattened
    expt_ref  : (win_num*dim*kk, win_num)   one-hot: output lane -> window id
    out_ref   : (B, win_num*dim*kk)         reweighted kernels (lane-dense)
    """
    # --- pooling + grouped 1x1 conv, folded: one multiply + one lane reduce --
    y = (jnp.sum(win_ref[...] * wdb_ref[...][None, :, :], axis=-1) * inv_hw
         + bd_ref[...])                                       # (B, win_num)

    # --- squeeze-excite MLP on (B, win_num): VPU broadcast-mul + minor reduce
    h = jnp.sum(y[:, None, :] * w1_ref[...][None, :, :], axis=-1) + b1_ref[...]
    h = _gelu_exact(h)                                        # (B, 4*win_num)
    v = jnp.sum(h[:, None, :] * w2_ref[...][None, :, :], axis=-1) + b2_ref[...]
    s = jax.nn.sigmoid(v)                                     # (B, win_num)

    # --- reweight: expand s to one weight per output lane (one-hot contract,
    #     no in-kernel reshapes), then scale the flattened kernels ------------
    s_exp = jnp.sum(s[:, None, :] * expt_ref[...][None, :, :], axis=-1)
    out_ref[...] = s_exp * kflat_ref[...]                     # (B, win*dim*kk)


# -------------------------------- wrapper ----------------------------------- #

def _full_spec(shape):
    zeros = (0,) * len(shape)
    return pl.BlockSpec(shape, lambda i, _z=zeros: _z)


@functools.partial(jax.jit, static_argnames=("dim", "win_num"))
def win_kernel_reweight(kernels, windows, params, *, dim, win_num):
    """Forward pass of WinKernel_Reweight.

    kernels : (win_num*dim, 1, k, k)   float32
    windows : (B, win_num*dim, wh, ww) float32 (NCHW, as in PyTorch)
    returns : (B*win_num*dim, 1, k, k) float32
    """
    B, C, H, W = windows.shape
    assert C == win_num * dim
    k = kernels.shape[-1]
    kk = k * k
    HW = H * W
    n_lane = win_num * dim * kk

    # Wrapper-side layout plumbing (all fused by jit; no extra dispatches).
    win3 = windows.reshape(B, win_num, dim * HW).astype(jnp.float32)
    wdb = jnp.broadcast_to(
        params["wd"].astype(jnp.float32)[:, :, None], (win_num, dim, HW)
    ).reshape(win_num, dim * HW)
    bd2 = params["bd"].reshape(1, win_num).astype(jnp.float32)
    w1 = params["w1"].astype(jnp.float32)                    # (4*win_num, win_num)
    b1 = params["b1"].reshape(1, 4 * win_num).astype(jnp.float32)
    w2 = params["w2"].astype(jnp.float32)                    # (win_num, 4*win_num)
    b2 = params["b2"].reshape(1, win_num).astype(jnp.float32)
    kflat = kernels.reshape(1, n_lane).astype(jnp.float32)
    # One-hot map from output lane j to its window id j // (dim*kk).
    lane_win = jnp.arange(n_lane, dtype=jnp.int32) // (dim * kk)
    expt = (lane_win[:, None] == jnp.arange(win_num, dtype=jnp.int32)[None, :]
            ).astype(jnp.float32)                            # (n_lane, win_num)

    kernel = functools.partial(_fused_kernel, inv_hw=1.0 / float(HW))
    inputs = (win3, wdb, bd2, w1, b1, w2, b2, kflat, expt)

    out2d = pl.pallas_call(
        kernel,
        out_shape=jax.ShapeDtypeStruct((B, n_lane), jnp.float32),
        grid=(1,),
        in_specs=[_full_spec(x.shape) for x in inputs],
        out_specs=_full_spec((B, n_lane)),
        compiler_params=pltpu.CompilerParams(
            dimension_semantics=("arbitrary",)),
    )(*inputs)

    return out2d.reshape(B * win_num * dim, 1, k, k)


# --------------------------- pure-JAX reference ----------------------------- #

def _reference(kernels, windows, params, *, dim, win_num):
    B, C, H, W = windows.shape
    k = kernels.shape[-1]
    pooled = jnp.mean(windows, axis=(2, 3)).reshape(B, win_num, dim)
    y = jnp.sum(pooled * params["wd"][None], axis=-1) + params["bd"]
    h = jax.nn.gelu(y @ params["w1"].T + params["b1"], approximate=False)
    s = jax.nn.sigmoid(h @ params["w2"].T + params["b2"])
    kk = kernels.reshape(1, win_num, dim, 1, k, k)
    out = s[:, :, None, None, None, None] * kk
    return out.reshape(-1, 1, k, k)


# ----------------------------------- main ------------------------------------ #

if __name__ == "__main__":
    dim, win_num = 4, 4
    B, H, W, ksz = 2, 16, 16, 3

    key = jax.random.PRNGKey(0)
    keys = jax.random.split(key, 8)

    kernels = jax.random.normal(keys[0], (win_num * dim, 1, ksz, ksz), jnp.float32)
    windows = jax.random.normal(keys[1], (B, win_num * dim, H, W), jnp.float32)

    params = {
        "wd": 0.2 * jax.random.normal(keys[2], (win_num, dim), jnp.float32),
        "bd": 0.1 * jax.random.normal(keys[3], (win_num,), jnp.float32),
        "w1": 0.2 * jax.random.normal(keys[4], (4 * win_num, win_num), jnp.float32),
        "b1": 0.1 * jax.random.normal(keys[5], (4 * win_num,), jnp.float32),
        "w2": 0.2 * jax.random.normal(keys[6], (win_num, 4 * win_num), jnp.float32),
        "b2": 0.1 * jax.random.normal(keys[7], (win_num,), jnp.float32),
    }

    out = win_kernel_reweight(kernels, windows, params, dim=dim, win_num=win_num)
    out = jax.block_until_ready(out)

    ref = _reference(kernels, windows, params, dim=dim, win_num=win_num)
    assert out.shape == (B * win_num * dim, 1, ksz, ksz), out.shape
    assert jnp.max(jnp.abs(out - ref)) < 1e-4, "mismatch vs pure-JAX reference"

    print("KERNEL_OK")
</pallas_src>

<mosaic_0001>
module attributes {stable_mosaic.version = 11 : i64} {
  func.func @_fused_kernel(%arg0: i32, %arg1: memref<2x4x1024xf32, #tpu.memory_space<vmem>>, %arg2: memref<4x1024xf32, #tpu.memory_space<vmem>>, %arg3: memref<1x4xf32, #tpu.memory_space<vmem>>, %arg4: memref<16x4xf32, #tpu.memory_space<vmem>>, %arg5: memref<1x16xf32, #tpu.memory_space<vmem>>, %arg6: memref<4x16xf32, #tpu.memory_space<vmem>>, %arg7: memref<1x4xf32, #tpu.memory_space<vmem>>, %arg8: memref<1x144xf32, #tpu.memory_space<vmem>>, %arg9: memref<144x4xf32, #tpu.memory_space<vmem>>, %arg10: memref<2x144xf32, #tpu.memory_space<vmem>>) attributes {dimension_semantics = [#tpu.dimension_semantics<arbitrary>], iteration_bounds = array<i64: 1>, scalar_prefetch = 0 : i64, scratch_operands = 0 : i64, tpu.core_type = #tpu.core_type<tc>, window_params = [{pipeline_mode = #tpu.pipeline_mode<synchronous>, transform_indices = @transform_0, window_bounds = array<i64: 2, 4, 1024>}, {pipeline_mode = #tpu.pipeline_mode<synchronous>, transform_indices = @transform_1, window_bounds = array<i64: 4, 1024>}, {pipeline_mode = #tpu.pipeline_mode<synchronous>, transform_indices = @transform_2, window_bounds = array<i64: 1, 4>}, {pipeline_mode = #tpu.pipeline_mode<synchronous>, transform_indices = @transform_3, window_bounds = array<i64: 16, 4>}, {pipeline_mode = #tpu.pipeline_mode<synchronous>, transform_indices = @transform_4, window_bounds = array<i64: 1, 16>}, {pipeline_mode = #tpu.pipeline_mode<synchronous>, transform_indices = @transform_5, window_bounds = array<i64: 4, 16>}, {pipeline_mode = #tpu.pipeline_mode<synchronous>, transform_indices = @transform_6, window_bounds = array<i64: 1, 4>}, {pipeline_mode = #tpu.pipeline_mode<synchronous>, transform_indices = @transform_7, window_bounds = array<i64: 1, 144>}, {pipeline_mode = #tpu.pipeline_mode<synchronous>, transform_indices = @transform_8, window_bounds = array<i64: 144, 4>}, {pipeline_mode = #tpu.pipeline_mode<synchronous>, transform_indices = @transform_9, window_bounds = array<i64: 2, 144>}]} {
    %c0 = arith.constant 0 : index
    %c0_0 = arith.constant 0 : index
    %c0_1 = arith.constant 0 : index
    %0 = vector.load %arg1[%c0, %c0_0, %c0_1] : memref<2x4x1024xf32, #tpu.memory_space<vmem>>, vector<2x4x1024xf32>
    %c0_2 = arith.constant 0 : index
    %c0_3 = arith.constant 0 : index
    %1 = vector.load %arg2[%c0_2, %c0_3] : memref<4x1024xf32, #tpu.memory_space<vmem>>, vector<4x1024xf32>
    %2 = vector.shape_cast %1 : vector<4x1024xf32> to vector<1x4x1024xf32>
    %3 = vector.broadcast %2 : vector<1x4x1024xf32> to vector<2x4x1024xf32>
    %4 = arith.mulf %0, %3 : vector<2x4x1024xf32>
    %cst = arith.constant dense<0.000000e+00> : vector<2x4xf32>
    %5 = vector.multi_reduction <add>, %4, %cst [2] : vector<2x4x1024xf32> to vector<2x4xf32>
    %cst_4 = arith.constant 3.906250e-03 : f32
    %6 = vector.broadcast %cst_4 : f32 to vector<2x4xf32>
    %7 = arith.mulf %5, %6 : vector<2x4xf32>
    %c0_5 = arith.constant 0 : index
    %c0_6 = arith.constant 0 : index
    %8 = vector.load %arg3[%c0_5, %c0_6] : memref<1x4xf32, #tpu.memory_space<vmem>>, vector<1x4xf32>
    %9 = vector.broadcast %8 : vector<1x4xf32> to vector<2x4xf32>
    %10 = arith.addf %7, %9 : vector<2x4xf32>
    %11 = vector.shape_cast %10 : vector<2x4xf32> to vector<2x1x4xf32>
    %c0_7 = arith.constant 0 : index
    %c0_8 = arith.constant 0 : index
    %12 = vector.load %arg4[%c0_7, %c0_8] : memref<16x4xf32, #tpu.memory_space<vmem>>, vector<16x4xf32>
    %13 = vector.shape_cast %12 : vector<16x4xf32> to vector<1x16x4xf32>
    %14 = vector.broadcast %11 : vector<2x1x4xf32> to vector<2x16x4xf32>
    %15 = vector.broadcast %13 : vector<1x16x4xf32> to vector<2x16x4xf32>
    %16 = arith.mulf %14, %15 : vector<2x16x4xf32>
    %cst_9 = arith.constant dense<0.000000e+00> : vector<2x16xf32>
    %17 = vector.multi_reduction <add>, %16, %cst_9 [2] : vector<2x16x4xf32> to vector<2x16xf32>
    %c0_10 = arith.constant 0 : index
    %c0_11 = arith.constant 0 : index
    %18 = vector.load %arg5[%c0_10, %c0_11] : memref<1x16xf32, #tpu.memory_space<vmem>>, vector<1x16xf32>
    %19 = vector.broadcast %18 : vector<1x16xf32> to vector<2x16xf32>
    %20 = arith.addf %17, %19 : vector<2x16xf32>
    %cst_12 = arith.constant 5.000000e-01 : f32
    %21 = vector.broadcast %cst_12 : f32 to vector<2x16xf32>
    %22 = arith.mulf %21, %20 : vector<2x16xf32>
    %cst_13 = arith.constant 0.707106769 : f32
    %23 = vector.broadcast %cst_13 : f32 to vector<2x16xf32>
    %24 = arith.mulf %20, %23 : vector<2x16xf32>
    %25 = math.absf %24 : vector<2x16xf32>
    %cst_14 = arith.constant 0.327591091 : f32
    %26 = vector.broadcast %cst_14 : f32 to vector<2x16xf32>
    %27 = arith.mulf %26, %25 : vector<2x16xf32>
    %cst_15 = arith.constant 1.000000e+00 : f32
    %28 = vector.broadcast %cst_15 : f32 to vector<2x16xf32>
    %29 = arith.addf %28, %27 : vector<2x16xf32>
    %cst_16 = arith.constant 1.000000e+00 : f32
    %30 = vector.broadcast %cst_16 : f32 to vector<2x16xf32>
    %31 = arith.divf %30, %29 : vector<2x16xf32>
    %cst_17 = arith.constant 1.06140542 : f32
    %32 = vector.broadcast %cst_17 : f32 to vector<2x16xf32>
    %33 = arith.mulf %31, %32 : vector<2x16xf32>
    %cst_18 = arith.constant -1.45315206 : f32
    %34 = vector.broadcast %cst_18 : f32 to vector<2x16xf32>
    %35 = arith.addf %34, %33 : vector<2x16xf32>
    %36 = arith.mulf %31, %35 : vector<2x16xf32>
    %cst_19 = arith.constant 1.42141378 : f32
    %37 = vector.broadcast %cst_19 : f32 to vector<2x16xf32>
    %38 = arith.addf %37, %36 : vector<2x16xf32>
    %39 = arith.mulf %31, %38 : vector<2x16xf32>
    %cst_20 = arith.constant -0.284496725 : f32
    %40 = vector.broadcast %cst_20 : f32 to vector<2x16xf32>
    %41 = arith.addf %40, %39 : vector<2x16xf32>
    %42 = arith.mulf %31, %41 : vector<2x16xf32>
    %cst_21 = arith.constant 0.254829586 : f32
    %43 = vector.broadcast %cst_21 : f32 to vector<2x16xf32>
    %44 = arith.addf %43, %42 : vector<2x16xf32>
    %45 = arith.mulf %31, %44 : vector<2x16xf32>
    %cst_22 = arith.constant 0.000000e+00 : f32
    %46 = vector.broadcast %cst_22 : f32 to vector<2x16xf32>
    %47 = arith.subf %46, %25 : vector<2x16xf32>
    %48 = arith.mulf %47, %25 : vector<2x16xf32>
    %49 = math.exp %48 : vector<2x16xf32>
    %50 = arith.mulf %45, %49 : vector<2x16xf32>
    %cst_23 = arith.constant 1.000000e+00 : f32
    %51 = vector.broadcast %cst_23 : f32 to vector<2x16xf32>
    %52 = arith.subf %51, %50 : vector<2x16xf32>
    %cst_24 = arith.constant 0.000000e+00 : f32
    %53 = vector.broadcast %cst_24 : f32 to vector<2x16xf32>
    %54 = arith.cmpf oge, %24, %53 : vector<2x16xf32>
    %cst_25 = arith.constant 0.000000e+00 : f32
    %55 = vector.broadcast %cst_25 : f32 to vector<2x16xf32>
    %56 = arith.subf %55, %52 : vector<2x16xf32>
    %57 = arith.select %54, %52, %56 : vector<2x16xi1>, vector<2x16xf32>
    %cst_26 = arith.constant 1.000000e+00 : f32
    %58 = vector.broadcast %cst_26 : f32 to vector<2x16xf32>
    %59 = arith.addf %58, %57 : vector<2x16xf32>
    %60 = arith.mulf %22, %59 : vector<2x16xf32>
    %61 = vector.shape_cast %60 : vector<2x16xf32> to vector<2x1x16xf32>
    %c0_27 = arith.constant 0 : index
    %c0_28 = arith.constant 0 : index
    %62 = vector.load %arg6[%c0_27, %c0_28] : memref<4x16xf32, #tpu.memory_space<vmem>>, vector<4x16xf32>
    %63 = vector.shape_cast %62 : vector<4x16xf32> to vector<1x4x16xf32>
    %64 = vector.broadcast %61 : vector<2x1x16xf32> to vector<2x4x16xf32>
    %65 = vector.broadcast %63 : vector<1x4x16xf32> to vector<2x4x16xf32>
    %66 = arith.mulf %64, %65 : vector<2x4x16xf32>
    %cst_29 = arith.constant dense<0.000000e+00> : vector<2x4xf32>
    %67 = vector.multi_reduction <add>, %66, %cst_29 [2] : vector<2x4x16xf32> to vector<2x4xf32>
    %c0_30 = arith.constant 0 : index
    %c0_31 = arith.constant 0 : index
    %68 = vector.load %arg7[%c0_30, %c0_31] : memref<1x4xf32, #tpu.memory_space<vmem>>, vector<1x4xf32>
    %69 = vector.broadcast %68 : vector<1x4xf32> to vector<2x4xf32>
    %70 = arith.addf %67, %69 : vector<2x4xf32>
    %71 = arith.negf %70 : vector<2x4xf32>
    %72 = math.exp %71 : vector<2x4xf32>
    %cst_32 = arith.constant 1.000000e+00 : f32
    %73 = vector.broadcast %cst_32 : f32 to vector<2x4xf32>
    %74 = arith.addf %73, %72 : vector<2x4xf32>
    %75 = arith.divf %73, %74 : vector<2x4xf32>
    %76 = vector.shape_cast %75 : vector<2x4xf32> to vector<2x1x4xf32>
    %c0_33 = arith.constant 0 : index
    %c0_34 = arith.constant 0 : index
    %77 = vector.load %arg9[%c0_33, %c0_34] : memref<144x4xf32, #tpu.memory_space<vmem>>, vector<144x4xf32>
    %78 = vector.shape_cast %77 : vector<144x4xf32> to vector<1x144x4xf32>
    %79 = vector.broadcast %76 : vector<2x1x4xf32> to vector<2x144x4xf32>
    %80 = vector.broadcast %78 : vector<1x144x4xf32> to vector<2x144x4xf32>
    %81 = arith.mulf %79, %80 : vector<2x144x4xf32>
    %cst_35 = arith.constant dense<0.000000e+00> : vector<2x144xf32>
    %82 = vector.multi_reduction <add>, %81, %cst_35 [2] : vector<2x144x4xf32> to vector<2x144xf32>
    %c0_36 = arith.constant 0 : index
    %c0_37 = arith.constant 0 : index
    %83 = vector.load %arg8[%c0_36, %c0_37] : memref<1x144xf32, #tpu.memory_space<vmem>>, vector<1x144xf32>
    %84 = vector.broadcast %83 : vector<1x144xf32> to vector<2x144xf32>
    %85 = arith.mulf %82, %84 : vector<2x144xf32>
    %c0_38 = arith.constant 0 : index
    %c0_39 = arith.constant 0 : index
    %86 = vector.load %arg10[%c0_38, %c0_39] : memref<2x144xf32, #tpu.memory_space<vmem>>, vector<2x144xf32>
    tpu.vector_store %arg10[%c0_38, %c0_39], %85 {strides = array<i32>} : memref<2x144xf32, #tpu.memory_space<vmem>>, vector<2x144xf32>,
    return
  }
  func.func @transform_0(%arg0: i32) -> (i32, i32, i32) {
    %c0_i32 = arith.constant 0 : i32
    %c0_i32_0 = arith.constant 0 : i32
    %c0_i32_1 = arith.constant 0 : i32
    %c0_i32_2 = arith.constant 0 : i32
    return %c0_i32, %c0_i32_0, %c0_i32_1 : i32, i32, i32
  }
  func.func @transform_1(%arg0: i32) -> (i32, i32) {
    %c0_i32 = arith.constant 0 : i32
    %c0_i32_0 = arith.constant 0 : i32
    %c0_i32_1 = arith.constant 0 : i32
    return %c0_i32, %c0_i32_0 : i32, i32
  }
  func.func @transform_2(%arg0: i32) -> (i32, i32) {
    %c0_i32 = arith.constant 0 : i32
    %c0_i32_0 = arith.constant 0 : i32
    %c0_i32_1 = arith.constant 0 : i32
    return %c0_i32, %c0_i32_0 : i32, i32
  }
  func.func @transform_3(%arg0: i32) -> (i32, i32) {
    %c0_i32 = arith.constant 0 : i32
    %c0_i32_0 = arith.constant 0 : i32
    %c0_i32_1 = arith.constant 0 : i32
    return %c0_i32, %c0_i32_0 : i32, i32
  }
  func.func @transform_4(%arg0: i32) -> (i32, i32) {
    %c0_i32 = arith.constant 0 : i32
    %c0_i32_0 = arith.constant 0 : i32
    %c0_i32_1 = arith.constant 0 : i32
    return %c0_i32, %c0_i32_0 : i32, i32
  }
  func.func @transform_5(%arg0: i32) -> (i32, i32) {
    %c0_i32 = arith.constant 0 : i32
    %c0_i32_0 = arith.constant 0 : i32
    %c0_i32_1 = arith.constant 0 : i32
    return %c0_i32, %c0_i32_0 : i32, i32
  }
  func.func @transform_6(%arg0: i32) -> (i32, i32) {
    %c0_i32 = arith.constant 0 : i32
    %c0_i32_0 = arith.constant 0 : i32
    %c0_i32_1 = arith.constant 0 : i32
    return %c0_i32, %c0_i32_0 : i32, i32
  }
  func.func @transform_7(%arg0: i32) -> (i32, i32) {
    %c0_i32 = arith.constant 0 : i32
    %c0_i32_0 = arith.constant 0 : i32
    %c0_i32_1 = arith.constant 0 : i32
    return %c0_i32, %c0_i32_0 : i32, i32
  }
  func.func @transform_8(%arg0: i32) -> (i32, i32) {
    %c0_i32 = arith.constant 0 : i32
    %c0_i32_0 = arith.constant 0 : i32
    %c0_i32_1 = arith.constant 0 : i32
    return %c0_i32, %c0_i32_0 : i32, i32
  }
  func.func @transform_9(%arg0: i32) -> (i32, i32) {
    %c0_i32 = arith.constant 0 : i32
    %c0_i32_0 = arith.constant 0 : i32
    %c0_i32_1 = arith.constant 0 : i32
    return %c0_i32, %c0_i32_0 : i32, i32
  }
}

</mosaic_0001>

<bundles_post_ra>
// kernel: win_kernel_reweight.1
= control target key start
LH: loop header
LB: loop body
LE: loop exit
PB: predicated region body
PF: predicated region fallthrough
CT: control target
= control target key end

     0   :  { %v129_v0 = vlaneseq  ;;  %vm76_vm0 = vcmask 1043456   ;;  %vm547_vm1 = vcmask 1041409   ;;  %vm549_vm2 = vcmask 1042434   ;;  %s10563_s2 = inlined_call_operand.vmem [shape: f32[1,4], index: 2, kind: input, shape index: {}]   ;;  %s10564_s3 = inlined_call_operand.vmem [shape: f32[16,4], index: 3, kind: input, shape index: {}]   ;;  %s10565_s0 = inlined_call_operand.vmem [shape: f32[2,4,1024], index: 0, kind: input, shape index: {}]   ;;  %s10566_s1 = inlined_call_operand.vmem [shape: f32[4,1024], index: 1, kind: input, shape index: {}]   ;;  %s10567_s4 = inlined_call_operand.vmem [shape: f32[1,16], index: 4, kind: input, shape index: {}]   ;;  %s10568_s5 = inlined_call_operand.vmem [shape: f32[4,16], index: 5, kind: input, shape index: {}]   ;;  %s10569_s6 = inlined_call_operand.vmem [shape: f32[1,4], index: 6, kind: input, shape index: {}]   ;;  %s10570_s8 = inlined_call_operand.vmem [shape: f32[144,4], index: 8, kind: input, shape index: {}]   ;;  %s10571_s7 = inlined_call_operand.vmem [shape: f32[1,144], index: 7, kind: input, shape index: {}]   ;;  %s10572_s9 = inlined_call_operand.vmem [shape: f32[2,144], index: 9, kind: output, shape index: {}]  }
   0x1   :  { %v6874_v1 = vld [vmem:[%s10563_s2] ss:$0 sm:$0xff]  ;;  %v33_v5 = vld [vmem:[%s10565_s0 + $0x8] sm:$0xff]  ;;  %v34_v6 = vld [vmem:[%s10565_s0 + $0x10] sm:$0xff]  ;;  %vm551_vm3 = vcmask 1043459   ;;  %vm553_vm4 = vcmask 1044484  }
   0x2   :  { %120 = vbcast.lane.b32.xlu1 %v6874_v1, 256  ;;  %v6965_v2 = vld [vmem:[%s10564_s3] sm:$0xff]  ;;  %v6968_v3 = vshrl.u32 %v129_v0, 7  ;;  %v41_v8 = vld [vmem:[%s10566_s1 + $0x8] sm:$0xff]  ;;  %v42_v12 = vld [vmem:[%s10566_s1 + $0x10] sm:$0xff]  ;;  %vm555_vm5 = vcmask 1045509  }
   0x3   :  { %v32_v4 = vld [vmem:[%s10565_s0] sm:$0xff]  ;;  %v45_v14 = vmul.f32 %v41_v8, %v33_v5  ;;  %v46_v16 = vmul.f32 %v42_v12, %v34_v6  ;;  %v35_v17 = vld [vmem:[%s10565_s0 + $0x18] sm:$0xff]  ;;  %v37_v22 = vld [vmem:[%s10565_s0 + $0x28] sm:$0xff]  ;;  %vm557_vm6 = vcmask 1046534   ;;  %vm559_vm7 = vcmask 1047559  }
   0x4   :  { %10688 = vst [vmem:[#allocation2_spill] sm:$0xff] %v6968_v3  ;;  %v40_v7 = vld [vmem:[%s10566_s1] sm:$0xff]  ;;  %v6986_v9 = vsub.s32 0, %v6968_v3  ;;  %v6989_v10 = vsub.s32 2, %v6968_v3  ;;  %v43_v18 = vld [vmem:[%s10566_s1 + $0x18] sm:$0xff]  ;;  %v7011_v24 = vsub.s32 3, %v6968_v3  ;;  %v49_v32 = vmul.f32 %v41_v8, %v37_v22 }
   0x5   :  { %v36_v11 = vld [vmem:[%s10565_s0 + $0x20] sm:$0xff]  ;;  %v44_v13 = vmul.f32 %v40_v7, %v32_v4  ;;  %v61_v21 = vcombine.high %v45_v14, %v45_v14  ;;  %v38_v26 = vld [vmem:[%s10565_s0 + $0x30] sm:$0xff]  ;;  %v80_v28 = vsel %vm76_vm0, %v45_v14, 0.0  ;;  %v47_v29 = vmul.f32 %v43_v18, %v35_v17  ;;  %v39_v40 = vld [vmem:[%s10565_s0 + $0x38] sm:$0xff] }
   0x6   :  { %10689 = vst [vmem:[#allocation3_spill] sm:$0xff] %v6986_v9  ;;  %v132_v15 = vrot.slane %v6965_v2, %v6986_v9  ;;  %v48_v19 = vmul.f32 %v40_v7, %v36_v11  ;;  %v146_v23 = vrot.slane %v6965_v2, %v6989_v10  ;;  %v62_v30 = vcombine.high %v46_v16, %v46_v16 }
   0x7   :  { %v60_v20 = vcombine.high %v44_v13, %v44_v13  ;;  %v77_v25 = vsel %vm76_vm0, %v44_v13, 0.0  ;;  %v82_v33 = vsel %vm76_vm0, %v61_v21, 0.0  ;;  %v50_v34 = vmul.f32 %v42_v12, %v38_v26 }
   0x8   :  { %134 = vbcast.lane.b32.xlu1 %v132_v15, 256  ;;  %v64_v35 = vcombine.high %v48_v19, %v48_v19  ;;  %v94_v36 = vsel %vm76_vm0, %v48_v19, 0.0  ;;  %v153_v37 = vrot.slane %v6965_v2, %v7011_v24  ;;  %v7024_v38 = vsub.s32 4, %v6968_v3 }
   0x9   :  { %v78_v27 = vsel %vm76_vm0, %v60_v20, 0.0  ;;  %v65_v41 = vcombine.high %v49_v32, %v49_v32  ;;  %v84_v42 = vsel %vm76_vm0, %v46_v16, 0.0  ;;  %v97_v44 = vsel %vm76_vm0, %v49_v32, 0.0 }
   0xa   :  { %v79_v31 = vadd.f32 %v78_v27, %v77_v25  ;;  %v95_v43 = vsel %vm76_vm0, %v64_v35, 0.0  ;;  %v63_v45 = vcombine.high %v47_v29, %v47_v29  ;;  %v86_v48 = vsel %vm76_vm0, %v62_v30, 0.0  ;;  %v6875_v27 = vld [vmem:[%s10567_s4] ss:$0 sm:$0xff] }
   0xb   :  { %v96_v47 = vadd.f32 %v95_v43, %v94_v36  ;;  %v51_v49 = vmul.f32 %v43_v18, %v39_v40  ;;  %v66_v50 = vcombine.high %v50_v34, %v50_v34  ;;  %v99_v51 = vsel %vm76_vm0, %v65_v41, 0.0  ;;  %v126_v18 = vld [vmem:[%s10564_s3 + $0x8] sm:$0xff] }
   0xc   :  { %148 = vbcast.lane.b32.xlu1 %v146_v23, 256  ;;  %v81_v39 = vadd.f32 %v80_v28, %v79_v31  ;;  %v160_v52 = vrot.slane %v6965_v2, %v7024_v38  ;;  %v7037_v54 = vsub.s32 5, %v6968_v3  ;;  %v88_v56 = vsel %vm76_vm0, %v47_v29, 0.0  ;;  %v726_v28 = vld [vmem:[%s10568_s5] sm:$0xf] }
   0xd   :  { %v98_v55 = vadd.f32 %v97_v44, %v96_v47  ;;  %v101_v57 = vsel %vm76_vm0, %v50_v34, 0.0  ;;  %v90_v60 = vsel %vm76_vm0, %v63_v45, 0.0  ;;  %v67_v61 = vcombine.high %v51_v49, %v51_v49 }
   0xe   :  { %v83_v46 = vadd.f32 %v82_v33, %v81_v39  ;;  %v103_v62 = vsel %vm76_vm0, %v66_v50, 0.0  ;;  %v167_v1 = vrot.slane %v6965_v2, %v7037_v54  ;;  %v7046_v5 = vsub.s32 6, %v6968_v3 }
   0xf   :  { %v100_v59 = vadd.f32 %v99_v51, %v98_v55  ;;  %v105_v6 = vsel %vm76_vm0, %v51_v49, 0.0  ;;  %v107_v11 = vsel %vm76_vm0, %v67_v61, 0.0  ;;  %v7053_v14 = vsub.s32 7, %v6968_v3 }
  0x10   :  { %155 = vbcast.lane.b32.xlu1 %v153_v37, 256  ;;  %v85_v53 = vadd.f32 %v84_v42, %v83_v46  ;;  %v174_v13 = vrot.slane %v6965_v2, %v7046_v5  ;;  %v7058_v17 = vsub.s32 1, %v6968_v3  ;;  %v209_v20 = vrot.slane %v126_v18, %v7011_v24 }
  0x11   :  { %v102_v4 = vadd.f32 %v101_v57, %v100_v59  ;;  %v181_v16 = vrot.slane %v6965_v2, %v7053_v14  ;;  %v6907_v21 = vmov 0   ;;  %v223_v22 = vrot.slane %v126_v18, %v7037_v54 }
  0x12   :  { %v87_v58 = vadd.f32 %v86_v48, %v85_v53  ;;  %10690 = vst [vmem:[#allocation4_spill] sm:$0xff] %v7058_v17  ;;  %v195_v19 = vrot.slane %v126_v18, %v7058_v17  ;;  %6881 = vset.pattern.permute.xlu0 %v6907_v21  ;;  %6882 = vset.pattern.permute.xlu1 %v6907_v21  ;;  %vm586_vm8 = vcmask 31744   ;;  %vm869_vm13 = vcmask 130112  }
  0x13   :  { %v104_v8 = vadd.f32 %v103_v62, %v102_v4  ;;  %v237_v23 = vrot.slane %v126_v18, %v7053_v14  ;;  %v139_v25 = vrot.slane %v6965_v2, %v7058_v17  ;;  %v188_v26 = vrot.slane %v126_v18, %v6986_v9 }
  0x14   :  { %162 = vbcast.lane.b32.xlu1 %v160_v52, 256  ;;  %v89_v63 = vadd.f32 %v88_v56, %v87_v58  ;;  %v202_v29 = vrot.slane %v126_v18, %v6989_v10  ;;  %v731_v30 = vrot.slane %v726_v28, %v6986_v9  ;;  %v216_v2 = vrot.slane %v126_v18, %v7024_v38 }
  0x15   :  { %v106_v12 = vadd.f32 %v105_v6, %v104_v8  ;;  %v742_v31 = vrot.slane %v726_v28, %v7058_v17  ;;  %v230_v32 = vrot.slane %v126_v18, %v7046_v5  ;;  %v753_v33 = vrot.slane %v726_v28, %v6989_v10 }
  0x16   :  { %v91_v7 = vadd.f32 %v90_v60, %v89_v63  ;;  %v764_v34 = vrot.slane %v726_v28, %v7011_v24  ;;  %vm942_vm14 = vcmask 125952   ;;  %vm6665_vm15 = vcmask 195712  }
  0x17   :  { %v108_v15 = vadd.f32 %v107_v11, %v106_v12  ;;  %vm6672_vm0 = vcmask 261312  }
  0x18   :  { %92 = vadd.xlane.f32.xlu0 %v91_v7  ;;  %169 = vbcast.lane.b32.xlu1 %v167_v1, 256 }
  0x1c   :  { %109 = vadd.xlane.f32.xlu0 %v108_v15  ;;  %176 = vbcast.lane.b32.xlu1 %v174_v13, 256 }
  0x20   :  { %183 = vbcast.lane.b32.xlu1 %v181_v16, 256 }
  0x24   :  { %197 = vbcast.lane.b32.xlu1 %v195_v19, 256 }
  0x28   :  { %211 = vbcast.lane.b32.xlu1 %v209_v20, 256 }
  0x2c   :  { %225 = vbcast.lane.b32.xlu1 %v223_v22, 256 }
  0x30   :  { %239 = vbcast.lane.b32.xlu1 %v237_v23, 256 }
  0x32   :  { %141 = vbcast.lane.b32.xlu0 %v139_v25, 256 }
  0x34   :  { %610 = vbcast.lane.b32.xlu1 %v6875_v27, 264 }
  0x36   :  { %190 = vbcast.lane.b32.xlu0 %v188_v26, 256 }
  0x38   :  { %733 = vbcast.lane.b32.xlu1 %v731_v30, 256 }
  0x3a   :  { %204 = vbcast.lane.b32.xlu0 %v202_v29, 256 }
  0x3c   :  { %744 = vbcast.lane.b32.xlu1 %v742_v31, 256 }
  0x3e   :  { %218 = vbcast.lane.b32.xlu0 %v216_v2, 256 }
  0x40   :  { %755 = vbcast.lane.b32.xlu1 %v753_v33, 256 }
  0x42   :  { %232 = vbcast.lane.b32.xlu0 %v230_v32, 256 }
  0x44   :  { %766 = vbcast.lane.b32.xlu1 %v764_v34, 256 }
  0x46   :  { %606 = vbcast.lane.b32.xlu0 %v6875_v27, 256 }
  0x4a   :  { %737 = vbcast.lane.b32.xlu0 %v731_v30, 264 }
  0x4e   :  { %748 = vbcast.lane.b32.xlu0 %v742_v31, 264 }
  0x52   :  { %759 = vbcast.lane.b32.xlu0 %v753_v33, 264 }
  0x56   :  { %770 = vbcast.lane.b32.xlu0 %v764_v34, 264 }
  0x74   :  { %v121_v35 = vpop.permute.xlu1 %120 }
  0x7a   :  { %v135_v36 = vpop.permute.xlu1 %134 }
  0x7e   :  { %v149_v37 = vpop.permute.xlu1 %148 }
  0x82   :  { %v156_v39 = vpop.permute.xlu1 %155 }
  0x86   :  { %v163_v40 = vpop.permute.xlu1 %162 }
  0x8a   :  { %v170_v41 = vpop.permute.xlu1 %169 }
  0x8e   :  { %v7083_v42 = vpop.permute.xlu1 %176 }
  0x92   :  { %v184_v48 = vpop.permute.xlu1 %183 }
  0x96   :  { %v198_v52 = vpop.permute.xlu1 %197 }
  0x9a   :  { %v212_v59 = vpop.permute.xlu1 %211 }
  0x9e   :  { %v226_v63 = vpop.permute.xlu1 %225 }
  0xa1   :  { %v93_v43 = vpop.xlane.xlu0 %92 }
  0xa2   :  { %v111_v44 = vmul.f32 0.00390625, %v93_v43  ;;  %v240_v12 = vpop.permute.xlu1 %239 }
  0xa4   :  { %v123_v45 = vadd.f32 %v121_v35, %v111_v44 }
  0xa5   :  { %v110_v46 = vpop.xlane.xlu0 %109 }
  0xa6   :  { %v257_v47 = vmul.f32 %v135_v36, %v123_v45  ;;  %v260_v51 = vmul.f32 %v156_v39, %v123_v45  ;;  %v262_v53 = vmul.f32 %v170_v41, %v123_v45  ;;  %v259_v55 = vmul.f32 %v149_v37, %v123_v45 }
  0xa7   :  { %v264_v57 = vmul.f32 %v184_v48, %v123_v45  ;;  %v261_v58 = vmul.f32 %v163_v40, %v123_v45  ;;  %v266_v60 = vmul.f32 %v198_v52, %v123_v45  ;;  %v263_v61 = vmul.f32 %v7083_v42, %v123_v45 }
  0xa8   :  { %322 = vperm.xlu0 %6881, %v257_v47   ;;  %v268_v4 = vmul.f32 %v212_v59, %v123_v45  ;;  %v112_v7 = vmul.f32 0.00390625, %v110_v46  ;;  %v270_v11 = vmul.f32 %v226_v63, %v123_v45  ;;  %v272_v13 = vmul.f32 %v240_v12, %v123_v45 }
  0xa9   :  { %v142_v49 = vpop.permute.xlu0 %141 }
  0xaa   :  { %v258_v50 = vmul.f32 %v142_v49, %v123_v45  ;;  %v124_v15 = vadd.f32 %v121_v35, %v112_v7  ;;  %v6876_v35 = vld [vmem:[%s10569_s6] ss:$0 sm:$0xff] }
  0xac   :  { %331 = vperm.xlu0 %6881, %v260_v51   ;;  %325 = vperm.xlu1 %6882, %v258_v50   ;;  %v274_v19 = vmul.f32 %v142_v49, %v124_v15  ;;  %v276_v21 = vmul.f32 %v156_v39, %v124_v15  ;;  %v273_v22 = vmul.f32 %v135_v36, %v124_v15  ;;  %v973_v36 = vld [vmem:[%s10570_s8] sm:$0xff] }
  0xad   :  { %v191_v56 = vpop.permute.xlu0 %190  ;;  %v278_v23 = vmul.f32 %v170_v41, %v124_v15  ;;  %v275_v25 = vmul.f32 %v149_v37, %v124_v15  ;;  %v280_v26 = vmul.f32 %v184_v48, %v124_v15  ;;  %v277_v27 = vmul.f32 %v163_v40, %v124_v15 }
  0xae   :  { %v265_v1 = vmul.f32 %v191_v56, %v123_v45  ;;  %v282_v28 = vmul.f32 %v198_v52, %v124_v15  ;;  %v279_v29 = vmul.f32 %v7083_v42, %v124_v15  ;;  %v281_v30 = vmul.f32 %v191_v56, %v124_v15 }
  0xaf   :  { %v284_v2 = vmul.f32 %v212_v59, %v124_v15  ;;  %v286_v32 = vmul.f32 %v226_v63, %v124_v15  ;;  %v288_v34 = vmul.f32 %v240_v12, %v124_v15  ;;  %v1026_v39 = vrot.slane %v973_v36, %v6989_v10 }
  0xb0   :  { %337 = vperm.xlu0 %6881, %v262_v53   ;;  %328 = vperm.xlu1 %6882, %v259_v55   ;;  %v1012_v40 = vrot.slane %v973_v36, %v6986_v9  ;;  %v1040_v41 = vrot.slane %v973_v36, %v7024_v38  ;;  %v1019_v42 = vrot.slane %v973_v36, %v7058_v17  ;;  %v975_v55 = vld [vmem:[%s10570_s8 + $0x10] sm:$0xff] }
  0xb1   :  { %v205_v62 = vpop.permute.xlu0 %204  ;;  %v1054_v43 = vrot.slane %v973_v36, %v7046_v5  ;;  %v1033_v44 = vrot.slane %v973_v36, %v7011_v24  ;;  %v1047_v47 = vrot.slane %v973_v36, %v7037_v54  ;;  %v1061_v49 = vrot.slane %v973_v36, %v7053_v14 }
  0xb2   :  { %v267_v8 = vmul.f32 %v205_v62, %v123_v45  ;;  %v283_v31 = vmul.f32 %v205_v62, %v124_v15  ;;  %v1124_v56 = vrot.slane %v975_v55, %v6986_v9  ;;  %v1138_v59 = vrot.slane %v975_v55, %v6989_v10 }
  0xb3   :  { %v1152_v63 = vrot.slane %v975_v55, %v7024_v38 }
  0xb4   :  { %343 = vperm.xlu0 %6881, %v264_v57   ;;  %334 = vperm.xlu1 %6882, %v261_v58  }
  0xb5   :  { %v219_v6 = vpop.permute.xlu0 %218 }
  0xb6   :  { %v269_v16 = vmul.f32 %v219_v6, %v123_v45  ;;  %v285_v33 = vmul.f32 %v219_v6, %v124_v15  ;;  %v1145_v6 = vrot.slane %v975_v55, %v7011_v24 }
  0xb8   :  { %349 = vperm.xlu0 %6881, %v266_v60   ;;  %340 = vperm.xlu1 %6882, %v263_v61   ;;  %v7119_v61 = vpop.permute.xlu1 %610 }
  0xb9   :  { %v233_v18 = vpop.permute.xlu0 %232 }
  0xba   :  { %v271_v20 = vmul.f32 %v233_v18, %v123_v45  ;;  %v287_v37 = vmul.f32 %v233_v18, %v124_v15  ;;  %v974_v45 = vld [vmem:[%s10570_s8 + $0x8] sm:$0xff] }
  0xbb   :  { %v1068_v46 = vrot.slane %v974_v45, %v6986_v9  ;;  %v1082_v48 = vrot.slane %v974_v45, %v6989_v10  ;;  %v1096_v50 = vrot.slane %v974_v45, %v7024_v38  ;;  %v1075_v51 = vrot.slane %v974_v45, %v7058_v17 }
  0xbc   :  { %355 = vperm.xlu0 %6881, %v268_v4   ;;  %346 = vperm.xlu1 %6882, %v265_v1   ;;  %v1110_v52 = vrot.slane %v974_v45, %v7046_v5  ;;  %v1089_v53 = vrot.slane %v974_v45, %v7011_v24  ;;  %v1103_v57 = vrot.slane %v974_v45, %v7037_v54  ;;  %v7127_v7 = vpop.permute.xlu1 %733 }
  0xbd   :  { %v7115_v58 = vpop.permute.xlu0 %606  ;;  %v1117_v60 = vrot.slane %v974_v45, %v7053_v14  ;;  %v1131_v1 = vrot.slane %v975_v55, %v7058_v17  ;;  %v1166_v4 = vrot.slane %v975_v55, %v7046_v5 }
  0xc0   :  { %361 = vperm.xlu0 %6881, %v270_v11   ;;  %352 = vperm.xlu1 %6882, %v267_v8   ;;  %v976_v11 = vld [vmem:[%s10570_s8 + $0x18] sm:$0xff]  ;;  %v7136_v15 = vpop.permute.xlu1 %744 }
  0xc1   :  { %v7121_v62 = vpop.permute.xlu0 %737  ;;  %v1180_v12 = vrot.slane %v976_v11, %v6986_v9  ;;  %v1194_v18 = vrot.slane %v976_v11, %v6989_v10 }
  0xc4   :  { %367 = vperm.xlu0 %6881, %v272_v13   ;;  %358 = vperm.xlu1 %6882, %v269_v16   ;;  %v1159_v13 = vrot.slane %v975_v55, %v7037_v54 }
  0xc5   :  { %v7129_v8 = vpop.permute.xlu0 %748 }
  0xc8   :  { %373 = vperm.xlu0 %6881, %v274_v19   ;;  %364 = vperm.xlu1 %6882, %v271_v20   ;;  %v1173_v19 = vrot.slane %v975_v55, %v7053_v14  ;;  %v1208_v20 = vrot.slane %v976_v11, %v7024_v38 }
  0xc9   :  { %v7138_v16 = vpop.permute.xlu0 %759 }
  0xcc   :  { %379 = vperm.xlu0 %6881, %v276_v21   ;;  %370 = vperm.xlu1 %6882, %v273_v22   ;;  %v1187_v21 = vrot.slane %v976_v11, %v7058_v17  ;;  %v7144_v22 = vpop.permute.xlu1 %755 }
  0xd0   :  { %385 = vperm.xlu0 %6881, %v278_v23   ;;  %376 = vperm.xlu1 %6882, %v275_v25   ;;  %v7146_v23 = vpop.permute.xlu0 %770  ;;  %v1222_v25 = vrot.slane %v976_v11, %v7046_v5 }
  0xd4   :  { %391 = vperm.xlu0 %6881, %v280_v26   ;;  %382 = vperm.xlu1 %6882, %v277_v27   ;;  %v1201_v26 = vrot.slane %v976_v11, %v7011_v24  ;;  %v977_v27 = vld [vmem:[%s10570_s8 + $0x20] sm:$0xff] }
  0xd8   :  { %397 = vperm.xlu0 %6881, %v282_v28   ;;  %388 = vperm.xlu1 %6882, %v279_v29   ;;  %v7153_v28 = vpop.permute.xlu1 %766 }
  0xdc   :  { %403 = vperm.xlu0 %6881, %v284_v2   ;;  %394 = vperm.xlu1 %6882, %v281_v30   ;;  %v1236_v30 = vrot.slane %v977_v27, %v6986_v9  ;;  %v1215_v2 = vrot.slane %v976_v11, %v7037_v54 }
  0xe0   :  { %409 = vperm.xlu0 %6881, %v286_v32   ;;  %400 = vperm.xlu1 %6882, %v283_v31  }
  0xe4   :  { %415 = vperm.xlu0 %6881, %v288_v34   ;;  %406 = vperm.xlu1 %6882, %v285_v33   ;;  %v1250_v33 = vrot.slane %v977_v27, %v6989_v10  ;;  %v1229_v34 = vrot.slane %v976_v11, %v7053_v14 }
  0xe8   :  { %956 = vbcast.lane.b32.xlu0 %v6876_v35, 256  ;;  %412 = vperm.xlu1 %6882, %v287_v37   ;;  %v1264_v37 = vrot.slane %v977_v27, %v7024_v38 }
  0xec   :  { %1028 = vbcast.lane.b32.xlu0 %v1026_v39, 256  ;;  %1014 = vbcast.lane.b32.xlu1 %v1012_v40, 256  ;;  %v1243_v39 = vrot.slane %v977_v27, %v7058_v17 }
  0xf0   :  { %1042 = vbcast.lane.b32.xlu0 %v1040_v41, 256  ;;  %1021 = vbcast.lane.b32.xlu1 %v1019_v42, 256  ;;  %v1278_v42 = vrot.slane %v977_v27, %v7046_v5 }
  0xf4   :  { %1056 = vbcast.lane.b32.xlu0 %v1054_v43, 256  ;;  %1035 = vbcast.lane.b32.xlu1 %v1033_v44, 256  ;;  %v1257_v43 = vrot.slane %v977_v27, %v7011_v24  ;;  %v978_v44 = vld [vmem:[%s10570_s8 + $0x28] sm:$0xff] }
  0xf5   :  { %v1327_v11 = vrot.slane %v978_v44, %v7037_v54 }
  0xf8   :  { %1070 = vbcast.lane.b32.xlu0 %v1068_v46, 256  ;;  %1049 = vbcast.lane.b32.xlu1 %v1047_v47, 256  ;;  %v1292_v47 = vrot.slane %v978_v44, %v6986_v9 }
  0xfc   :  { %1084 = vbcast.lane.b32.xlu0 %v1082_v48, 256  ;;  %1063 = vbcast.lane.b32.xlu1 %v1061_v49, 256  ;;  %v1271_v48 = vrot.slane %v977_v27, %v7037_v54 }
 0x100   :  { %1098 = vbcast.lane.b32.xlu0 %v1096_v50, 256  ;;  %1077 = vbcast.lane.b32.xlu1 %v1075_v51, 256  ;;  %v1306_v51 = vrot.slane %v978_v44, %v6989_v10 }
 0x104   :  { %1112 = vbcast.lane.b32.xlu0 %v1110_v52, 256  ;;  %1091 = vbcast.lane.b32.xlu1 %v1089_v53, 256  ;;  %v1285_v52 = vrot.slane %v977_v27, %v7053_v14 }
 0x108   :  { %1126 = vbcast.lane.b32.xlu0 %v1124_v56, 256  ;;  %1105 = vbcast.lane.b32.xlu1 %v1103_v57, 256  ;;  %v1320_v56 = vrot.slane %v978_v44, %v7024_v38  ;;  %v1299_v57 = vrot.slane %v978_v44, %v7058_v17 }
 0x10c   :  { %1140 = vbcast.lane.b32.xlu0 %v1138_v59, 256  ;;  %1119 = vbcast.lane.b32.xlu1 %v1117_v60, 256 }
 0x110   :  { %1154 = vbcast.lane.b32.xlu0 %v1152_v63, 256  ;;  %1133 = vbcast.lane.b32.xlu1 %v1131_v1, 256  ;;  %v1334_v63 = vrot.slane %v978_v44, %v7046_v5  ;;  %v1313_v1 = vrot.slane %v978_v44, %v7011_v24 }
 0x114   :  { %1168 = vbcast.lane.b32.xlu0 %v1166_v4, 256  ;;  %1147 = vbcast.lane.b32.xlu1 %v1145_v6, 256 }
 0x118   :  { %1182 = vbcast.lane.b32.xlu0 %v1180_v12, 256  ;;  %1161 = vbcast.lane.b32.xlu1 %v1159_v13, 256 }
 0x11c   :  { %1196 = vbcast.lane.b32.xlu0 %v1194_v18, 256  ;;  %1175 = vbcast.lane.b32.xlu1 %v1173_v19, 256  ;;  %v1341_v18 = vrot.slane %v978_v44, %v7053_v14  ;;  %v7195_v19 = vand.u32 127, %v129_v0 }
 0x11e   :  { %10691 = vst [vmem:[#allocation5_spill] sm:$0xff] %v7195_v19 }
 0x120   :  { %1210 = vbcast.lane.b32.xlu0 %v1208_v20, 256  ;;  %1189 = vbcast.lane.b32.xlu1 %v1187_v21, 256 }
 0x123   :  { %v7155_v29 = vpop.permute.xlu0 %322 }
 0x124   :  { %1224 = vbcast.lane.b32.xlu0 %v1222_v25, 256  ;;  %1203 = vbcast.lane.b32.xlu1 %v1201_v26, 256  ;;  %v7199_v25 = vsub.s32 %v7195_v19, %v6968_v3 }
 0x126   :  { %10692 = vst [vmem:[#allocation6_spill] sm:$0xff] %v7199_v25 }
 0x127   :  { %v7159_v31 = vpop.permute.xlu1 %325  ;;  %v7161_v32 = vpop.permute.xlu0 %331 }
 0x128   :  { %1238 = vbcast.lane.b32.xlu0 %v1236_v30, 256  ;;  %1217 = vbcast.lane.b32.xlu1 %v1215_v2, 256 }
 0x12b   :  { %v7165_v35 = vpop.permute.xlu1 %328  ;;  %v7167_v36 = vpop.permute.xlu0 %337 }
 0x12c   :  { %1252 = vbcast.lane.b32.xlu0 %v1250_v33, 256  ;;  %1231 = vbcast.lane.b32.xlu1 %v1229_v34, 256 }
 0x12f   :  { %v7171_v40 = vpop.permute.xlu1 %334  ;;  %v7173_v41 = vpop.permute.xlu0 %343 }
 0x130   :  { %1266 = vbcast.lane.b32.xlu0 %v1264_v37, 256  ;;  %1245 = vbcast.lane.b32.xlu1 %v1243_v39, 256 }
 0x133   :  { %v7180_v45 = vpop.permute.xlu1 %340  ;;  %v350_v46 = vpop.permute.xlu0 %349 }
 0x134   :  { %1280 = vbcast.lane.b32.xlu0 %v1278_v42, 256  ;;  %1259 = vbcast.lane.b32.xlu1 %v1257_v43, 256  ;;  %v458_v33 = vrot.slane %v350_v46, %v7199_v25 }
 0x137   :  { %v347_v49 = vpop.permute.xlu1 %346  ;;  %v356_v50 = vpop.permute.xlu0 %355 }
 0x138   :  { %1294 = vbcast.lane.b32.xlu0 %v1292_v47, 256  ;;  %1273 = vbcast.lane.b32.xlu1 %v1271_v48, 256  ;;  %v454_v26 = vrot.slane %v347_v49, %v7199_v25  ;;  %v466_v47 = vrot.slane %v356_v50, %v7199_v25 }
 0x13a   :  { %v561_v0 = vsel %vm547_vm1, %v458_v33, %v454_v26 }
 0x13b   :  { %v353_v53 = vpop.permute.xlu1 %352  ;;  %v362_v55 = vpop.permute.xlu0 %361 }
 0x13c   :  { %1308 = vbcast.lane.b32.xlu0 %v1306_v51, 256  ;;  %1287 = vbcast.lane.b32.xlu1 %v1285_v52, 256  ;;  %v462_v2 = vrot.slane %v353_v53, %v7199_v25 }
 0x13e   :  { %v562_v42 = vsel %vm549_vm2, %v462_v2, %v561_v0  ;;  %v422_v2 = vrot.slane %v7155_v29, %v7199_v25 }
 0x13f   :  { %v359_v59 = vpop.permute.xlu1 %358  ;;  %v7188_v60 = vpop.permute.xlu0 %367  ;;  %v563_v46 = vsel %vm551_vm3, %v466_v47, %v562_v42  ;;  %v434_v42 = vrot.slane %v7161_v32, %v7199_v25 }
 0x140   :  { %1322 = vbcast.lane.b32.xlu0 %v1320_v56, 256  ;;  %1301 = vbcast.lane.b32.xlu1 %v1299_v57, 256  ;;  %v470_v43 = vrot.slane %v359_v59, %v7199_v25  ;;  %v474_v59 = vrot.slane %v362_v55, %v7199_v25  ;;  %v482_v26 = vrot.slane %v7188_v60, %v7199_v25 }
 0x142   :  { %v564_v53 = vsel %vm553_vm4, %v470_v43, %v563_v46 }
 0x143   :  { %v365_v4 = vpop.permute.xlu1 %364  ;;  %v374_v6 = vpop.permute.xlu0 %373 }
 0x144   :  { %1336 = vbcast.lane.b32.xlu0 %v1334_v63, 256  ;;  %1315 = vbcast.lane.b32.xlu1 %v1313_v1, 256  ;;  %v490_v48 = vrot.slane %v374_v6, %v7199_v25  ;;  %v478_v56 = vrot.slane %v365_v4, %v7199_v25  ;;  %v426_v4 = vrot.slane %v7159_v31, %v7199_v25 }
 0x147   :  { %v371_v12 = vpop.permute.xlu1 %370  ;;  %v380_v13 = vpop.permute.xlu0 %379 }
 0x148   :  { %1329 = vbcast.lane.b32.xlu1 %v1327_v11, 256  ;;  %v486_v34 = vrot.slane %v371_v12, %v7199_v25  ;;  %v498_v63 = vrot.slane %v380_v13, %v7199_v25  ;;  %v565_v12 = vsel %vm555_vm5, %v474_v59, %v564_v53  ;;  %v430_v13 = vrot.slane %v7165_v35, %v7199_v25 }
 0x149   :  { %v566_v55 = vsel %vm557_vm6, %v478_v56, %v565_v12  ;;  %v450_v59 = vrot.slane %v7173_v41, %v7199_v25  ;;  %v7295_v41 = vld [vmem:[%s10570_s8 + $0x30] sm:$0xff] }
 0x14a   :  { %v568_v49 = vsel %vm547_vm1, %v490_v48, %v486_v34  ;;  %v567_v0 = vsel %vm559_vm7, %v482_v26, %v566_v55  ;;  %v1348_v55 = vrot.slane %v7295_v41, %v6986_v9 }
 0x14b   :  { %v377_v20 = vpop.permute.xlu1 %376  ;;  %v386_v21 = vpop.permute.xlu0 %385  ;;  %v590_v43 = vsel %vm586_vm8, %v567_v0, 0.0  ;;  %v1376_v0 = vrot.slane %v7295_v41, %v7024_v38 }
 0x14c   :  { %1343 = vbcast.lane.b32.xlu1 %v1341_v18, 256  ;;  %v494_v44 = vrot.slane %v377_v20, %v7199_v25 }
 0x14e   :  { %v569_v57 = vsel %vm549_vm2, %v494_v44, %v568_v49 }
 0x14f   :  { %v383_v27 = vpop.permute.xlu1 %382  ;;  %v392_v30 = vpop.permute.xlu0 %391  ;;  %v570_v1 = vsel %vm551_vm3, %v498_v63, %v569_v57 }
 0x150   :  { %v502_v50 = vrot.slane %v383_v27, %v7199_v25  ;;  %v506_v27 = vrot.slane %v386_v21, %v7199_v25  ;;  %v438_v21 = vrot.slane %v7171_v40, %v7199_v25  ;;  %v514_v29 = vrot.slane %v392_v30, %v7199_v25 }
 0x151   :  { %v446_v40 = vrot.slane %v7180_v45, %v7199_v25  ;;  %v442_v30 = vrot.slane %v7167_v36, %v7199_v25 }
 0x152   :  { %v571_v18 = vsel %vm553_vm4, %v502_v50, %v570_v1 }
 0x153   :  { %v389_v37 = vpop.permute.xlu1 %388  ;;  %v7206_v39 = vpop.permute.xlu0 %397  ;;  %v572_v34 = vsel %vm555_vm5, %v506_v27, %v571_v18  ;;  %v1355_v27 = vrot.slane %v7295_v41, %v7058_v17 }
 0x154   :  { %v510_v20 = vrot.slane %v389_v37, %v7199_v25  ;;  %v548_v37 = vsel %vm547_vm1, %v426_v4, %v422_v2  ;;  %v1362_v2 = vrot.slane %v7295_v41, %v6989_v10 }
 0x155   :  { %v550_v60 = vsel %vm549_vm2, %v430_v13, %v548_v37 }
 0x156   :  { %v573_v35 = vsel %vm557_vm6, %v510_v20, %v572_v34  ;;  %v552_v46 = vsel %vm551_vm3, %v434_v42, %v550_v60  ;;  %v7318_v60 = vld [vmem:[%s10570_s8 + $0x38] sm:$0xff] }
 0x157   :  { %v7215_v51 = vpop.permute.xlu1 %394  ;;  %v7217_v52 = vpop.permute.xlu0 %403  ;;  %v574_v47 = vsel %vm559_vm7, %v514_v29, %v573_v35  ;;  %v554_v49 = vsel %vm553_vm4, %v438_v21, %v552_v46  ;;  %v1390_v35 = vrot.slane %v7295_v41, %v7046_v5  ;;  %v1404_v42 = vrot.slane %v7318_v60, %v6986_v9 }
 0x158   :  { %v593_v32 = vsel %vm586_vm8, %v574_v47, 0.0  ;;  %v556_v57 = vsel %vm555_vm5, %v442_v30, %v554_v49  ;;  %v518_v49 = vrot.slane %v7215_v51, %v7199_v25  ;;  %v1446_v51 = vrot.slane %v7318_v60, %v7046_v5 }
 0x159   :  { %v558_v50 = vsel %vm557_vm6, %v446_v40, %v556_v57  ;;  %v1432_v40 = vrot.slane %v7318_v60, %v7024_v38 }
 0x15a   :  { %v560_v36 = vsel %vm559_vm7, %v450_v59, %v558_v50 }
 0x15b   :  { %v7226_v6 = vpop.permute.xlu1 %400  ;;  %v7228_v11 = vpop.permute.xlu0 %409  ;;  %v587_v1 = vsel %vm586_vm8, %v560_v36, 0.0 }
 0x15c   :  { %v526_v30 = vrot.slane %v7226_v6, %v7199_v25  ;;  %v7353_v6 = vld [vmem:[%s10570_s8 + $0x40] sm:$0xff] }
 0x15f   :  { %v7243_v33 = vpop.permute.xlu1 %406  ;;  %v7245_v31 = vpop.permute.xlu0 %415 }
 0x163   :  { %v7258_v44 = vpop.permute.xlu1 %412  ;;  %591 = vadd.xlane.f32.xlu0 %v590_v43  ;;  %v7261_v48 = vpop.permute.xlu0 %956  ;;  %v1418_v43 = vrot.slane %v7318_v60, %v6989_v10 }
 0x167   :  { %v7270_v53 = vpop.permute.xlu1 %1014  ;;  %594 = vadd.xlane.f32.xlu0 %v593_v32  ;;  %v7272_v56 = vpop.permute.xlu0 %1028  ;;  %v522_v32 = vrot.slane %v7206_v39, %v7199_v25  ;;  %v530_v39 = vrot.slane %v7217_v52, %v7199_v25 }
 0x169   :  { %v575_v50 = vsel %vm547_vm1, %v522_v32, %v518_v49 }
 0x16a   :  { %v576_v36 = vsel %vm549_vm2, %v526_v30, %v575_v50 }
 0x16b   :  { %v7278_v63 = vpop.permute.xlu1 %1021  ;;  %v7280_v45 = vpop.permute.xlu0 %1042 }
 0x16f   :  { %v7284_v12 = vpop.permute.xlu0 %1056  ;;  %v7286_v4 = vpop.permute.xlu1 %1035 }
 0x170   :  { %588 = vadd.xlane.f32.xlu1 %v587_v1  ;;  %v534_v1 = vrot.slane %v7243_v33, %v7199_v25 }
 0x173   :  { %v7288_v18 = vpop.permute.xlu0 %1070  ;;  %v7290_v20 = vpop.permute.xlu1 %1049 }
 0x177   :  { %v7299_v13 = vpop.permute.xlu0 %1084  ;;  %v7301_v26 = vpop.permute.xlu1 %1063 }
 0x178   :  { %10693 = vst [vmem:[#allocation7_spill] sm:$0xff] %v7299_v13 }
 0x17b   :  { %v7309_v34 = vpop.permute.xlu0 %1098  ;;  %v7311_v37 = vpop.permute.xlu1 %1077 }
 0x17c   :  { %10694 = vst [vmem:[#allocation8_spill] sm:$0xff] %v7309_v34 }
 0x17d   :  { %1350 = vbcast.lane.b32.xlu0 %v1348_v55, 256  ;;  %v577_v55 = vsel %vm551_vm3, %v530_v39, %v576_v36 }
 0x17f   :  { %v7320_v21 = vpop.permute.xlu0 %1112  ;;  %v7322_v29 = vpop.permute.xlu1 %1091 }
 0x180   :  { %10695 = vst [vmem:[#allocation9_spill] sm:$0xff] %v7320_v21  ;;  %10696 = vst [vmem:[#allocation10_spill] sm:$0xff] %v7322_v29 }
 0x181   :  { %1357 = vbcast.lane.b32.xlu1 %v1355_v27, 256  ;;  %1364 = vbcast.lane.b32.xlu0 %v1362_v2, 256  ;;  %v1460_v27 = vrot.slane %v7353_v6, %v6986_v9  ;;  %v578_v2 = vsel %vm553_vm4, %v534_v1, %v577_v55 }
 0x183   :  { %v7328_v47 = vpop.permute.xlu0 %1126  ;;  %v7330_v46 = vpop.permute.xlu1 %1105 }
 0x184   :  { %10697 = vst [vmem:[#allocation11_spill] sm:$0xff] %v7328_v47  ;;  %10698 = vst [vmem:[#allocation12_spill] sm:$0xff] %v7330_v46 }
 0x185   :  { %1378 = vbcast.lane.b32.xlu0 %v1376_v0, 256  ;;  %v542_v0 = vrot.slane %v7258_v44, %v7199_v25 }
 0x187   :  { %v7340_v57 = vpop.permute.xlu0 %1140  ;;  %v7343_v59 = vpop.permute.xlu1 %1119 }
 0x188   :  { %10699 = vst [vmem:[#allocation13_spill] sm:$0xff] %v7340_v57  ;;  %10700 = vst [vmem:[#allocation14_spill] sm:$0xff] %v7343_v59 }
 0x189   :  { %1392 = vbcast.lane.b32.xlu0 %v1390_v35, 256  ;;  %v538_v35 = vrot.slane %v7228_v11, %v7199_v25  ;;  %v1488_v11 = vrot.slane %v7353_v6, %v7024_v38 }
 0x18b   :  { %v7363_v33 = vpop.permute.xlu0 %1154  ;;  %v579_v52 = vsel %vm555_vm5, %v538_v35, %v578_v2  ;;  %v1369_v35 = vrot.slane %v7295_v41, %v7011_v24 }
 0x18c   :  { %10701 = vst [vmem:[#allocation15_spill] sm:$0xff] %v7363_v33  ;;  %v580_v49 = vsel %vm557_vm6, %v542_v0, %v579_v52 }
 0x18d   :  { %1406 = vbcast.lane.b32.xlu0 %v1404_v42, 256  ;;  %v7367_v42 = vpop.permute.xlu1 %1133 }
 0x18e   :  { %10702 = vst [vmem:[#allocation16_spill] sm:$0xff] %v7367_v42 }
 0x18f   :  { %v7375_v30 = vpop.permute.xlu0 %1168 }
 0x190   :  { %10703 = vst [vmem:[#allocation17_spill] sm:$0xff] %v7375_v30 }
 0x191   :  { %1420 = vbcast.lane.b32.xlu0 %v1418_v43, 256  ;;  %v1474_v43 = vrot.slane %v7353_v6, %v6989_v10  ;;  %v7377_v44 = vpop.permute.xlu1 %1147 }
 0x192   :  { %10704 = vst [vmem:[#allocation18_spill] sm:$0xff] %v7377_v44 }
 0x193   :  { %v7390_v36 = vpop.permute.xlu0 %1182 }
 0x194   :  { %10705 = vst [vmem:[#allocation19_spill] sm:$0xff] %v7390_v36 }
 0x195   :  { %1434 = vbcast.lane.b32.xlu0 %v1432_v40, 256  ;;  %v546_v40 = vrot.slane %v7245_v31, %v7199_v25  ;;  %v7388_v31 = vld [vmem:[%s10570_s8 + $0x48] sm:$0xff]  ;;  %v7392_v1 = vpop.permute.xlu1 %1161 }
 0x196   :  { %10706 = vst [vmem:[#allocation20_spill] sm:$0xff] %v7392_v1  ;;  %v1516_v39 = vrot.slane %v7388_v31, %v6986_v9  ;;  %v1530_v2 = vrot.slane %v7388_v31, %v6989_v10  ;;  %v1544_v0 = vrot.slane %v7388_v31, %v7024_v38 }
 0x197   :  { %v581_v32 = vsel %vm559_vm7, %v546_v40, %v580_v49  ;;  %v7396_v55 = vpop.permute.xlu0 %1196  ;;  %v1558_v49 = vrot.slane %v7388_v31, %v7046_v5  ;;  %v1383_v40 = vrot.slane %v7295_v41, %v7037_v54 }
 0x198   :  { %v596_v50 = vsel %vm586_vm8, %v581_v32, 0.0  ;;  %10707 = vst [vmem:[#allocation21_spill] sm:$0xff] %v7396_v55  ;;  %v7417_v32 = vld [vmem:[%s10570_s8 + $0x50] sm:$0xff] }
 0x199   :  { %1448 = vbcast.lane.b32.xlu0 %v1446_v51, 256  ;;  %v1502_v51 = vrot.slane %v7353_v6, %v7046_v5 }
 0x19b   :  { %v7406_v52 = vpop.permute.xlu0 %1210 }
 0x19c   :  { %10709 = vst [vmem:[#allocation23_spill] sm:$0xff] %v7406_v52  ;;  %v1467_v52 = vrot.slane %v7353_v6, %v7058_v17 }
 0x19d   :  { %1462 = vbcast.lane.b32.xlu0 %v1460_v27, 256  ;;  %v7398_v27 = vpop.permute.xlu1 %1175 }
 0x19e   :  { %10708 = vst [vmem:[#allocation22_spill] sm:$0xff] %v7398_v27 }
 0x1a1   :  { %1476 = vbcast.lane.b32.xlu0 %v1474_v43, 256  ;;  %v7408_v43 = vpop.permute.xlu1 %1189 }
 0x1a2   :  { %10710 = vst [vmem:[#allocation24_spill] sm:$0xff] %v7408_v43 }
 0x1a5   :  { %597 = vadd.xlane.f32.xlu1 %v596_v50  ;;  %1490 = vbcast.lane.b32.xlu0 %v1488_v11, 256  ;;  %v7419_v11 = vpop.permute.xlu0 %1224  ;;  %v7421_v50 = vpop.permute.xlu1 %1203 }
 0x1a6   :  { %10711 = vst [vmem:[#allocation25_spill] sm:$0xff] %v7419_v11  ;;  %10712 = vst [vmem:[#allocation26_spill] sm:$0xff] %v7421_v50 }
 0x1a9   :  { %1504 = vbcast.lane.b32.xlu0 %v1502_v51, 256  ;;  %v1572_v51 = vrot.slane %v7417_v32, %v6986_v9  ;;  %v7433_v11 = vpop.permute.xlu1 %1217 }
 0x1aa   :  { %10714 = vst [vmem:[#allocation28_spill] sm:$0xff] %v7433_v11 }
 0x1ad   :  { %1518 = vbcast.lane.b32.xlu0 %v1516_v39, 256  ;;  %v1397_v39 = vrot.slane %v7295_v41, %v7053_v14  ;;  %v1425_v41 = vrot.slane %v7318_v60, %v7011_v24 }
 0x1b1   :  { %1532 = vbcast.lane.b32.xlu0 %v1530_v2, 256  ;;  %v1586_v2 = vrot.slane %v7417_v32, %v6989_v10 }
 0x1b5   :  { %1546 = vbcast.lane.b32.xlu0 %v1544_v0, 256  ;;  %v1411_v0 = vrot.slane %v7318_v60, %v7058_v17 }
 0x1b6   :  { %1371 = vbcast.lane.b32.xlu1 %v1369_v35, 256  ;;  %v7431_v35 = vpop.permute.xlu0 %1238 }
 0x1b7   :  { %10713 = vst [vmem:[#allocation27_spill] sm:$0xff] %v7431_v35  ;;  %v1439_v35 = vrot.slane %v7318_v60, %v7037_v54 }
 0x1b9   :  { %1560 = vbcast.lane.b32.xlu0 %v1558_v49, 256  ;;  %v1600_v49 = vrot.slane %v7417_v32, %v7024_v38 }
 0x1ba   :  { %1385 = vbcast.lane.b32.xlu1 %v1383_v40, 256  ;;  %v7439_v40 = vpop.permute.xlu0 %1252 }
 0x1bb   :  { %10715 = vst [vmem:[#allocation29_spill] sm:$0xff] %v7439_v40 }
 0x1bd   :  { %1574 = vbcast.lane.b32.xlu0 %v1572_v51, 256  ;;  %v7441_v51 = vpop.permute.xlu1 %1231 }
 0x1be   :  { %1399 = vbcast.lane.b32.xlu1 %v1397_v39, 256  ;;  %10716 = vst [vmem:[#allocation30_spill] sm:$0xff] %v7441_v51  ;;  %v1614_v39 = vrot.slane %v7417_v32, %v7046_v5  ;;  %v7456_v40 = vpop.permute.xlu0 %1266 }
 0x1bf   :  { %10717 = vst [vmem:[#allocation31_spill] sm:$0xff] %v7456_v40 }
 0x1c1   :  { %1588 = vbcast.lane.b32.xlu0 %v1586_v2, 256  ;;  %v7450_v2 = vld [vmem:[%s10570_s8 + $0x58] sm:$0xff]  ;;  %v7458_v51 = vpop.permute.xlu1 %1245 }
 0x1c2   :  { %1413 = vbcast.lane.b32.xlu1 %v1411_v0, 256  ;;  %v1628_v0 = vrot.slane %v7450_v2, %v6986_v9  ;;  %10718 = vst [vmem:[#allocation32_spill] sm:$0xff] %v7458_v51 }
 0x1c5   :  { %1602 = vbcast.lane.b32.xlu0 %v1600_v49, 256  ;;  %v1453_v49 = vrot.slane %v7318_v60, %v7053_v14  ;;  %v7466_v11 = vpop.permute.xlu1 %1259  ;;  %v1656_v60 = vrot.slane %v7450_v2, %v7024_v38 }
 0x1c6   :  { %1427 = vbcast.lane.b32.xlu1 %v1425_v41, 256  ;;  %v1642_v41 = vrot.slane %v7450_v2, %v6989_v10  ;;  %10720 = vst [vmem:[#allocation34_spill] sm:$0xff] %v7466_v11 }
 0x1c9   :  { %1616 = vbcast.lane.b32.xlu0 %v1614_v39, 256  ;;  %v7464_v39 = vpop.permute.xlu0 %1280  ;;  %v7483_v40 = vpop.permute.xlu1 %1273 }
 0x1ca   :  { %1441 = vbcast.lane.b32.xlu1 %v1439_v35, 256  ;;  %10719 = vst [vmem:[#allocation33_spill] sm:$0xff] %v7464_v39  ;;  %v1481_v35 = vrot.slane %v7353_v6, %v7011_v24  ;;  %v1495_v39 = vrot.slane %v7353_v6, %v7037_v54  ;;  %10722 = vst [vmem:[#allocation36_spill] sm:$0xff] %v7483_v40  ;;  %v1523_v40 = vrot.slane %v7388_v31, %v7058_v17 }
 0x1cd   :  { %1630 = vbcast.lane.b32.xlu0 %v1628_v0, 256  ;;  %v1670_v0 = vrot.slane %v7450_v2, %v7046_v5 }
 0x1ce   :  { %1455 = vbcast.lane.b32.xlu1 %v1453_v49, 256  ;;  %v7474_v49 = vpop.permute.xlu0 %1294 }
 0x1cf   :  { %10721 = vst [vmem:[#allocation35_spill] sm:$0xff] %v7474_v49  ;;  %v7491_v49 = vpop.permute.xlu1 %1287 }
 0x1d0   :  { %10724 = vst [vmem:[#allocation38_spill] sm:$0xff] %v7491_v49 }
 0x1d1   :  { %1644 = vbcast.lane.b32.xlu0 %v1642_v41, 256  ;;  %v7481_v41 = vld [vmem:[%s10570_s8 + $0x60] sm:$0xff] }
 0x1d2   :  { %1469 = vbcast.lane.b32.xlu1 %v1467_v52, 256  ;;  %v1684_v52 = vrot.slane %v7481_v41, %v6986_v9  ;;  %v1698_v11 = vrot.slane %v7481_v41, %v6989_v10 }
 0x1d5   :  { %1658 = vbcast.lane.b32.xlu0 %v1656_v60, 256  ;;  %v1509_v60 = vrot.slane %v7353_v6, %v7053_v14  ;;  %v1537_v6 = vrot.slane %v7388_v31, %v7011_v24 }
 0x1d6   :  { %1483 = vbcast.lane.b32.xlu1 %v1481_v35, 256  ;;  %v7489_v35 = vpop.permute.xlu0 %1308 }
 0x1d7   :  { %10723 = vst [vmem:[#allocation37_spill] sm:$0xff] %v7489_v35  ;;  %v7503_v35 = vpop.permute.xlu1 %1301 }
 0x1d8   :  { %10726 = vst [vmem:[#allocation40_spill] sm:$0xff] %v7503_v35 }
 0x1d9   :  { %1672 = vbcast.lane.b32.xlu0 %v1670_v0, 256  ;;  %v1712_v0 = vrot.slane %v7481_v41, %v7024_v38 }
 0x1da   :  { %1497 = vbcast.lane.b32.xlu1 %v1495_v39, 256  ;;  %v7499_v39 = vpop.permute.xlu0 %1322 }
 0x1db   :  { %10725 = vst [vmem:[#allocation39_spill] sm:$0xff] %v7499_v39 }
 0x1dd   :  { %1686 = vbcast.lane.b32.xlu0 %v1684_v52, 256  ;;  %v1726_v52 = vrot.slane %v7481_v41, %v7046_v5 }
 0x1de   :  { %1511 = vbcast.lane.b32.xlu1 %v1509_v60, 256  ;;  %v1551_v60 = vrot.slane %v7388_v31, %v7037_v54  ;;  %v7514_v39 = vpop.permute.xlu0 %1336 }
 0x1df   :  { %10727 = vst [vmem:[#allocation41_spill] sm:$0xff] %v7514_v39  ;;  %v1579_v39 = vrot.slane %v7417_v32, %v7058_v17 }
 0x1e1   :  { %1700 = vbcast.lane.b32.xlu0 %v1698_v11, 256  ;;  %v7512_v11 = vld [vmem:[%s10570_s8 + $0x68] sm:$0xff] }
 0x1e2   :  { %1525 = vbcast.lane.b32.xlu1 %v1523_v40, 256  ;;  %v7516_v40 = vpop.permute.xlu1 %1315  ;;  %v1754_v51 = vrot.slane %v7512_v11, %v6989_v10  ;;  %v1782_v36 = vrot.slane %v7512_v11, %v7046_v5 }
 0x1e3   :  { %10728 = vst [vmem:[#allocation42_spill] sm:$0xff] %v7516_v40 }
 0x1e5   :  { %1714 = vbcast.lane.b32.xlu0 %v1712_v0, 256  ;;  %v1740_v0 = vrot.slane %v7512_v11, %v6986_v9 }
 0x1e6   :  { %1539 = vbcast.lane.b32.xlu1 %v1537_v6, 256  ;;  %v1565_v6 = vrot.slane %v7388_v31, %v7053_v14 }
 0x1e9   :  { %1728 = vbcast.lane.b32.xlu0 %v1726_v52, 256  ;;  %v7529_v52 = vpop.permute.xlu1 %1329 }
 0x1ea   :  { %1553 = vbcast.lane.b32.xlu1 %v1551_v60, 256  ;;  %10729 = vst [vmem:[#allocation43_spill] sm:$0xff] %v7529_v52 }
 0x1ec   :  { %v592_v35 = vpop.xlane.xlu0 %591 }
 0x1ed   :  { %v7523_v49 = vadd.f32 %v7119_v61, %v592_v35  ;;  %1742 = vbcast.lane.b32.xlu0 %v1740_v0, 256  ;;  %v1768_v35 = vrot.slane %v7512_v11, %v7024_v38  ;;  %v1593_v0 = vrot.slane %v7417_v32, %v7011_v24  ;;  %v7541_v50 = vpop.permute.xlu1 %1343 }
 0x1ee   :  { %1567 = vbcast.lane.b32.xlu1 %v1565_v6, 256  ;;  %10731 = vst [vmem:[#allocation45_spill] sm:$0xff] %v7541_v50 }
 0x1ef   :  { %v7532_v40 = vmul.f32 0.70710677, %v7523_v49 }
 0x1f0   :  { %v595_v60 = vpop.xlane.xlu0 %594 }
 0x1f1   :  { %v627_v31 = vand.u32 2147483647, %v7532_v40  ;;  %1756 = vbcast.lane.b32.xlu0 %v1754_v51, 256  ;;  %v1607_v51 = vrot.slane %v7417_v32, %v7037_v54  ;;  %vm707_vm9 = vcmp.ge.f32.partialorder %v7532_v40, 0.0  ;;  %v1761_v40 = vrot.slane %v7512_v11, %v7011_v24 }
 0x1f2   :  { %1581 = vbcast.lane.b32.xlu1 %v1579_v39, 256  ;;  %v7550_v39 = vld [vmem:[%s10570_s8 + $0x70] sm:$0xff] }
 0x1f3   :  { %v631_v6 = vmul.f32 0.3275911, %v627_v31 }
 0x1f4   :  { %v7539_v55 = vpop.permute.xlu0 %1350 }
 0x1f5   :  { %10730 = vst [vmem:[#allocation44_spill] sm:$0xff] %v7539_v55  ;;  %v635_v52 = vadd.f32 1.0, %v631_v6  ;;  %1770 = vbcast.lane.b32.xlu0 %v1768_v35, 256  ;;  %v1796_v35 = vrot.slane %v7550_v39, %v6986_v9 }
 0x1f6   :  { %1595 = vbcast.lane.b32.xlu1 %v1593_v0, 256  ;;  %v1621_v0 = vrot.slane %v7417_v32, %v7053_v14 }
 0x1f7   :  { %6883 = vrcp.f32 %v635_v52  ;;  %v683_v52 = vsub.f32 0.0, %v627_v31 }
 0x1f8   :  { %v7552_v43 = vpop.permute.xlu0 %1364 }
 0x1f9   :  { %10732 = vst [vmem:[#allocation46_spill] sm:$0xff] %v7552_v43  ;;  %v589_v55 = vpop.xlane.xlu1 %588  ;;  %1784 = vbcast.lane.b32.xlu0 %v1782_v36, 256  ;;  %v1810_v36 = vrot.slane %v7550_v39, %v6989_v10 }
 0x1fa   :  { %v7557_v6 = vadd.f32 %v7115_v58, %v589_v55  ;;  %1609 = vbcast.lane.b32.xlu1 %v1607_v51, 256  ;;  %v1635_v55 = vrot.slane %v7450_v2, %v7058_v17  ;;  %v7574_v51 = vadd.f32 %v7115_v58, %v595_v60 }
 0x1fc   :  { %v7562_v50 = vmul.f32 0.70710677, %v7557_v6  ;;  %v7564_v30 = vpop.permute.xlu0 %1378  ;;  %v7584_v57 = vmul.f32 0.70710677, %v7574_v51 }
 0x1fd   :  { %10733 = vst [vmem:[#allocation47_spill] sm:$0xff] %v7564_v30  ;;  %1798 = vbcast.lane.b32.xlu0 %v1796_v35, 256  ;;  %v687_v30 = vmul.f32 %v683_v52, %v627_v31  ;;  %v1824_v35 = vrot.slane %v7550_v39, %v7024_v38  ;;  %v1838_v31 = vrot.slane %v7550_v39, %v7046_v5 }
 0x1fe   :  { %v7569_v43 = vand.u32 2147483647, %v7562_v50  ;;  %1623 = vbcast.lane.b32.xlu1 %v1621_v0, 256  ;;  %v1649_v0 = vrot.slane %v7450_v2, %v7011_v24  ;;  %v1663_v52 = vrot.slane %v7450_v2, %v7037_v54  ;;  %vm706_vm10 = vcmp.ge.f32.partialorder %v7562_v50, 0.0 }
 0x1ff   :  { %v692_v44 = vmul.f32 1.442695, %v687_v30  ;;  %v618_v50 = vmul.f32 0.5, %v7557_v6  ;;  %vm708_vm11 = vcmp.ge.f32.partialorder %v7584_v57, 0.0 }
 0x200   :  { %v630_v32 = vmul.f32 0.3275911, %v7569_v43  ;;  %v7577_v27 = vpop.permute.xlu0 %1392 }
 0x201   :  { %10734 = vst [vmem:[#allocation48_spill] sm:$0xff] %v7577_v27  ;;  %1812 = vbcast.lane.b32.xlu0 %v1810_v36, 256  ;;  %v7595_v36 = vld [vmem:[%s10570_s8 + $0x78] sm:$0xff] }
 0x202   :  { %v634_v33 = vadd.f32 1.0, %v630_v32  ;;  %1637 = vbcast.lane.b32.xlu1 %v1635_v55, 256  ;;  %v1852_v30 = vrot.slane %v7595_v36, %v6986_v9 }
 0x204   :  { %v6884_v1 = vpop.eup %6883  ;;  %v7586_v58 = vpop.permute.xlu0 %1406  ;;  %6885 = vrcp.f32 %v634_v33  ;;  %v7600_v33 = vand.u32 2147483647, %v7584_v57 }
 0x205   :  { %10735 = vst [vmem:[#allocation49_spill] sm:$0xff] %v7586_v58  ;;  %v647_v60 = vmul.f32 1.0614054, %v6884_v1  ;;  %1826 = vbcast.lane.b32.xlu0 %v1824_v35, 256  ;;  %6887 = vpow2.f32 %v692_v44  ;;  %v1677_v35 = vrot.slane %v7450_v2, %v7053_v14  ;;  %v1866_v44 = vrot.slane %v7595_v36, %v6989_v10 }
 0x206   :  { %1651 = vbcast.lane.b32.xlu1 %v1649_v0, 256  ;;  %v1880_v2 = vrot.slane %v7595_v36, %v7024_v38 }
 0x207   :  { %v651_v55 = vadd.f32 -1.4531521, %v647_v60  ;;  %v632_v60 = vmul.f32 0.3275911, %v7600_v33 }
 0x208   :  { %v7597_v32 = vpop.permute.xlu0 %1420 }
 0x209   :  { %10736 = vst [vmem:[#allocation50_spill] sm:$0xff] %v7597_v32  ;;  %v655_v58 = vmul.f32 %v6884_v1, %v651_v55  ;;  %1840 = vbcast.lane.b32.xlu0 %v1838_v31, 256  ;;  %v1691_v31 = vrot.slane %v7481_v41, %v7058_v17  ;;  %v636_v42 = vadd.f32 1.0, %v632_v60  ;;  %v1894_v60 = vrot.slane %v7595_v36, %v7046_v5 }
 0x20a   :  { %1665 = vbcast.lane.b32.xlu1 %v1663_v52, 256 }
 0x20b   :  { %v659_v0 = vadd.f32 1.4214138, %v655_v58  ;;  %6889 = vrcp.f32 %v636_v42  ;;  %v1733_v42 = vrot.slane %v7481_v41, %v7053_v14 }
 0x20c   :  { %v7606_v27 = vpop.permute.xlu0 %1434 }
 0x20d   :  { %10737 = vst [vmem:[#allocation51_spill] sm:$0xff] %v7606_v27  ;;  %v663_v47 = vmul.f32 %v6884_v1, %v659_v0  ;;  %1854 = vbcast.lane.b32.xlu0 %v1852_v30, 256  ;;  %v1705_v30 = vrot.slane %v7481_v41, %v7011_v24 }
 0x20e   :  { %1679 = vbcast.lane.b32.xlu1 %v1677_v35, 256 }
 0x20f   :  { %v667_v55 = vadd.f32 -0.28449672, %v663_v47 }
 0x210   :  { %v7613_v32 = vpop.permute.xlu0 %1448 }
 0x211   :  { %10738 = vst [vmem:[#allocation52_spill] sm:$0xff] %v7613_v32  ;;  %v671_v52 = vmul.f32 %v6884_v1, %v667_v55  ;;  %1868 = vbcast.lane.b32.xlu0 %v1866_v44, 256  ;;  %v7617_v58 = vpop.eup %6885  ;;  %v1719_v55 = vrot.slane %v7481_v41, %v7037_v54 }
 0x212   :  { %1693 = vbcast.lane.b32.xlu1 %v1691_v31, 256  ;;  %v646_v47 = vmul.f32 1.0614054, %v7617_v58  ;;  %v6888_v44 = vpop.eup %6887 }
 0x213   :  { %v675_v0 = vadd.f32 0.2548296, %v671_v52 }
 0x214   :  { %v7621_v35 = vpop.permute.xlu0 %1462  ;;  %v650_v52 = vadd.f32 -1.4531521, %v646_v47  ;;  %v1747_v47 = vrot.slane %v7512_v11, %v7058_v17 }
 0x215   :  { %10739 = vst [vmem:[#allocation53_spill] sm:$0xff] %v7621_v35  ;;  %v679_v27 = vmul.f32 %v6884_v1, %v675_v0  ;;  %1882 = vbcast.lane.b32.xlu0 %v1880_v2, 256  ;;  %v619_v35 = vmul.f32 0.5, %v7523_v49 }
 0x216   :  { %1707 = vbcast.lane.b32.xlu1 %v1705_v30, 256  ;;  %v654_v30 = vmul.f32 %v7617_v58, %v650_v52 }
 0x217   :  { %v699_v31 = vmul.f32 %v6888_v44, %v679_v27 }
 0x218   :  { %v7628_v32 = vpop.permute.xlu0 %1476  ;;  %v658_v41 = vadd.f32 1.4214138, %v654_v30 }
 0x219   :  { %10740 = vst [vmem:[#allocation54_spill] sm:$0xff] %v7628_v32  ;;  %v703_v21 = vsub.f32 1.0, %v699_v31  ;;  %1896 = vbcast.lane.b32.xlu0 %v1894_v60, 256  ;;  %v682_v60 = vsub.f32 0.0, %v7569_v43  ;;  %v7642_v31 = vpop.eup %6889 }
 0x21a   :  { %1721 = vbcast.lane.b32.xlu1 %v1719_v55, 256 }
 0x21b   :  { %v711_v1 = vsub.f32 0.0, %v703_v21  ;;  %v686_v49 = vmul.f32 %v682_v60, %v7569_v43  ;;  %v7657_v43 = vpop.permute.xlu1 %1357 }
 0x21c   :  { %v7633_v2 = vpop.permute.xlu0 %1490  ;;  %10745 = vst [vmem:[#allocation59_spill] sm:$0xff] %v7657_v43 }
 0x21d   :  { %10741 = vst [vmem:[#allocation55_spill] sm:$0xff] %v7633_v2  ;;  %v715_v0 = vsel %vm707_vm9, %v703_v21, %v711_v1  ;;  %v690_v30 = vmul.f32 1.442695, %v686_v49  ;;  %vm6728_vm9 = vcmask 786112  }
 0x21e   :  { %v719_v27 = vadd.f32 1.0, %v715_v0  ;;  %1735 = vbcast.lane.b32.xlu1 %v1733_v42, 256  ;;  %v648_v42 = vmul.f32 1.0614054, %v7642_v31  ;;  %v1775_v0 = vrot.slane %v7512_v11, %v7037_v54 }
 0x21f   :  { %6891 = vpow2.f32 %v690_v30 }
 0x220   :  { %v723_v44 = vmul.f32 %v719_v27, %v619_v35  ;;  %v7640_v55 = vpop.permute.xlu0 %1504  ;;  %v662_v35 = vmul.f32 %v7617_v58, %v658_v41  ;;  %v1789_v41 = vrot.slane %v7512_v11, %v7053_v14 }
 0x221   :  { %10742 = vst [vmem:[#allocation56_spill] sm:$0xff] %v7640_v55 }
 0x222   :  { %1749 = vbcast.lane.b32.xlu1 %v1747_v47, 256  ;;  %v781_v21 = vmul.f32 %v7121_v62, %v723_v44  ;;  %v783_v1 = vmul.f32 %v7129_v8, %v723_v44  ;;  %v652_v47 = vadd.f32 -1.4531521, %v648_v42  ;;  %v666_v55 = vadd.f32 -0.28449672, %v662_v35 }
 0x223   :  { %v785_v60 = vmul.f32 %v7138_v16, %v723_v44  ;;  %v787_v42 = vmul.f32 %v7146_v23, %v723_v44  ;;  %v1803_v35 = vrot.slane %v7550_v39, %v7058_v17  ;;  %v1817_v44 = vrot.slane %v7550_v39, %v7011_v24 }
 0x224   :  { %816 = vperm.xlu0 %6881, %v781_v21   ;;  %v7648_v52 = vpop.permute.xlu0 %1518  ;;  %v670_v49 = vmul.f32 %v7617_v58, %v666_v55 }
 0x225   :  { %10743 = vst [vmem:[#allocation57_spill] sm:$0xff] %v7648_v52 }
 0x226   :  { %1763 = vbcast.lane.b32.xlu1 %v1761_v40, 256  ;;  %v656_v40 = vmul.f32 %v7642_v31, %v652_v47 }
 0x228   :  { %822 = vperm.xlu0 %6881, %v783_v1   ;;  %v7655_v27 = vpop.permute.xlu0 %1532  ;;  %v660_v30 = vadd.f32 1.4214138, %v656_v40 }
 0x229   :  { %10744 = vst [vmem:[#allocation58_spill] sm:$0xff] %v7655_v27 }
 0x22a   :  { %1777 = vbcast.lane.b32.xlu1 %v1775_v0, 256  ;;  %v684_v0 = vsub.f32 0.0, %v7600_v33 }
 0x22c   :  { %828 = vperm.xlu0 %6881, %v785_v60   ;;  %v7662_v21 = vpop.permute.xlu0 %1546  ;;  %v674_v60 = vadd.f32 0.2548296, %v670_v49  ;;  %v1831_v49 = vrot.slane %v7550_v39, %v7037_v54  ;;  %v6892_v2 = vpop.eup %6891 }
 0x22d   :  { %10746 = vst [vmem:[#allocation60_spill] sm:$0xff] %v7662_v21 }
 0x22e   :  { %1791 = vbcast.lane.b32.xlu1 %v1789_v41, 256  ;;  %v598_v1 = vpop.xlane.xlu1 %597  ;;  %v688_v41 = vmul.f32 %v684_v0, %v7600_v33 }
 0x22f   :  { %v7671_v27 = vadd.f32 %v7119_v61, %v598_v1  ;;  %v664_v61 = vmul.f32 %v7642_v31, %v660_v30  ;;  %v678_v1 = vmul.f32 %v7617_v58, %v674_v60  ;;  %v1845_v58 = vrot.slane %v7550_v39, %v7053_v14 }
 0x230   :  { %834 = vperm.xlu0 %6881, %v787_v42   ;;  %v7673_v11 = vpop.permute.xlu0 %1560  ;;  %v1873_v39 = vrot.slane %v7595_v36, %v7011_v24 }
 0x231   :  { %10747 = vst [vmem:[#allocation61_spill] sm:$0xff] %v7673_v11  ;;  %v7676_v47 = vmul.f32 0.70710677, %v7671_v27  ;;  %v694_v11 = vmul.f32 1.442695, %v688_v41  ;;  %v698_v33 = vmul.f32 %v6892_v2, %v678_v1  ;;  %v1859_v41 = vrot.slane %v7595_v36, %v7058_v17 }
 0x232   :  { %1805 = vbcast.lane.b32.xlu1 %v1803_v35, 256  ;;  %v7678_v55 = vpop.permute.xlu1 %1371  ;;  %v668_v32 = vadd.f32 -0.28449672, %v664_v61 }
 0x233   :  { %10748 = vst [vmem:[#allocation62_spill] sm:$0xff] %v7678_v55  ;;  %v629_v21 = vand.u32 2147483647, %v7676_v47  ;;  %vm709_vm12 = vcmp.ge.f32.partialorder %v7676_v47, 0.0 }
 0x234   :  { %v7690_v35 = vpop.permute.xlu0 %1574  ;;  %v672_v60 = vmul.f32 %v7642_v31, %v668_v32 }
 0x235   :  { %v633_v42 = vmul.f32 0.3275911, %v629_v21  ;;  %10750 = vst [vmem:[#allocation64_spill] sm:$0xff] %v7690_v35  ;;  %v685_v2 = vsub.f32 0.0, %v629_v21 }
 0x236   :  { %1819 = vbcast.lane.b32.xlu1 %v1817_v44, 256  ;;  %v7686_v40 = vpop.permute.xlu1 %1385  ;;  %v702_v44 = vsub.f32 1.0, %v698_v33 }
 0x237   :  { %10749 = vst [vmem:[#allocation63_spill] sm:$0xff] %v7686_v40  ;;  %v637_v52 = vadd.f32 1.0, %v633_v42  ;;  %v689_v42 = vmul.f32 %v685_v2, %v629_v21 }
 0x238   :  { %v7696_v30 = vpop.permute.xlu0 %1588  ;;  %v710_v61 = vsub.f32 0.0, %v702_v44 }
 0x239   :  { %6893 = vrcp.f32 %v637_v52  ;;  %10752 = vst [vmem:[#allocation66_spill] sm:$0xff] %v7696_v30  ;;  %v676_v52 = vadd.f32 0.2548296, %v672_v60  ;;  %v1887_v60 = vrot.slane %v7595_v36, %v7037_v54  ;;  %v696_v30 = vmul.f32 1.442695, %v689_v42 }
 0x23a   :  { %1833 = vbcast.lane.b32.xlu1 %v1831_v49, 256  ;;  %v7692_v0 = vpop.permute.xlu1 %1399  ;;  %6895 = vpow2.f32 %v694_v11  ;;  %v714_v49 = vsel %vm706_vm10, %v702_v44, %v710_v61  ;;  %v1901_v44 = vrot.slane %v7595_v36, %v7053_v14  ;;  %vm6735_vm10 = vcmask 851712  }
 0x23b   :  { %10751 = vst [vmem:[#allocation65_spill] sm:$0xff] %v7692_v0  ;;  %v680_v32 = vmul.f32 %v7642_v31, %v676_v52  ;;  %6897 = vpow2.f32 %v696_v30 }
 0x23c   :  { %v7707_v11 = vpop.permute.xlu0 %1602 }
 0x23d   :  { %10755 = vst [vmem:[#allocation69_spill] sm:$0xff] %v7707_v11 }
 0x23e   :  { %1847 = vbcast.lane.b32.xlu1 %v1845_v58, 256  ;;  %v7699_v35 = vpop.permute.xlu1 %1413 }
 0x23f   :  { %10753 = vst [vmem:[#allocation67_spill] sm:$0xff] %v7699_v35  ;;  %v718_v35 = vadd.f32 1.0, %v714_v49 }
 0x240   :  { %v7715_v0 = vpop.permute.xlu0 %1616 }
 0x241   :  { %10757 = vst [vmem:[#allocation71_spill] sm:$0xff] %v7715_v0  ;;  %v722_v52 = vmul.f32 %v718_v35, %v618_v50 }
 0x242   :  { %1861 = vbcast.lane.b32.xlu1 %v1859_v41, 256  ;;  %v7703_v1 = vpop.permute.xlu1 %1427 }
 0x243   :  { %10754 = vst [vmem:[#allocation68_spill] sm:$0xff] %v7703_v1  ;;  %v782_v35 = vmul.f32 %v7136_v15, %v722_v52 }
 0x244   :  { %v7724_v49 = vpop.permute.xlu0 %1630 }
 0x245   :  { %10758 = vst [vmem:[#allocation72_spill] sm:$0xff] %v7724_v49 }
 0x246   :  { %v6894_v33 = vpop.eup %6893  ;;  %1875 = vbcast.lane.b32.xlu1 %v1873_v39, 256  ;;  %v7711_v58 = vpop.permute.xlu1 %1441 }
 0x247   :  { %10756 = vst [vmem:[#allocation70_spill] sm:$0xff] %v7711_v58  ;;  %v649_v41 = vmul.f32 1.0614054, %v6894_v33  ;;  %v6896_v1 = vpop.eup %6895 }
 0x248   :  { %v700_v11 = vmul.f32 %v6896_v1, %v680_v32  ;;  %v780_v32 = vmul.f32 %v7127_v7, %v722_v52  ;;  %v7730_v36 = vpop.permute.xlu0 %1644 }
 0x249   :  { %v653_v21 = vadd.f32 -1.4531521, %v649_v41  ;;  %10759 = vst [vmem:[#allocation73_spill] sm:$0xff] %v7730_v36 }
 0x24a   :  { %1889 = vbcast.lane.b32.xlu1 %v1887_v60, 256  ;;  %v7718_v31 = vpop.permute.xlu1 %1455  ;;  %v704_v61 = vsub.f32 1.0, %v700_v11 }
 0x24b   :  { %v657_v2 = vmul.f32 %v6894_v33, %v653_v21 }
 0x24c   :  { %v712_v6 = vsub.f32 0.0, %v704_v61 }
 0x24d   :  { %v661_v39 = vadd.f32 1.4214138, %v657_v2 }
 0x24e   :  { %1903 = vbcast.lane.b32.xlu1 %v1901_v44, 256  ;;  %v7722_v42 = vpop.permute.xlu1 %1469  ;;  %v716_v30 = vsel %vm708_vm11, %v704_v61, %v712_v6  ;;  %v6898_v44 = vpop.eup %6897  ;;  %vm6742_vm11 = vcmask 917312  }
 0x24f   :  { %v665_v1 = vmul.f32 %v6894_v33, %v661_v39  ;;  %v720_v2 = vadd.f32 1.0, %v716_v30  ;;  %v784_v39 = vmul.f32 %v7144_v22, %v722_v52 }
 0x251   :  { %v669_v60 = vadd.f32 -0.28449672, %v665_v1 }
 0x252   :  { %813 = vperm.xlu1 %6882, %v780_v32   ;;  %v7727_v41 = vpop.permute.xlu1 %1483  ;;  %v620_v32 = vmul.f32 0.5, %v7574_v51 }
 0x253   :  { %v673_v0 = vmul.f32 %v6894_v33, %v669_v60  ;;  %v7737_v60 = vpop.permute.xlu0 %1658 }
 0x254   :  { %v724_v49 = vmul.f32 %v720_v2, %v620_v32 }
 0x255   :  { %v677_v11 = vadd.f32 0.2548296, %v673_v0  ;;  %v786_v0 = vmul.f32 %v7153_v28, %v722_v52 }
 0x256   :  { %819 = vperm.xlu1 %6882, %v782_v35   ;;  %v7733_v21 = vpop.permute.xlu1 %1497  ;;  %v621_v35 = vmul.f32 0.5, %v7671_v27  ;;  %v790_v2 = vmul.f32 %v7136_v15, %v724_v49  ;;  %v794_v32 = vmul.f32 %v7153_v28, %v724_v49 }
 0x257   :  { %v681_v50 = vmul.f32 %v6894_v33, %v677_v11  ;;  %v7746_v51 = vpop.permute.xlu0 %1672  ;;  %v788_v11 = vmul.f32 %v7127_v7, %v724_v49 }
 0x259   :  { %v701_v1 = vmul.f32 %v6898_v44, %v681_v50 }
 0x25a   :  { %825 = vperm.xlu1 %6882, %v784_v39   ;;  %v7739_v57 = vpop.permute.xlu1 %1511 }
 0x25b   :  { %v705_v36 = vsub.f32 1.0, %v701_v1  ;;  %v7753_v47 = vpop.permute.xlu0 %1686 }
 0x25c   :  { %10760 = vst [vmem:[#allocation74_spill] sm:$0xff] %v7753_v47 }
 0x25d   :  { %v713_v61 = vsub.f32 0.0, %v705_v36 }
 0x25e   :  { %831 = vperm.xlu1 %6882, %v786_v0   ;;  %v7743_v33 = vpop.permute.xlu1 %1525 }
 0x25f   :  { %v717_v6 = vsel %vm709_vm12, %v705_v36, %v713_v61  ;;  %v792_v36 = vmul.f32 %v7144_v22, %v724_v49  ;;  %v7764_v7 = vpop.permute.xlu0 %1700  ;;  %vm6749_vm12 = vcmask 982912  }
 0x260   :  { %v721_v30 = vadd.f32 1.0, %v717_v6  ;;  %10761 = vst [vmem:[#allocation75_spill] sm:$0xff] %v7764_v7 }
 0x262   :  { %v725_v50 = vmul.f32 %v721_v30, %v621_v35  ;;  %v7749_v44 = vpop.permute.xlu1 %1539  ;;  %837 = vperm.xlu1 %6882, %v788_v11  }
 0x263   :  { %v7772_v61 = vpop.permute.xlu0 %1714 }
 0x264   :  { %v789_v52 = vmul.f32 %v7121_v62, %v725_v50  ;;  %v791_v27 = vmul.f32 %v7129_v8, %v725_v50  ;;  %v989_v62 = vld [vmem:[%s10570_s8 + $0x80] sm:$0xff]  ;;  %v793_v15 = vmul.f32 %v7138_v16, %v725_v50  ;;  %v795_v22 = vmul.f32 %v7146_v23, %v725_v50  ;;  %10762 = vst [vmem:[#allocation76_spill] sm:$0xff] %v7772_v61 }
 0x265   :  { %v1915_v8 = vrot.slane %v989_v62, %v7058_v17  ;;  %v1929_v35 = vrot.slane %v989_v62, %v7011_v24  ;;  %v1908_v16 = vrot.slane %v989_v62, %v6986_v9  ;;  %v1943_v28 = vrot.slane %v989_v62, %v7037_v54 }
 0x266   :  { %v7755_v39 = vpop.permute.xlu1 %1553  ;;  %840 = vperm.xlu0 %6881, %v789_v52   ;;  %843 = vperm.xlu1 %6882, %v790_v2   ;;  %v1922_v49 = vrot.slane %v989_v62, %v6989_v10  ;;  %v1957_v50 = vrot.slane %v989_v62, %v7053_v14  ;;  %v1936_v52 = vrot.slane %v989_v62, %v7024_v38  ;;  %v990_v2 = vld [vmem:[%s10570_s8 + $0x88] sm:$0xff] }
 0x267   :  { %v7782_v11 = vpop.permute.xlu0 %1728 }
 0x268   :  { %10763 = vst [vmem:[#allocation77_spill] sm:$0xff] %v7782_v11 }
 0x26a   :  { %v7759_v1 = vpop.permute.xlu1 %1567  ;;  %846 = vperm.xlu0 %6881, %v791_v27   ;;  %849 = vperm.xlu1 %6882, %v792_v36  }
 0x26b   :  { %v7791_v27 = vpop.permute.xlu0 %1742 }
 0x26c   :  { %10764 = vst [vmem:[#allocation78_spill] sm:$0xff] %v7791_v27 }
 0x26e   :  { %v7768_v0 = vpop.permute.xlu1 %1581  ;;  %852 = vperm.xlu0 %6881, %v793_v15   ;;  %855 = vperm.xlu1 %6882, %v794_v32   ;;  %v1971_v15 = vrot.slane %v990_v2, %v7058_v17  ;;  %v1950_v32 = vrot.slane %v989_v62, %v7046_v5 }
 0x272   :  { %v7774_v6 = vpop.permute.xlu1 %1595  ;;  %858 = vperm.xlu0 %6881, %v795_v22   ;;  %1917 = vbcast.lane.b32.xlu1 %v1915_v8, 256  ;;  %v1985_v22 = vrot.slane %v990_v2, %v7011_v24  ;;  %v2013_v24 = vrot.slane %v990_v2, %v7053_v14 }
 0x276   :  { %v7778_v30 = vpop.permute.xlu1 %1609  ;;  %1931 = vbcast.lane.b32.xlu1 %v1929_v35, 256  ;;  %1910 = vbcast.lane.b32.xlu0 %v1908_v16, 256  ;;  %v1964_v35 = vrot.slane %v990_v2, %v6986_v9  ;;  %v7801_v16 = vpop.permute.xlu0 %1756 }
 0x277   :  { %10765 = vst [vmem:[#allocation79_spill] sm:$0xff] %v7801_v16 }
 0x27a   :  { %v7784_v23 = vpop.permute.xlu1 %1623  ;;  %1945 = vbcast.lane.b32.xlu1 %v1943_v28, 256  ;;  %1924 = vbcast.lane.b32.xlu0 %v1922_v49, 256  ;;  %v1999_v49 = vrot.slane %v990_v2, %v7037_v54 }
 0x27e   :  { %v7793_v36 = vpop.permute.xlu1 %1637  ;;  %1959 = vbcast.lane.b32.xlu1 %v1957_v50, 256  ;;  %1938 = vbcast.lane.b32.xlu0 %v1936_v52, 256  ;;  %v1978_v50 = vrot.slane %v990_v2, %v6989_v10  ;;  %v7807_v52 = vpop.permute.xlu0 %1770 }
 0x27f   :  { %10766 = vst [vmem:[#allocation80_spill] sm:$0xff] %v7807_v52 }
 0x282   :  { %v7797_v8 = vpop.permute.xlu1 %1651  ;;  %1973 = vbcast.lane.b32.xlu1 %v1971_v15, 256  ;;  %1952 = vbcast.lane.b32.xlu0 %v1950_v32, 256  ;;  %v1992_v15 = vrot.slane %v990_v2, %v7024_v38  ;;  %v7816_v54 = vpop.permute.xlu0 %1784 }
 0x283   :  { %10767 = vst [vmem:[#allocation81_spill] sm:$0xff] %v7816_v54 }
 0x286   :  { %v7803_v28 = vpop.permute.xlu1 %1665  ;;  %1987 = vbcast.lane.b32.xlu1 %v1985_v22, 256  ;;  %1966 = vbcast.lane.b32.xlu0 %v1964_v35, 256  ;;  %v2006_v22 = vrot.slane %v990_v2, %v7046_v5  ;;  %v7820_v10 = vpop.permute.xlu0 %1798 }
 0x287   :  { %10769 = vst [vmem:[#allocation83_spill] sm:$0xff] %v7820_v10 }
 0x28a   :  { %v7809_v62 = vpop.permute.xlu1 %1679  ;;  %2001 = vbcast.lane.b32.xlu1 %v1999_v49, 256  ;;  %1980 = vbcast.lane.b32.xlu0 %v1978_v50, 256  ;;  %v7826_v14 = vpop.permute.xlu0 %1812 }
 0x28b   :  { %10772 = vst [vmem:[#allocation86_spill] sm:$0xff] %v7826_v14 }
 0x28e   :  { %v7813_v32 = vpop.permute.xlu1 %1693  ;;  %2015 = vbcast.lane.b32.xlu1 %v2013_v24, 256  ;;  %1994 = vbcast.lane.b32.xlu0 %v1992_v15, 256  ;;  %v7830_v50 = vpop.permute.xlu0 %1826 }
 0x28f   :  { %10774 = vst [vmem:[#allocation88_spill] sm:$0xff] %v7830_v50 }
 0x292   :  { %v7818_v35 = vpop.permute.xlu1 %1707  ;;  %2008 = vbcast.lane.b32.xlu0 %v2006_v22, 256  ;;  %v7836_v2 = vpop.permute.xlu0 %1840 }
 0x293   :  { %10768 = vst [vmem:[#allocation82_spill] sm:$0xff] %v7818_v35  ;;  %10777 = vst [vmem:[#allocation91_spill] sm:$0xff] %v7836_v2 }
 0x296   :  { %v7822_v17 = vpop.permute.xlu1 %1721  ;;  %v7840_v22 = vpop.permute.xlu0 %1854 }
 0x297   :  { %10770 = vst [vmem:[#allocation84_spill] sm:$0xff] %v7822_v17  ;;  %10779 = vst [vmem:[#allocation93_spill] sm:$0xff] %v7840_v22 }
 0x29a   :  { %v7824_v49 = vpop.permute.xlu1 %1735  ;;  %v7846_v54 = vpop.permute.xlu0 %1868 }
 0x29b   :  { %10771 = vst [vmem:[#allocation85_spill] sm:$0xff] %v7824_v49  ;;  %10782 = vst [vmem:[#allocation96_spill] sm:$0xff] %v7846_v54  ;;  %v864_v54 = vadd.s32 4294967288, %v7195_v19 }
 0x29e   :  { %v7828_v38 = vpop.permute.xlu1 %1749  ;;  %v7850_v52 = vpop.permute.xlu0 %1882 }
 0x29f   :  { %10773 = vst [vmem:[#allocation87_spill] sm:$0xff] %v7828_v38  ;;  %10784 = vst [vmem:[#allocation98_spill] sm:$0xff] %v7850_v52  ;;  %v7866_v52 = vsub.s32 %v864_v54, %v6968_v3 }
 0x2a1   :  { %10791 = vst [vmem:[#allocation105_spill] sm:$0xff] %v7866_v52 }
 0x2a2   :  { %v7832_v24 = vpop.permute.xlu1 %1763 }
 0x2a3   :  { %10775 = vst [vmem:[#allocation89_spill] sm:$0xff] %v7832_v24 }
 0x2a6   :  { %v7834_v5 = vpop.permute.xlu1 %1777 }
 0x2a7   :  { %10776 = vst [vmem:[#allocation90_spill] sm:$0xff] %v7834_v5  ;;  %v7856_v5 = vpop.permute.xlu0 %1896 }
 0x2a8   :  { %10787 = vst [vmem:[#allocation101_spill] sm:$0xff] %v7856_v5 }
 0x2aa   :  { %v7838_v15 = vpop.permute.xlu1 %1791 }
 0x2ab   :  { %10778 = vst [vmem:[#allocation92_spill] sm:$0xff] %v7838_v15  ;;  %v817_v15 = vpop.permute.xlu0 %816 }
 0x2ac   :  { %v868_v19 = vrot.slane %v817_v15, %v7866_v52 }
 0x2ae   :  { %v7842_v9 = vpop.permute.xlu1 %1805 }
 0x2af   :  { %10780 = vst [vmem:[#allocation94_spill] sm:$0xff] %v7842_v9 }
 0x2b2   :  { %v7844_v10 = vpop.permute.xlu1 %1819 }
 0x2b3   :  { %10781 = vst [vmem:[#allocation95_spill] sm:$0xff] %v7844_v10  ;;  %v823_v10 = vpop.permute.xlu0 %822 }
 0x2b4   :  { %v878_v5 = vrot.slane %v823_v10, %v7866_v52 }
 0x2b6   :  { %v7848_v14 = vpop.permute.xlu1 %1833 }
 0x2b7   :  { %10783 = vst [vmem:[#allocation97_spill] sm:$0xff] %v7848_v14  ;;  %v829_v14 = vpop.permute.xlu0 %828 }
 0x2ba   :  { %v7852_v50 = vpop.permute.xlu1 %1847 }
 0x2bb   :  { %10785 = vst [vmem:[#allocation99_spill] sm:$0xff] %v7852_v50  ;;  %v835_v38 = vpop.permute.xlu0 %834 }
 0x2be   :  { %v7854_v16 = vpop.permute.xlu1 %1861 }
 0x2bf   :  { %10786 = vst [vmem:[#allocation100_spill] sm:$0xff] %v7854_v16 }
 0x2c2   :  { %v7858_v2 = vpop.permute.xlu1 %1875 }
 0x2c3   :  { %10788 = vst [vmem:[#allocation102_spill] sm:$0xff] %v7858_v2 }
 0x2c6   :  { %v7860_v22 = vpop.permute.xlu1 %1889 }
 0x2c7   :  { %10789 = vst [vmem:[#allocation103_spill] sm:$0xff] %v7860_v22 }
 0x2ca   :  { %v7862_v9 = vpop.permute.xlu1 %1903 }
 0x2cb   :  { %10790 = vst [vmem:[#allocation104_spill] sm:$0xff] %v7862_v9  ;;  %v887_v9 = vrot.slane %v829_v14, %v7866_v52 }
 0x2ce   :  { %v814_v24 = vpop.permute.xlu1 %813 }
 0x2cf   :  { %v863_v2 = vrot.slane %v814_v24, %v7199_v25 }
 0x2d1   :  { %v870_v49 = vsel %vm869_vm13, %v868_v19, %v863_v2 }
 0x2d2   :  { %v820_v27 = vpop.permute.xlu1 %819 }
 0x2d3   :  { %v874_v16 = vrot.slane %v820_v27, %v7199_v25  ;;  %v896_v27 = vrot.slane %v835_v38, %v7866_v52 }
 0x2d5   :  { %v879_v11 = vsel %vm869_vm13, %v878_v5, %v874_v16 }
 0x2d6   :  { %v826_v50 = vpop.permute.xlu1 %825  ;;  %v934_v24 = vsel %vm547_vm1, %v879_v11, %v870_v49 }
 0x2d7   :  { %v883_v22 = vrot.slane %v826_v50, %v7199_v25 }
 0x2d9   :  { %v888_v54 = vsel %vm869_vm13, %v887_v9, %v883_v22 }
 0x2da   :  { %v832_v3 = vpop.permute.xlu1 %831  ;;  %v935_v50 = vsel %vm549_vm2, %v888_v54, %v934_v24 }
 0x2db   :  { %v892_v10 = vrot.slane %v832_v3, %v7199_v25 }
 0x2dd   :  { %v897_v14 = vsel %vm869_vm13, %v896_v27, %v892_v10 }
 0x2de   :  { %v838_v61 = vpop.permute.xlu1 %837  ;;  %v936_v15 = vsel %vm551_vm3, %v897_v14, %v935_v50 }
 0x2df   :  { %v943_v16 = vsel %vm942_vm14, %v936_v15, 0.0  ;;  %v901_v10 = vrot.slane %v838_v61, %v7199_v25 }
 0x2e0   :  { %944 = vadd.xlane.f32.xlu1 %v943_v16 }
 0x2e1   :  { %v841_v9 = vpop.permute.xlu0 %840 }
 0x2e2   :  { %v844_v5 = vpop.permute.xlu1 %843  ;;  %v905_v11 = vrot.slane %v841_v9, %v7866_v52 }
 0x2e3   :  { %v910_v49 = vrot.slane %v844_v5, %v7199_v25 }
 0x2e4   :  { %v906_v15 = vsel %vm869_vm13, %v905_v11, %v901_v10 }
 0x2e5   :  { %v847_v38 = vpop.permute.xlu0 %846 }
 0x2e6   :  { %v850_v22 = vpop.permute.xlu1 %849  ;;  %v914_v19 = vrot.slane %v847_v38, %v7866_v52 }
 0x2e7   :  { %v919_v54 = vrot.slane %v850_v22, %v7199_v25 }
 0x2e8   :  { %v915_v24 = vsel %vm869_vm13, %v914_v19, %v910_v49 }
 0x2e9   :  { %v853_v3 = vpop.permute.xlu0 %852  ;;  %v937_v5 = vsel %vm547_vm1, %v915_v24, %v906_v15 }
 0x2ea   :  { %v923_v2 = vrot.slane %v853_v3, %v7866_v52  ;;  %v856_v27 = vpop.permute.xlu1 %855 }
 0x2eb   :  { %v928_v16 = vrot.slane %v856_v27, %v7199_v25 }
 0x2ec   :  { %v924_v14 = vsel %vm869_vm13, %v923_v2, %v919_v54 }
 0x2ed   :  { %v859_v50 = vpop.permute.xlu0 %858  ;;  %v938_v22 = vsel %vm549_vm2, %v924_v14, %v937_v5 }
 0x2ee   :  { %v932_v9 = vrot.slane %v859_v50, %v7866_v52  ;;  %v7900_v19 = vpop.permute.xlu1 %1917  ;;  %v10795_v52 = vld [vmem:[#allocation18_spill] sm:$0xff] }
 0x2f0   :  { %v933_v38 = vsel %vm869_vm13, %v932_v9, %v928_v16 }
 0x2f1   :  { %v939_v3 = vsel %vm551_vm3, %v933_v38, %v938_v22 }
 0x2f2   :  { %v946_v61 = vsel %vm942_vm14, %v939_v3, 0.0  ;;  %v7902_v49 = vpop.permute.xlu1 %1931  ;;  %vm6756_vm14 = vcmask 1048512  }
 0x2f3   :  { %947 = vadd.xlane.f32.xlu0 %v946_v61 }
 0x2f6   :  { %v7904_v11 = vpop.permute.xlu1 %1945 }
 0x2fa   :  { %v7906_v2 = vpop.permute.xlu1 %1959 }
 0x2fe   :  { %v7908_v54 = vpop.permute.xlu1 %1973 }
 0x302   :  { %v7910_v27 = vpop.permute.xlu1 %1987 }
 0x306   :  { %v7912_v10 = vpop.permute.xlu1 %2001 }
 0x30a   :  { %v7914_v24 = vpop.permute.xlu1 %2015 }
 0x369   :  { %v945_v14 = vpop.xlane.xlu1 %944 }
 0x36a   :  { %v959_v50 = vadd.f32 %v7261_v48, %v945_v14 }
 0x36c   :  { %v6877_v15 = vmul.f32 -1.442695, %v959_v50 }
 0x36e   :  { %6899 = vpow2.f32 %v6877_v15 }
 0x37b   :  { %v6900_v16 = vpop.eup %6899 }
 0x37c   :  { %v967_v9 = vadd.f32 1.0, %v6900_v16 }
 0x37e   :  { %6901 = vrcp.f32 %v967_v9 }
 0x38b   :  { %v7917_v5 = vpop.eup %6901 }
 0x38c   :  { %v2161_v38 = vmul.f32 %v7917_v5, %v7270_v53  ;;  %v2162_v22 = vmul.f32 %v7917_v5, %v7278_v63  ;;  %v2164_v3 = vmul.f32 %v7917_v5, %v7286_v4  ;;  %v2163_v61 = vmul.f32 %v7917_v5, %v7272_v56 }
 0x38d   :  { %v2166_v14 = vmul.f32 %v7917_v5, %v7290_v20  ;;  %v2165_v50 = vmul.f32 %v7917_v5, %v7280_v45  ;;  %v2168_v15 = vmul.f32 %v7917_v5, %v7301_v26  ;;  %v2167_v16 = vmul.f32 %v7917_v5, %v7284_v12 }
 0x38e   :  { %2741 = vperm.xlu1 %6882, %v2162_v22   ;;  %2738 = vperm.xlu0 %6881, %v2161_v38   ;;  %v2170_v9 = vmul.f32 %v7917_v5, %v7311_v37  ;;  %v2169_v38 = vmul.f32 %v7917_v5, %v7288_v18  ;;  %v2172_v22 = vmul.f32 %v7917_v5, %v7322_v29 }
 0x392   :  { %2747 = vperm.xlu1 %6882, %v2164_v3   ;;  %2744 = vperm.xlu0 %6881, %v2163_v61   ;;  %v2171_v3 = vmul.f32 %v7917_v5, %v7299_v13  ;;  %v2174_v61 = vmul.f32 %v7917_v5, %v7330_v46 }
 0x396   :  { %2753 = vperm.xlu1 %6882, %v2166_v14   ;;  %2750 = vperm.xlu0 %6881, %v2165_v50   ;;  %v2173_v14 = vmul.f32 %v7917_v5, %v7309_v34  ;;  %v2176_v50 = vmul.f32 %v7917_v5, %v7343_v59  ;;  %v10797_v59 = vld [vmem:[#allocation20_spill] sm:$0xff]  ;;  %v10820_v34 = vld [vmem:[#allocation37_spill] sm:$0xff] }
 0x39a   :  { %2759 = vperm.xlu1 %6882, %v2168_v15   ;;  %2756 = vperm.xlu0 %6881, %v2167_v16   ;;  %v10792_v15 = vld [vmem:[#allocation9_spill] sm:$0xff] }
 0x39b   :  { %v2175_v16 = vmul.f32 %v7917_v5, %v10792_v15 }
 0x39e   :  { %2765 = vperm.xlu1 %6882, %v2170_v9   ;;  %2762 = vperm.xlu0 %6881, %v2169_v38   ;;  %v10793_v9 = vld [vmem:[#allocation16_spill] sm:$0xff] }
 0x39f   :  { %v2178_v38 = vmul.f32 %v7917_v5, %v10793_v9  ;;  %v10799_v9 = vld [vmem:[#allocation22_spill] sm:$0xff] }
 0x3a2   :  { %2771 = vperm.xlu1 %6882, %v2172_v22   ;;  %2768 = vperm.xlu0 %6881, %v2171_v3   ;;  %v10794_v22 = vld [vmem:[#allocation11_spill] sm:$0xff] }
 0x3a3   :  { %v2177_v3 = vmul.f32 %v7917_v5, %v10794_v22 }
 0x3a6   :  { %2777 = vperm.xlu1 %6882, %v2174_v61   ;;  %2774 = vperm.xlu0 %6881, %v2173_v14   ;;  %v2180_v61 = vmul.f32 %v7917_v5, %v10795_v52  ;;  %v10796_v14 = vld [vmem:[#allocation13_spill] sm:$0xff]  ;;  %v10801_v52 = vld [vmem:[#allocation24_spill] sm:$0xff] }
 0x3a7   :  { %v2179_v25 = vmul.f32 %v7917_v5, %v10796_v14 }
 0x3aa   :  { %2783 = vperm.xlu1 %6882, %v2176_v50   ;;  %2780 = vperm.xlu0 %6881, %v2175_v16   ;;  %v2182_v50 = vmul.f32 %v7917_v5, %v10797_v59  ;;  %v10798_v16 = vld [vmem:[#allocation15_spill] sm:$0xff]  ;;  %v10803_v59 = vld [vmem:[#allocation26_spill] sm:$0xff] }
 0x3ab   :  { %v2181_v15 = vmul.f32 %v7917_v5, %v10798_v16 }
 0x3ae   :  { %2789 = vperm.xlu1 %6882, %v2178_v38   ;;  %2786 = vperm.xlu0 %6881, %v2177_v3   ;;  %v2184_v38 = vmul.f32 %v7917_v5, %v10799_v9  ;;  %v10800_v3 = vld [vmem:[#allocation17_spill] sm:$0xff]  ;;  %v10805_v9 = vld [vmem:[#allocation28_spill] sm:$0xff] }
 0x3af   :  { %v2183_v22 = vmul.f32 %v7917_v5, %v10800_v3 }
 0x3b2   :  { %2795 = vperm.xlu1 %6882, %v2180_v61   ;;  %2792 = vperm.xlu0 %6881, %v2179_v25   ;;  %v2186_v61 = vmul.f32 %v7917_v5, %v10801_v52  ;;  %v10802_v25 = vld [vmem:[#allocation19_spill] sm:$0xff]  ;;  %v10807_v52 = vld [vmem:[#allocation30_spill] sm:$0xff] }
 0x3b3   :  { %v2185_v14 = vmul.f32 %v7917_v5, %v10802_v25 }
 0x3b6   :  { %2801 = vperm.xlu1 %6882, %v2182_v50   ;;  %2798 = vperm.xlu0 %6881, %v2181_v15   ;;  %v2188_v50 = vmul.f32 %v7917_v5, %v10803_v59  ;;  %v10804_v15 = vld [vmem:[#allocation21_spill] sm:$0xff]  ;;  %v10809_v59 = vld [vmem:[#allocation32_spill] sm:$0xff] }
 0x3b7   :  { %v2187_v16 = vmul.f32 %v7917_v5, %v10804_v15 }
 0x3ba   :  { %2807 = vperm.xlu1 %6882, %v2184_v38   ;;  %2804 = vperm.xlu0 %6881, %v2183_v22   ;;  %v2190_v38 = vmul.f32 %v7917_v5, %v10805_v9  ;;  %v10806_v22 = vld [vmem:[#allocation23_spill] sm:$0xff]  ;;  %v10811_v9 = vld [vmem:[#allocation34_spill] sm:$0xff] }
 0x3bb   :  { %v2189_v3 = vmul.f32 %v7917_v5, %v10806_v22 }
 0x3be   :  { %2813 = vperm.xlu1 %6882, %v2186_v61   ;;  %2810 = vperm.xlu0 %6881, %v2185_v14   ;;  %v2192_v61 = vmul.f32 %v7917_v5, %v10807_v52  ;;  %v10808_v14 = vld [vmem:[#allocation25_spill] sm:$0xff]  ;;  %v10813_v52 = vld [vmem:[#allocation36_spill] sm:$0xff] }
 0x3bf   :  { %v2191_v25 = vmul.f32 %v7917_v5, %v10808_v14 }
 0x3c2   :  { %2819 = vperm.xlu1 %6882, %v2188_v50   ;;  %2816 = vperm.xlu0 %6881, %v2187_v16   ;;  %v2194_v50 = vmul.f32 %v7917_v5, %v10809_v59  ;;  %v10810_v16 = vld [vmem:[#allocation27_spill] sm:$0xff]  ;;  %v7995_v59 = vpop.permute.xlu0 %1910 }
 0x3c3   :  { %v2193_v15 = vmul.f32 %v7917_v5, %v10810_v16  ;;  %v10816_v16 = vld [vmem:[#allocation33_spill] sm:$0xff] }
 0x3c6   :  { %2825 = vperm.xlu1 %6882, %v2190_v38   ;;  %2822 = vperm.xlu0 %6881, %v2189_v3   ;;  %v2196_v38 = vmul.f32 %v7917_v5, %v10811_v9  ;;  %v10812_v3 = vld [vmem:[#allocation29_spill] sm:$0xff]  ;;  %v2199_v9 = vmul.f32 %v7917_v5, %v10816_v16  ;;  %v10822_v16 = vld [vmem:[#allocation39_spill] sm:$0xff] }
 0x3c7   :  { %v2195_v22 = vmul.f32 %v7917_v5, %v10812_v3  ;;  %v10818_v3 = vld [vmem:[#allocation35_spill] sm:$0xff] }
 0x3ca   :  { %2831 = vperm.xlu1 %6882, %v2192_v61   ;;  %2828 = vperm.xlu0 %6881, %v2191_v25   ;;  %v2198_v61 = vmul.f32 %v7917_v5, %v10813_v52  ;;  %v10814_v25 = vld [vmem:[#allocation31_spill] sm:$0xff] }
 0x3cb   :  { %v2197_v14 = vmul.f32 %v7917_v5, %v10814_v25  ;;  %v2201_v25 = vmul.f32 %v7917_v5, %v10818_v3  ;;  %v10824_v3 = vld [vmem:[#allocation41_spill] sm:$0xff] }
 0x3ce   :  { %2837 = vperm.xlu1 %6882, %v2194_v50   ;;  %2834 = vperm.xlu0 %6881, %v2193_v15   ;;  %v10815_v50 = vld [vmem:[#allocation38_spill] sm:$0xff] }
 0x3cf   :  { %v2200_v15 = vmul.f32 %v7917_v5, %v10815_v50  ;;  %v2203_v50 = vmul.f32 %v7917_v5, %v10820_v34  ;;  %v2207_v34 = vmul.f32 %v7917_v5, %v10824_v3  ;;  %v10829_v3 = vld [vmem:[#allocation48_spill] sm:$0xff] }
 0x3d2   :  { %2843 = vperm.xlu1 %6882, %v2196_v38   ;;  %2840 = vperm.xlu0 %6881, %v2195_v22   ;;  %v8001_v38 = vpop.permute.xlu0 %1924  ;;  %v10817_v22 = vld [vmem:[#allocation40_spill] sm:$0xff] }
 0x3d3   :  { %v2202_v52 = vmul.f32 %v7917_v5, %v10817_v22  ;;  %v2205_v22 = vmul.f32 %v7917_v5, %v10822_v16 }
 0x3d6   :  { %2849 = vperm.xlu1 %6882, %v2198_v61   ;;  %2846 = vperm.xlu0 %6881, %v2197_v14   ;;  %v10819_v61 = vld [vmem:[#allocation42_spill] sm:$0xff]  ;;  %v8011_v46 = vpop.permute.xlu0 %1938 }
 0x3d7   :  { %v2204_v14 = vmul.f32 %v7917_v5, %v10819_v61 }
 0x3da   :  { %2855 = vperm.xlu1 %6882, %v2200_v15   ;;  %2852 = vperm.xlu0 %6881, %v2199_v9   ;;  %v10821_v9 = vld [vmem:[#allocation43_spill] sm:$0xff] }
 0x3db   :  { %v2206_v15 = vmul.f32 %v7917_v5, %v10821_v9 }
 0x3de   :  { %2861 = vperm.xlu1 %6882, %v2202_v52   ;;  %2858 = vperm.xlu0 %6881, %v2201_v25   ;;  %v8017_v52 = vpop.permute.xlu0 %1952  ;;  %v10823_v25 = vld [vmem:[#allocation45_spill] sm:$0xff] }
 0x3df   :  { %v2208_v61 = vmul.f32 %v7917_v5, %v10823_v25 }
 0x3e2   :  { %2867 = vperm.xlu1 %6882, %v2204_v14   ;;  %2864 = vperm.xlu0 %6881, %v2203_v50   ;;  %v2210_v50 = vmul.f32 %v7917_v5, %v7657_v43  ;;  %v10825_v14 = vld [vmem:[#allocation44_spill] sm:$0xff]  ;;  %v8027_v13 = vpop.permute.xlu0 %1966  ;;  %v10827_v43 = vld [vmem:[#allocation47_spill] sm:$0xff] }
 0x3e3   :  { %v2209_v9 = vmul.f32 %v7917_v5, %v10825_v14  ;;  %v2213_v14 = vmul.f32 %v7917_v5, %v10827_v43 }
 0x3e6   :  { %2873 = vperm.xlu1 %6882, %v2206_v15   ;;  %2870 = vperm.xlu0 %6881, %v2205_v22   ;;  %v2212_v22 = vmul.f32 %v7917_v5, %v7678_v55  ;;  %v10826_v15 = vld [vmem:[#allocation46_spill] sm:$0xff]  ;;  %v2215_v55 = vmul.f32 %v7917_v5, %v10829_v3 }
 0x3e7   :  { %v2211_v25 = vmul.f32 %v7917_v5, %v10826_v15 }
 0x3ea   :  { %2879 = vperm.xlu1 %6882, %v2208_v61   ;;  %2876 = vperm.xlu0 %6881, %v2207_v34   ;;  %v2214_v34 = vmul.f32 %v7917_v5, %v7686_v40  ;;  %v8035_v61 = vpop.permute.xlu0 %1980  ;;  %v10831_v40 = vld [vmem:[#allocation49_spill] sm:$0xff] }
 0x3eb   :  { %v2217_v15 = vmul.f32 %v7917_v5, %v10831_v40 }
 0x3ee   :  { %2885 = vperm.xlu1 %6882, %v2210_v50   ;;  %2882 = vperm.xlu0 %6881, %v2209_v9   ;;  %v10828_v50 = vld [vmem:[#allocation65_spill] sm:$0xff]  ;;  %v8043_v16 = vpop.permute.xlu0 %1994 }
 0x3ef   :  { %v2216_v9 = vmul.f32 %v7917_v5, %v10828_v50  ;;  %v10833_v50 = vld [vmem:[#allocation50_spill] sm:$0xff] }
 0x3f0   :  { %v2219_v3 = vmul.f32 %v7917_v5, %v10833_v50 }
 0x3f2   :  { %2891 = vperm.xlu1 %6882, %v2212_v22   ;;  %2888 = vperm.xlu0 %6881, %v2211_v25   ;;  %v10830_v25 = vld [vmem:[#allocation67_spill] sm:$0xff]  ;;  %v8051_v43 = vpop.permute.xlu0 %2008 }
 0x3f3   :  { %v2218_v22 = vmul.f32 %v7917_v5, %v10830_v25 }
 0x3f6   :  { %2897 = vperm.xlu1 %6882, %v2214_v34   ;;  %2894 = vperm.xlu0 %6881, %v2213_v14   ;;  %v10832_v34 = vld [vmem:[#allocation68_spill] sm:$0xff]  ;;  %v8059_v29 = vpop.xlane.xlu0 %947 }
 0x3f7   :  { %v2220_v14 = vmul.f32 %v7917_v5, %v10832_v34 }
 0x3fa   :  { %2903 = vperm.xlu1 %6882, %v2216_v9   ;;  %2900 = vperm.xlu0 %6881, %v2215_v55   ;;  %v2222_v55 = vmul.f32 %v7917_v5, %v7711_v58  ;;  %v10834_v9 = vld [vmem:[#allocation51_spill] sm:$0xff] }
 0x3fb   :  { %v2221_v25 = vmul.f32 %v7917_v5, %v10834_v9  ;;  %v10838_v9 = vld [vmem:[#allocation53_spill] sm:$0xff] }
 0x3fc   :  { %v2225_v58 = vmul.f32 %v7917_v5, %v10838_v9  ;;  %v2230_v9 = vmul.f32 %v7917_v5, %v7733_v21 }
 0x3fe   :  { %2909 = vperm.xlu1 %6882, %v2218_v22   ;;  %2906 = vperm.xlu0 %6881, %v2217_v15   ;;  %v2224_v15 = vmul.f32 %v7917_v5, %v7718_v31  ;;  %v10835_v22 = vld [vmem:[#allocation52_spill] sm:$0xff] }
 0x3ff   :  { %v2223_v34 = vmul.f32 %v7917_v5, %v10835_v22  ;;  %v2228_v22 = vmul.f32 %v7917_v5, %v7727_v41 }
 0x402   :  { %2915 = vperm.xlu1 %6882, %v2220_v14   ;;  %2912 = vperm.xlu0 %6881, %v2219_v3   ;;  %v2226_v3 = vmul.f32 %v7917_v5, %v7722_v42 }
 0x406   :  { %2921 = vperm.xlu1 %6882, %v2222_v55   ;;  %2918 = vperm.xlu0 %6881, %v2221_v25  }
 0x409   :  { %v8065_v40 = vpop.permute.xlu1 %2741  ;;  %v8067_v14 = vpop.permute.xlu0 %2738 }
 0x40a   :  { %10836 = vst [vmem:[#allocation50_spill] sm:$0xff] %v8065_v40  ;;  %10837 = vst [vmem:[#allocation106_spill] sm:$0xff] %v8067_v14  ;;  %2927 = vperm.xlu1 %6882, %v2224_v15   ;;  %2924 = vperm.xlu0 %6881, %v2223_v34   ;;  %v10841_v40 = vld [vmem:[#allocation54_spill] sm:$0xff] }
 0x40b   :  { %v2227_v14 = vmul.f32 %v7917_v5, %v10841_v40  ;;  %v2232_v40 = vmul.f32 %v7917_v5, %v7739_v57 }
 0x40d   :  { %v8073_v55 = vpop.permute.xlu1 %2747  ;;  %v8075_v25 = vpop.permute.xlu0 %2744 }
 0x40e   :  { %10839 = vst [vmem:[#allocation107_spill] sm:$0xff] %v8073_v55  ;;  %10840 = vst [vmem:[#allocation108_spill] sm:$0xff] %v8075_v25  ;;  %2933 = vperm.xlu1 %6882, %v2226_v3   ;;  %2930 = vperm.xlu0 %6881, %v2225_v58   ;;  %v10844_v55 = vld [vmem:[#allocation55_spill] sm:$0xff] }
 0x40f   :  { %v2229_v25 = vmul.f32 %v7917_v5, %v10844_v55  ;;  %v2234_v55 = vmul.f32 %v7917_v5, %v7743_v33 }
 0x411   :  { %v8081_v15 = vpop.permute.xlu1 %2753  ;;  %v8083_v34 = vpop.permute.xlu0 %2750 }
 0x412   :  { %10842 = vst [vmem:[#allocation109_spill] sm:$0xff] %v8081_v15  ;;  %10843 = vst [vmem:[#allocation110_spill] sm:$0xff] %v8083_v34  ;;  %2939 = vperm.xlu1 %6882, %v2228_v22   ;;  %2936 = vperm.xlu0 %6881, %v2227_v14   ;;  %v10847_v15 = vld [vmem:[#allocation56_spill] sm:$0xff] }
 0x413   :  { %v2231_v34 = vmul.f32 %v7917_v5, %v10847_v15  ;;  %v2236_v15 = vmul.f32 %v7917_v5, %v7749_v44 }
 0x415   :  { %v8089_v3 = vpop.permute.xlu1 %2759  ;;  %v8091_v58 = vpop.permute.xlu0 %2756 }
 0x416   :  { %10845 = vst [vmem:[#allocation111_spill] sm:$0xff] %v8089_v3  ;;  %10846 = vst [vmem:[#allocation112_spill] sm:$0xff] %v8091_v58  ;;  %2945 = vperm.xlu1 %6882, %v2230_v9   ;;  %2942 = vperm.xlu0 %6881, %v2229_v25   ;;  %v10850_v3 = vld [vmem:[#allocation57_spill] sm:$0xff] }
 0x417   :  { %v2233_v58 = vmul.f32 %v7917_v5, %v10850_v3  ;;  %v2238_v3 = vmul.f32 %v7917_v5, %v7755_v39 }
 0x419   :  { %v8097_v22 = vpop.permute.xlu1 %2765  ;;  %v8099_v14 = vpop.permute.xlu0 %2762 }
 0x41a   :  { %10848 = vst [vmem:[#allocation113_spill] sm:$0xff] %v8097_v22  ;;  %10849 = vst [vmem:[#allocation114_spill] sm:$0xff] %v8099_v14  ;;  %2951 = vperm.xlu1 %6882, %v2232_v40   ;;  %2948 = vperm.xlu0 %6881, %v2231_v34   ;;  %v10853_v22 = vld [vmem:[#allocation58_spill] sm:$0xff] }
 0x41b   :  { %v2235_v14 = vmul.f32 %v7917_v5, %v10853_v22  ;;  %v2240_v22 = vmul.f32 %v7917_v5, %v7759_v1 }
 0x41d   :  { %v8105_v9 = vpop.permute.xlu1 %2771  ;;  %v8107_v25 = vpop.permute.xlu0 %2768 }
 0x41e   :  { %10851 = vst [vmem:[#allocation115_spill] sm:$0xff] %v8105_v9  ;;  %10852 = vst [vmem:[#allocation116_spill] sm:$0xff] %v8107_v25  ;;  %2957 = vperm.xlu1 %6882, %v2234_v55   ;;  %2954 = vperm.xlu0 %6881, %v2233_v58   ;;  %v10856_v9 = vld [vmem:[#allocation60_spill] sm:$0xff] }
 0x41f   :  { %v2237_v25 = vmul.f32 %v7917_v5, %v10856_v9  ;;  %v2242_v9 = vmul.f32 %v7917_v5, %v7768_v0 }
 0x421   :  { %v8113_v40 = vpop.permute.xlu1 %2777  ;;  %v8115_v34 = vpop.permute.xlu0 %2774 }
 0x422   :  { %10854 = vst [vmem:[#allocation117_spill] sm:$0xff] %v8113_v40  ;;  %10855 = vst [vmem:[#allocation118_spill] sm:$0xff] %v8115_v34  ;;  %2963 = vperm.xlu1 %6882, %v2236_v15   ;;  %2960 = vperm.xlu0 %6881, %v2235_v14   ;;  %v10859_v40 = vld [vmem:[#allocation61_spill] sm:$0xff] }
 0x423   :  { %v2239_v34 = vmul.f32 %v7917_v5, %v10859_v40  ;;  %v2244_v40 = vmul.f32 %v7917_v5, %v7774_v6 }
 0x425   :  { %v8121_v55 = vpop.permute.xlu1 %2783  ;;  %v8123_v58 = vpop.permute.xlu0 %2780 }
 0x426   :  { %10857 = vst [vmem:[#allocation119_spill] sm:$0xff] %v8121_v55  ;;  %10858 = vst [vmem:[#allocation120_spill] sm:$0xff] %v8123_v58  ;;  %2969 = vperm.xlu1 %6882, %v2238_v3   ;;  %2966 = vperm.xlu0 %6881, %v2237_v25   ;;  %v10862_v55 = vld [vmem:[#allocation64_spill] sm:$0xff] }
 0x427   :  { %v2241_v58 = vmul.f32 %v7917_v5, %v10862_v55  ;;  %v2246_v55 = vmul.f32 %v7917_v5, %v7778_v30 }
 0x429   :  { %v8129_v15 = vpop.permute.xlu1 %2789  ;;  %v8131_v14 = vpop.permute.xlu0 %2786 }
 0x42a   :  { %10860 = vst [vmem:[#allocation121_spill] sm:$0xff] %v8129_v15  ;;  %10861 = vst [vmem:[#allocation122_spill] sm:$0xff] %v8131_v14  ;;  %2975 = vperm.xlu1 %6882, %v2240_v22   ;;  %2972 = vperm.xlu0 %6881, %v2239_v34   ;;  %v10865_v15 = vld [vmem:[#allocation66_spill] sm:$0xff] }
 0x42b   :  { %v2243_v14 = vmul.f32 %v7917_v5, %v10865_v15  ;;  %v2248_v15 = vmul.f32 %v7917_v5, %v7784_v23 }
 0x42d   :  { %v8137_v3 = vpop.permute.xlu1 %2795  ;;  %v8139_v25 = vpop.permute.xlu0 %2792 }
 0x42e   :  { %10863 = vst [vmem:[#allocation123_spill] sm:$0xff] %v8137_v3  ;;  %10864 = vst [vmem:[#allocation124_spill] sm:$0xff] %v8139_v25  ;;  %2981 = vperm.xlu1 %6882, %v2242_v9   ;;  %2978 = vperm.xlu0 %6881, %v2241_v58   ;;  %v10868_v3 = vld [vmem:[#allocation69_spill] sm:$0xff] }
 0x42f   :  { %v2245_v25 = vmul.f32 %v7917_v5, %v10868_v3  ;;  %v2250_v3 = vmul.f32 %v7917_v5, %v7793_v36 }
 0x431   :  { %v8145_v22 = vpop.permute.xlu1 %2801  ;;  %v8147_v34 = vpop.permute.xlu0 %2798 }
 0x432   :  { %10866 = vst [vmem:[#allocation125_spill] sm:$0xff] %v8145_v22  ;;  %10867 = vst [vmem:[#allocation126_spill] sm:$0xff] %v8147_v34  ;;  %2987 = vperm.xlu1 %6882, %v2244_v40   ;;  %2984 = vperm.xlu0 %6881, %v2243_v14   ;;  %v10871_v22 = vld [vmem:[#allocation71_spill] sm:$0xff] }
 0x433   :  { %v2247_v34 = vmul.f32 %v7917_v5, %v10871_v22  ;;  %v2252_v22 = vmul.f32 %v7917_v5, %v7797_v8 }
 0x435   :  { %v8153_v9 = vpop.permute.xlu1 %2807  ;;  %v8155_v58 = vpop.permute.xlu0 %2804 }
 0x436   :  { %10869 = vst [vmem:[#allocation127_spill] sm:$0xff] %v8153_v9  ;;  %10870 = vst [vmem:[#allocation128_spill] sm:$0xff] %v8155_v58  ;;  %2993 = vperm.xlu1 %6882, %v2246_v55   ;;  %2990 = vperm.xlu0 %6881, %v2245_v25   ;;  %v10874_v9 = vld [vmem:[#allocation72_spill] sm:$0xff] }
 0x437   :  { %v2249_v58 = vmul.f32 %v7917_v5, %v10874_v9  ;;  %v2254_v9 = vmul.f32 %v7917_v5, %v7803_v28 }
 0x439   :  { %v8161_v40 = vpop.permute.xlu1 %2813  ;;  %v8163_v14 = vpop.permute.xlu0 %2810 }
 0x43a   :  { %10872 = vst [vmem:[#allocation129_spill] sm:$0xff] %v8161_v40  ;;  %10873 = vst [vmem:[#allocation130_spill] sm:$0xff] %v8163_v14  ;;  %2999 = vperm.xlu1 %6882, %v2248_v15   ;;  %2996 = vperm.xlu0 %6881, %v2247_v34   ;;  %v10877_v40 = vld [vmem:[#allocation73_spill] sm:$0xff] }
 0x43b   :  { %v2251_v14 = vmul.f32 %v7917_v5, %v10877_v40 }
 0x43d   :  { %v8169_v55 = vpop.permute.xlu1 %2819  ;;  %v8171_v25 = vpop.permute.xlu0 %2816 }
 0x43e   :  { %10875 = vst [vmem:[#allocation131_spill] sm:$0xff] %v8169_v55  ;;  %10876 = vst [vmem:[#allocation132_spill] sm:$0xff] %v8171_v25  ;;  %3005 = vperm.xlu1 %6882, %v2250_v3   ;;  %3002 = vperm.xlu0 %6881, %v2249_v58   ;;  %v2253_v55 = vmul.f32 %v7917_v5, %v7737_v60  ;;  %v2256_v25 = vmul.f32 %v7917_v5, %v7809_v62 }
 0x441   :  { %v8177_v15 = vpop.permute.xlu1 %2825  ;;  %v8179_v34 = vpop.permute.xlu0 %2822 }
 0x442   :  { %10878 = vst [vmem:[#allocation73_spill] sm:$0xff] %v8177_v15  ;;  %10879 = vst [vmem:[#allocation133_spill] sm:$0xff] %v8179_v34  ;;  %3011 = vperm.xlu1 %6882, %v2252_v22   ;;  %3008 = vperm.xlu0 %6881, %v2251_v14   ;;  %v2255_v15 = vmul.f32 %v7917_v5, %v7746_v51  ;;  %v2258_v34 = vmul.f32 %v7917_v5, %v7813_v32 }
 0x445   :  { %v8185_v3 = vpop.permute.xlu1 %2831  ;;  %v8187_v58 = vpop.permute.xlu0 %2828 }
 0x446   :  { %10880 = vst [vmem:[#allocation134_spill] sm:$0xff] %v8185_v3  ;;  %10881 = vst [vmem:[#allocation135_spill] sm:$0xff] %v8187_v58  ;;  %3017 = vperm.xlu1 %6882, %v2254_v9   ;;  %3014 = vperm.xlu0 %6881, %v2253_v55   ;;  %v2257_v58 = vmul.f32 %v7917_v5, %v7753_v47  ;;  %v2260_v3 = vmul.f32 %v7917_v5, %v7818_v35  ;;  %v10891_v35 = vld [vmem:[#allocation85_spill] sm:$0xff] }
 0x449   :  { %v8193_v22 = vpop.permute.xlu1 %2837  ;;  %v8195_v14 = vpop.permute.xlu0 %2834 }
 0x44a   :  { %10882 = vst [vmem:[#allocation136_spill] sm:$0xff] %v8193_v22  ;;  %10883 = vst [vmem:[#allocation137_spill] sm:$0xff] %v8195_v14  ;;  %3023 = vperm.xlu1 %6882, %v2256_v25   ;;  %3020 = vperm.xlu0 %6881, %v2255_v15   ;;  %v2259_v14 = vmul.f32 %v7917_v5, %v7764_v7  ;;  %v2262_v22 = vmul.f32 %v7917_v5, %v7822_v17  ;;  %v10895_v17 = vld [vmem:[#allocation87_spill] sm:$0xff] }
 0x44b   :  { %v2264_v7 = vmul.f32 %v7917_v5, %v10891_v35  ;;  %v10899_v35 = vld [vmem:[#allocation89_spill] sm:$0xff] }
 0x44d   :  { %v8201_v9 = vpop.permute.xlu1 %2843  ;;  %v8203_v55 = vpop.permute.xlu0 %2840 }
 0x44e   :  { %10884 = vst [vmem:[#allocation138_spill] sm:$0xff] %v8201_v9  ;;  %10885 = vst [vmem:[#allocation139_spill] sm:$0xff] %v8203_v55  ;;  %3029 = vperm.xlu1 %6882, %v2258_v34   ;;  %3026 = vperm.xlu0 %6881, %v2257_v58   ;;  %v10888_v9 = vld [vmem:[#allocation76_spill] sm:$0xff] }
 0x44f   :  { %v2261_v55 = vmul.f32 %v7917_v5, %v10888_v9  ;;  %v2266_v9 = vmul.f32 %v7917_v5, %v10895_v17  ;;  %v10903_v17 = vld [vmem:[#allocation90_spill] sm:$0xff] }
 0x451   :  { %v8209_v25 = vpop.permute.xlu1 %2849  ;;  %v8211_v15 = vpop.permute.xlu0 %2846 }
 0x452   :  { %10886 = vst [vmem:[#allocation140_spill] sm:$0xff] %v8209_v25  ;;  %10887 = vst [vmem:[#allocation141_spill] sm:$0xff] %v8211_v15  ;;  %3035 = vperm.xlu1 %6882, %v2260_v3   ;;  %3032 = vperm.xlu0 %6881, %v2259_v14   ;;  %v10892_v25 = vld [vmem:[#allocation77_spill] sm:$0xff] }
 0x453   :  { %v2263_v15 = vmul.f32 %v7917_v5, %v10892_v25  ;;  %v2268_v25 = vmul.f32 %v7917_v5, %v10899_v35  ;;  %v10907_v35 = vld [vmem:[#allocation92_spill] sm:$0xff] }
 0x455   :  { %v8217_v34 = vpop.permute.xlu1 %2855  ;;  %v8219_v58 = vpop.permute.xlu0 %2852 }
 0x456   :  { %10889 = vst [vmem:[#allocation142_spill] sm:$0xff] %v8217_v34  ;;  %10890 = vst [vmem:[#allocation143_spill] sm:$0xff] %v8219_v58  ;;  %3041 = vperm.xlu1 %6882, %v2262_v22   ;;  %3038 = vperm.xlu0 %6881, %v2261_v55   ;;  %v10896_v34 = vld [vmem:[#allocation78_spill] sm:$0xff] }
 0x457   :  { %v2265_v58 = vmul.f32 %v7917_v5, %v10896_v34  ;;  %v2270_v34 = vmul.f32 %v7917_v5, %v10903_v17  ;;  %v10911_v17 = vld [vmem:[#allocation94_spill] sm:$0xff] }
 0x459   :  { %v8225_v3 = vpop.permute.xlu1 %2861  ;;  %v8227_v14 = vpop.permute.xlu0 %2858 }
 0x45a   :  { %10893 = vst [vmem:[#allocation144_spill] sm:$0xff] %v8225_v3  ;;  %10894 = vst [vmem:[#allocation145_spill] sm:$0xff] %v8227_v14  ;;  %3047 = vperm.xlu1 %6882, %v2264_v7   ;;  %3044 = vperm.xlu0 %6881, %v2263_v15   ;;  %v10900_v3 = vld [vmem:[#allocation79_spill] sm:$0xff] }
 0x45b   :  { %v2267_v14 = vmul.f32 %v7917_v5, %v10900_v3  ;;  %v2272_v3 = vmul.f32 %v7917_v5, %v10907_v35  ;;  %v10915_v35 = vld [vmem:[#allocation95_spill] sm:$0xff] }
 0x45d   :  { %v8233_v22 = vpop.permute.xlu1 %2867  ;;  %v8235_v55 = vpop.permute.xlu0 %2864 }
 0x45e   :  { %10897 = vst [vmem:[#allocation146_spill] sm:$0xff] %v8233_v22  ;;  %10898 = vst [vmem:[#allocation147_spill] sm:$0xff] %v8235_v55  ;;  %3053 = vperm.xlu1 %6882, %v2266_v9   ;;  %3050 = vperm.xlu0 %6881, %v2265_v58   ;;  %v10904_v22 = vld [vmem:[#allocation80_spill] sm:$0xff] }
 0x45f   :  { %v2269_v55 = vmul.f32 %v7917_v5, %v10904_v22  ;;  %v2274_v22 = vmul.f32 %v7917_v5, %v10911_v17  ;;  %v10919_v17 = vld [vmem:[#allocation97_spill] sm:$0xff] }
 0x461   :  { %v8241_v7 = vpop.permute.xlu1 %2873  ;;  %v8243_v15 = vpop.permute.xlu0 %2870 }
 0x462   :  { %10901 = vst [vmem:[#allocation148_spill] sm:$0xff] %v8241_v7  ;;  %10902 = vst [vmem:[#allocation149_spill] sm:$0xff] %v8243_v15  ;;  %3059 = vperm.xlu1 %6882, %v2268_v25   ;;  %3056 = vperm.xlu0 %6881, %v2267_v14   ;;  %v10908_v7 = vld [vmem:[#allocation81_spill] sm:$0xff] }
 0x463   :  { %v2271_v15 = vmul.f32 %v7917_v5, %v10908_v7  ;;  %v2276_v7 = vmul.f32 %v7917_v5, %v10915_v35  ;;  %v10923_v35 = vld [vmem:[#allocation99_spill] sm:$0xff] }
 0x465   :  { %v8249_v9 = vpop.permute.xlu1 %2879  ;;  %v8251_v58 = vpop.permute.xlu0 %2876 }
 0x466   :  { %10905 = vst [vmem:[#allocation150_spill] sm:$0xff] %v8249_v9  ;;  %10906 = vst [vmem:[#allocation151_spill] sm:$0xff] %v8251_v58  ;;  %3065 = vperm.xlu1 %6882, %v2270_v34   ;;  %3062 = vperm.xlu0 %6881, %v2269_v55   ;;  %v10912_v9 = vld [vmem:[#allocation83_spill] sm:$0xff] }
 0x467   :  { %v2273_v58 = vmul.f32 %v7917_v5, %v10912_v9  ;;  %v2278_v9 = vmul.f32 %v7917_v5, %v10919_v17  ;;  %v10927_v17 = vld [vmem:[#allocation100_spill] sm:$0xff] }
 0x469   :  { %v8257_v25 = vpop.permute.xlu1 %2885  ;;  %v8259_v14 = vpop.permute.xlu0 %2882 }
 0x46a   :  { %10909 = vst [vmem:[#allocation152_spill] sm:$0xff] %v8257_v25  ;;  %10910 = vst [vmem:[#allocation153_spill] sm:$0xff] %v8259_v14  ;;  %3071 = vperm.xlu1 %6882, %v2272_v3   ;;  %3068 = vperm.xlu0 %6881, %v2271_v15   ;;  %v10916_v25 = vld [vmem:[#allocation86_spill] sm:$0xff] }
 0x46b   :  { %v2275_v14 = vmul.f32 %v7917_v5, %v10916_v25  ;;  %v2280_v25 = vmul.f32 %v7917_v5, %v10923_v35  ;;  %v10931_v35 = vld [vmem:[#allocation102_spill] sm:$0xff] }
 0x46d   :  { %v8265_v34 = vpop.permute.xlu1 %2891  ;;  %v8267_v55 = vpop.permute.xlu0 %2888 }
 0x46e   :  { %10913 = vst [vmem:[#allocation154_spill] sm:$0xff] %v8265_v34  ;;  %10914 = vst [vmem:[#allocation155_spill] sm:$0xff] %v8267_v55  ;;  %3077 = vperm.xlu1 %6882, %v2274_v22   ;;  %3074 = vperm.xlu0 %6881, %v2273_v58   ;;  %v10920_v34 = vld [vmem:[#allocation88_spill] sm:$0xff] }
 0x46f   :  { %v2277_v55 = vmul.f32 %v7917_v5, %v10920_v34  ;;  %v2282_v34 = vmul.f32 %v7917_v5, %v10927_v17 }
 0x471   :  { %v8273_v3 = vpop.permute.xlu1 %2897  ;;  %v8275_v15 = vpop.permute.xlu0 %2894 }
 0x472   :  { %10917 = vst [vmem:[#allocation156_spill] sm:$0xff] %v8273_v3  ;;  %10918 = vst [vmem:[#allocation157_spill] sm:$0xff] %v8275_v15  ;;  %3083 = vperm.xlu1 %6882, %v2276_v7   ;;  %3080 = vperm.xlu0 %6881, %v2275_v14   ;;  %v10924_v3 = vld [vmem:[#allocation91_spill] sm:$0xff] }
 0x473   :  { %v2279_v15 = vmul.f32 %v7917_v5, %v10924_v3  ;;  %v2284_v3 = vmul.f32 %v7917_v5, %v10931_v35 }
 0x475   :  { %v8281_v22 = vpop.permute.xlu1 %2903  ;;  %v8283_v58 = vpop.permute.xlu0 %2900 }
 0x476   :  { %10921 = vst [vmem:[#allocation158_spill] sm:$0xff] %v8281_v22  ;;  %10922 = vst [vmem:[#allocation159_spill] sm:$0xff] %v8283_v58  ;;  %3089 = vperm.xlu1 %6882, %v2278_v9   ;;  %3086 = vperm.xlu0 %6881, %v2277_v55   ;;  %v10928_v22 = vld [vmem:[#allocation93_spill] sm:$0xff] }
 0x477   :  { %v2281_v58 = vmul.f32 %v7917_v5, %v10928_v22 }
 0x479   :  { %v8289_v7 = vpop.permute.xlu1 %2909  ;;  %v8291_v14 = vpop.permute.xlu0 %2906 }
 0x47a   :  { %10925 = vst [vmem:[#allocation160_spill] sm:$0xff] %v8289_v7  ;;  %10926 = vst [vmem:[#allocation161_spill] sm:$0xff] %v8291_v14  ;;  %3095 = vperm.xlu1 %6882, %v2280_v25   ;;  %3092 = vperm.xlu0 %6881, %v2279_v15   ;;  %v960_v14 = vadd.f32 %v7261_v48, %v8059_v29  ;;  %v10932_v25 = vld [vmem:[#allocation96_spill] sm:$0xff] }
 0x47b   :  { %v2283_v15 = vmul.f32 %v7917_v5, %v10932_v25  ;;  %v10939_v48 = vld [vmem:[#allocation104_spill] sm:$0xff] }
 0x47c   :  { %v2288_v29 = vmul.f32 %v7917_v5, %v10939_v48 }
 0x47d   :  { %v8297_v9 = vpop.permute.xlu1 %2915  ;;  %v8299_v55 = vpop.permute.xlu0 %2912 }
 0x47e   :  { %10929 = vst [vmem:[#allocation162_spill] sm:$0xff] %v8297_v9  ;;  %10930 = vst [vmem:[#allocation163_spill] sm:$0xff] %v8299_v55  ;;  %3101 = vperm.xlu1 %6882, %v2282_v34   ;;  %3098 = vperm.xlu0 %6881, %v2281_v58   ;;  %v10935_v9 = vld [vmem:[#allocation103_spill] sm:$0xff]  ;;  %v6878_v34 = vmul.f32 -1.442695, %v960_v14  ;;  %v10936_v58 = vld [vmem:[#allocation98_spill] sm:$0xff]  ;;  %v2290_v14 = vmul.f32 %v7917_v5, %v7900_v19 }
 0x47f   :  { %v2286_v55 = vmul.f32 %v7917_v5, %v10935_v9  ;;  %v2285_v22 = vmul.f32 %v7917_v5, %v10936_v58 }
 0x480   :  { %6903 = vpow2.f32 %v6878_v34  ;;  %v2292_v34 = vmul.f32 %v7917_v5, %v7902_v49 }
 0x481   :  { %v8307_v7 = vpop.permute.xlu1 %2921  ;;  %v8309_v17 = vpop.permute.xlu0 %2918 }
 0x482   :  { %10933 = vst [vmem:[#allocation96_spill] sm:$0xff] %v8307_v7  ;;  %10934 = vst [vmem:[#allocation164_spill] sm:$0xff] %v8309_v17  ;;  %3107 = vperm.xlu1 %6882, %v2284_v3   ;;  %3104 = vperm.xlu0 %6881, %v2283_v15   ;;  %v10940_v7 = vld [vmem:[#allocation101_spill] sm:$0xff] }
 0x483   :  { %v2287_v3 = vmul.f32 %v7917_v5, %v10940_v7 }
 0x485   :  { %v8315_v35 = vpop.permute.xlu1 %2927  ;;  %v8317_v47 = vpop.permute.xlu0 %2924 }
 0x486   :  { %10937 = vst [vmem:[#allocation103_spill] sm:$0xff] %v8315_v35  ;;  %10938 = vst [vmem:[#allocation98_spill] sm:$0xff] %v8317_v47  ;;  %3113 = vperm.xlu1 %6882, %v2286_v55   ;;  %3110 = vperm.xlu0 %6881, %v2285_v22   ;;  %v2289_v55 = vmul.f32 %v7917_v5, %v7995_v59 }
 0x489   :  { %v8323_v15 = vpop.permute.xlu1 %2933  ;;  %v8325_v17 = vpop.permute.xlu0 %2930 }
 0x48a   :  { %10941 = vst [vmem:[#allocation104_spill] sm:$0xff] %v8323_v15  ;;  %10942 = vst [vmem:[#allocation101_spill] sm:$0xff] %v8325_v17  ;;  %3119 = vperm.xlu1 %6882, %v2288_v29   ;;  %3116 = vperm.xlu0 %6881, %v2287_v3   ;;  %v2291_v17 = vmul.f32 %v7917_v5, %v8001_v38  ;;  %v2294_v15 = vmul.f32 %v7917_v5, %v7904_v11 }
 0x48d   :  { %v8331_v22 = vpop.permute.xlu1 %2939  ;;  %v8333_v35 = vpop.permute.xlu0 %2936 }
 0x48e   :  { %10943 = vst [vmem:[#allocation165_spill] sm:$0xff] %v8331_v22  ;;  %10944 = vst [vmem:[#allocation166_spill] sm:$0xff] %v8333_v35  ;;  %3125 = vperm.xlu1 %6882, %v2290_v14   ;;  %3122 = vperm.xlu0 %6881, %v2289_v55   ;;  %v6904_v22 = vpop.eup %6903  ;;  %v2293_v14 = vmul.f32 %v7917_v5, %v8011_v46 }
 0x48f   :  { %v968_v47 = vadd.f32 1.0, %v6904_v22  ;;  %v2300_v22 = vmul.f32 %v7917_v5, %v7910_v27 }
 0x491   :  { %v8339_v29 = vpop.permute.xlu1 %2945  ;;  %v8341_v3 = vpop.permute.xlu0 %2942  ;;  %6905 = vrcp.f32 %v968_v47  ;;  %v2302_v47 = vmul.f32 %v7917_v5, %v7912_v10 }
 0x492   :  { %10945 = vst [vmem:[#allocation167_spill] sm:$0xff] %v8339_v29  ;;  %10946 = vst [vmem:[#allocation168_spill] sm:$0xff] %v8341_v3  ;;  %3131 = vperm.xlu1 %6882, %v2292_v34   ;;  %3128 = vperm.xlu0 %6881, %v2291_v17   ;;  %v2296_v29 = vmul.f32 %v7917_v5, %v7906_v2  ;;  %v2295_v17 = vmul.f32 %v7917_v5, %v8017_v52 }
 0x495   :  { %v8347_v55 = vpop.permute.xlu1 %2951  ;;  %v8349_v35 = vpop.permute.xlu0 %2948 }
 0x496   :  { %10947 = vst [vmem:[#allocation169_spill] sm:$0xff] %v8347_v55  ;;  %10948 = vst [vmem:[#allocation170_spill] sm:$0xff] %v8349_v35  ;;  %3137 = vperm.xlu1 %6882, %v2294_v15   ;;  %3134 = vperm.xlu0 %6881, %v2293_v14   ;;  %v2298_v55 = vmul.f32 %v7917_v5, %v7908_v54  ;;  %v2297_v15 = vmul.f32 %v7917_v5, %v8027_v13 }
 0x499   :  { %v8355_v34 = vpop.permute.xlu1 %2957  ;;  %v8357_v3 = vpop.permute.xlu0 %2954 }
 0x49a   :  { %10949 = vst [vmem:[#allocation171_spill] sm:$0xff] %v8357_v3  ;;  %3143 = vperm.xlu1 %6882, %v2296_v29   ;;  %3140 = vperm.xlu0 %6881, %v2295_v17   ;;  %v2299_v29 = vmul.f32 %v7917_v5, %v8035_v61 }
 0x49d   :  { %v8363_v14 = vpop.permute.xlu1 %2963  ;;  %v8365_v35 = vpop.permute.xlu0 %2960 }
 0x49e   :  { %10950 = vst [vmem:[#allocation172_spill] sm:$0xff] %v8363_v14  ;;  %10951 = vst [vmem:[#allocation173_spill] sm:$0xff] %v8365_v35  ;;  %3149 = vperm.xlu1 %6882, %v2298_v55   ;;  %3146 = vperm.xlu0 %6881, %v2297_v15   ;;  %v2301_v14 = vmul.f32 %v7917_v5, %v8043_v16  ;;  %v2304_v35 = vmul.f32 %v7917_v5, %v7914_v24 }
 0x4a1   :  { %v8371_v17 = vpop.permute.xlu1 %2969  ;;  %v8373_v3 = vpop.permute.xlu0 %2966 }
 0x4a2   :  { %10952 = vst [vmem:[#allocation174_spill] sm:$0xff] %v8371_v17  ;;  %10953 = vst [vmem:[#allocation175_spill] sm:$0xff] %v8373_v3  ;;  %3155 = vperm.xlu1 %6882, %v2300_v22   ;;  %3152 = vperm.xlu0 %6881, %v2299_v29   ;;  %v8385_v17 = vpop.eup %6905  ;;  %v2303_v22 = vmul.f32 %v7917_v5, %v8051_v43 }
 0x4a3   :  { %v2308_v5 = vmul.f32 %v8385_v17, %v7286_v4  ;;  %v2311_v4 = vmul.f32 %v8385_v17, %v7284_v12 }
 0x4a5   :  { %v8379_v55 = vpop.permute.xlu1 %2975  ;;  %v8381_v15 = vpop.permute.xlu0 %2972 }
 0x4a6   :  { %10954 = vst [vmem:[#allocation176_spill] sm:$0xff] %v8379_v55  ;;  %10955 = vst [vmem:[#allocation177_spill] sm:$0xff] %v8381_v15  ;;  %3161 = vperm.xlu1 %6882, %v2302_v47   ;;  %3158 = vperm.xlu0 %6881, %v2301_v14   ;;  %v2306_v55 = vmul.f32 %v8385_v17, %v7278_v63  ;;  %v2305_v14 = vmul.f32 %v8385_v17, %v7270_v53 }
 0x4a7   :  { %v2310_v53 = vmul.f32 %v8385_v17, %v7290_v20  ;;  %v2309_v63 = vmul.f32 %v8385_v17, %v7280_v45  ;;  %v2314_v45 = vmul.f32 %v8385_v17, %v7311_v37  ;;  %v2313_v20 = vmul.f32 %v8385_v17, %v7288_v18  ;;  %v10965_v37 = vld [vmem:[#allocation12_spill] sm:$0xff] }
 0x4a8   :  { %v2318_v18 = vmul.f32 %v8385_v17, %v10965_v37  ;;  %v10973_v37 = vld [vmem:[#allocation16_spill] sm:$0xff] }
 0x4a9   :  { %v8389_v29 = vpop.permute.xlu1 %2981  ;;  %v8391_v3 = vpop.permute.xlu0 %2978 }
 0x4aa   :  { %10956 = vst [vmem:[#allocation178_spill] sm:$0xff] %v8391_v3  ;;  %3167 = vperm.xlu1 %6882, %v2304_v35   ;;  %3164 = vperm.xlu0 %6881, %v2303_v22   ;;  %v2307_v3 = vmul.f32 %v8385_v17, %v7272_v56  ;;  %v2312_v56 = vmul.f32 %v8385_v17, %v7301_v26  ;;  %v10961_v26 = vld [vmem:[#allocation10_spill] sm:$0xff] }
 0x4ab   :  { %v2316_v12 = vmul.f32 %v8385_v17, %v10961_v26  ;;  %v10969_v26 = vld [vmem:[#allocation14_spill] sm:$0xff] }
 0x4ad   :  { %v8397_v47 = vpop.permute.xlu1 %2987  ;;  %v8399_v15 = vpop.permute.xlu0 %2984 }
 0x4ae   :  { %3173 = vperm.xlu1 %6882, %v2306_v55   ;;  %3170 = vperm.xlu0 %6881, %v2305_v14  }
 0x4b1   :  { %v8405_v35 = vpop.permute.xlu1 %2993  ;;  %v8407_v22 = vpop.permute.xlu0 %2990 }
 0x4b2   :  { %10957 = vst [vmem:[#allocation179_spill] sm:$0xff] %v8405_v35  ;;  %3179 = vperm.xlu1 %6882, %v2308_v5   ;;  %3176 = vperm.xlu0 %6881, %v2307_v3  }
 0x4b5   :  { %v8413_v55 = vpop.permute.xlu1 %2999  ;;  %v8415_v14 = vpop.permute.xlu0 %2996 }
 0x4b6   :  { %10958 = vst [vmem:[#allocation180_spill] sm:$0xff] %v8413_v55  ;;  %10959 = vst [vmem:[#allocation181_spill] sm:$0xff] %v8415_v14  ;;  %3185 = vperm.xlu1 %6882, %v2310_v53   ;;  %3182 = vperm.xlu0 %6881, %v2309_v63   ;;  %v10962_v55 = vld [vmem:[#allocation7_spill] sm:$0xff] }
 0x4b7   :  { %v2315_v14 = vmul.f32 %v8385_v17, %v10962_v55  ;;  %v2320_v55 = vmul.f32 %v8385_v17, %v10969_v26  ;;  %v10977_v26 = vld [vmem:[#allocation18_spill] sm:$0xff] }
 0x4b9   :  { %v8421_v5 = vpop.permute.xlu1 %3005  ;;  %v8423_v3 = vpop.permute.xlu0 %3002 }
 0x4ba   :  { %3191 = vperm.xlu1 %6882, %v2312_v56   ;;  %3188 = vperm.xlu0 %6881, %v2311_v4  }
 0x4bd   :  { %v8429_v53 = vpop.permute.xlu1 %3011  ;;  %v8431_v63 = vpop.permute.xlu0 %3008 }
 0x4be   :  { %10960 = vst [vmem:[#allocation182_spill] sm:$0xff] %v8429_v53  ;;  %3197 = vperm.xlu1 %6882, %v2314_v45   ;;  %3194 = vperm.xlu0 %6881, %v2313_v20   ;;  %v10966_v53 = vld [vmem:[#allocation8_spill] sm:$0xff] }
 0x4bf   :  { %v2317_v35 = vmul.f32 %v8385_v17, %v10966_v53  ;;  %v2322_v53 = vmul.f32 %v8385_v17, %v10973_v37  ;;  %v10981_v37 = vld [vmem:[#allocation20_spill] sm:$0xff] }
 0x4c1   :  { %v8437_v56 = vpop.permute.xlu1 %3017  ;;  %v8439_v4 = vpop.permute.xlu0 %3014 }
 0x4c2   :  { %10963 = vst [vmem:[#allocation10_spill] sm:$0xff] %v8437_v56  ;;  %10964 = vst [vmem:[#allocation7_spill] sm:$0xff] %v8439_v4  ;;  %3203 = vperm.xlu1 %6882, %v2316_v12   ;;  %3200 = vperm.xlu0 %6881, %v2315_v14   ;;  %v10970_v56 = vld [vmem:[#allocation9_spill] sm:$0xff] }
 0x4c3   :  { %v2319_v4 = vmul.f32 %v8385_v17, %v10970_v56  ;;  %v2324_v56 = vmul.f32 %v8385_v17, %v10977_v26  ;;  %v10985_v26 = vld [vmem:[#allocation22_spill] sm:$0xff] }
 0x4c5   :  { %v8445_v45 = vpop.permute.xlu1 %3023  ;;  %v8447_v20 = vpop.permute.xlu0 %3020 }
 0x4c6   :  { %10967 = vst [vmem:[#allocation12_spill] sm:$0xff] %v8445_v45  ;;  %10968 = vst [vmem:[#allocation8_spill] sm:$0xff] %v8447_v20  ;;  %3209 = vperm.xlu1 %6882, %v2318_v18   ;;  %3206 = vperm.xlu0 %6881, %v2317_v35   ;;  %v10974_v45 = vld [vmem:[#allocation11_spill] sm:$0xff] }
 0x4c7   :  { %v2321_v20 = vmul.f32 %v8385_v17, %v10974_v45  ;;  %v2326_v45 = vmul.f32 %v8385_v17, %v10981_v37  ;;  %v10989_v37 = vld [vmem:[#allocation24_spill] sm:$0xff] }
 0x4c9   :  { %v8453_v12 = vpop.permute.xlu1 %3029  ;;  %v8455_v14 = vpop.permute.xlu0 %3026 }
 0x4ca   :  { %10971 = vst [vmem:[#allocation14_spill] sm:$0xff] %v8453_v12  ;;  %10972 = vst [vmem:[#allocation9_spill] sm:$0xff] %v8455_v14  ;;  %3215 = vperm.xlu1 %6882, %v2320_v55   ;;  %3212 = vperm.xlu0 %6881, %v2319_v4   ;;  %v10978_v12 = vld [vmem:[#allocation13_spill] sm:$0xff] }
 0x4cb   :  { %v2323_v14 = vmul.f32 %v8385_v17, %v10978_v12  ;;  %v2328_v12 = vmul.f32 %v8385_v17, %v10985_v26  ;;  %v10993_v26 = vld [vmem:[#allocation26_spill] sm:$0xff] }
 0x4cd   :  { %v8461_v18 = vpop.permute.xlu1 %3035  ;;  %v8463_v35 = vpop.permute.xlu0 %3032 }
 0x4ce   :  { %10975 = vst [vmem:[#allocation16_spill] sm:$0xff] %v8461_v18  ;;  %10976 = vst [vmem:[#allocation11_spill] sm:$0xff] %v8463_v35  ;;  %3221 = vperm.xlu1 %6882, %v2322_v53   ;;  %3218 = vperm.xlu0 %6881, %v2321_v20   ;;  %v10982_v18 = vld [vmem:[#allocation15_spill] sm:$0xff] }
 0x4cf   :  { %v2325_v35 = vmul.f32 %v8385_v17, %v10982_v18  ;;  %v2330_v18 = vmul.f32 %v8385_v17, %v10989_v37  ;;  %v10997_v37 = vld [vmem:[#allocation28_spill] sm:$0xff] }
 0x4d1   :  { %v8469_v55 = vpop.permute.xlu1 %3041  ;;  %v8471_v4 = vpop.permute.xlu0 %3038 }
 0x4d2   :  { %10979 = vst [vmem:[#allocation18_spill] sm:$0xff] %v8469_v55  ;;  %10980 = vst [vmem:[#allocation13_spill] sm:$0xff] %v8471_v4  ;;  %3227 = vperm.xlu1 %6882, %v2324_v56   ;;  %3224 = vperm.xlu0 %6881, %v2323_v14   ;;  %v10986_v55 = vld [vmem:[#allocation17_spill] sm:$0xff] }
 0x4d3   :  { %v2327_v4 = vmul.f32 %v8385_v17, %v10986_v55  ;;  %v2332_v55 = vmul.f32 %v8385_v17, %v10993_v26  ;;  %v11001_v26 = vld [vmem:[#allocation30_spill] sm:$0xff] }
 0x4d5   :  { %v8477_v53 = vpop.permute.xlu1 %3047  ;;  %v8479_v20 = vpop.permute.xlu0 %3044 }
 0x4d6   :  { %10983 = vst [vmem:[#allocation20_spill] sm:$0xff] %v8477_v53  ;;  %10984 = vst [vmem:[#allocation15_spill] sm:$0xff] %v8479_v20  ;;  %3233 = vperm.xlu1 %6882, %v2326_v45   ;;  %3230 = vperm.xlu0 %6881, %v2325_v35   ;;  %v10990_v53 = vld [vmem:[#allocation19_spill] sm:$0xff] }
 0x4d7   :  { %v2329_v20 = vmul.f32 %v8385_v17, %v10990_v53  ;;  %v2334_v53 = vmul.f32 %v8385_v17, %v10997_v37  ;;  %v11005_v37 = vld [vmem:[#allocation32_spill] sm:$0xff] }
 0x4d9   :  { %v8485_v56 = vpop.permute.xlu1 %3053  ;;  %v8487_v14 = vpop.permute.xlu0 %3050 }
 0x4da   :  { %10987 = vst [vmem:[#allocation22_spill] sm:$0xff] %v8485_v56  ;;  %10988 = vst [vmem:[#allocation17_spill] sm:$0xff] %v8487_v14  ;;  %3239 = vperm.xlu1 %6882, %v2328_v12   ;;  %3236 = vperm.xlu0 %6881, %v2327_v4   ;;  %v10994_v56 = vld [vmem:[#allocation21_spill] sm:$0xff] }
 0x4db   :  { %v2331_v14 = vmul.f32 %v8385_v17, %v10994_v56  ;;  %v2336_v56 = vmul.f32 %v8385_v17, %v11001_v26  ;;  %v11009_v26 = vld [vmem:[#allocation34_spill] sm:$0xff] }
 0x4dd   :  { %v8493_v45 = vpop.permute.xlu1 %3059  ;;  %v8495_v35 = vpop.permute.xlu0 %3056 }
 0x4de   :  { %10991 = vst [vmem:[#allocation24_spill] sm:$0xff] %v8493_v45  ;;  %10992 = vst [vmem:[#allocation19_spill] sm:$0xff] %v8495_v35  ;;  %3245 = vperm.xlu1 %6882, %v2330_v18   ;;  %3242 = vperm.xlu0 %6881, %v2329_v20   ;;  %v10998_v45 = vld [vmem:[#allocation23_spill] sm:$0xff] }
 0x4df   :  { %v2333_v35 = vmul.f32 %v8385_v17, %v10998_v45  ;;  %v2338_v45 = vmul.f32 %v8385_v17, %v11005_v37  ;;  %v11013_v37 = vld [vmem:[#allocation36_spill] sm:$0xff] }
 0x4e1   :  { %v8501_v12 = vpop.permute.xlu1 %3065  ;;  %v8503_v4 = vpop.permute.xlu0 %3062 }
 0x4e2   :  { %10995 = vst [vmem:[#allocation26_spill] sm:$0xff] %v8501_v12  ;;  %10996 = vst [vmem:[#allocation21_spill] sm:$0xff] %v8503_v4  ;;  %3251 = vperm.xlu1 %6882, %v2332_v55   ;;  %3248 = vperm.xlu0 %6881, %v2331_v14   ;;  %v11002_v12 = vld [vmem:[#allocation25_spill] sm:$0xff] }
 0x4e3   :  { %v2335_v4 = vmul.f32 %v8385_v17, %v11002_v12  ;;  %v2340_v12 = vmul.f32 %v8385_v17, %v11009_v26  ;;  %v11017_v26 = vld [vmem:[#allocation38_spill] sm:$0xff] }
 0x4e5   :  { %v8509_v18 = vpop.permute.xlu1 %3071  ;;  %v8511_v20 = vpop.permute.xlu0 %3068 }
 0x4e6   :  { %10999 = vst [vmem:[#allocation28_spill] sm:$0xff] %v8509_v18  ;;  %11000 = vst [vmem:[#allocation23_spill] sm:$0xff] %v8511_v20  ;;  %3257 = vperm.xlu1 %6882, %v2334_v53   ;;  %3254 = vperm.xlu0 %6881, %v2333_v35   ;;  %v11006_v18 = vld [vmem:[#allocation27_spill] sm:$0xff] }
 0x4e7   :  { %v2337_v20 = vmul.f32 %v8385_v17, %v11006_v18  ;;  %v2342_v18 = vmul.f32 %v8385_v17, %v11013_v37  ;;  %v11021_v37 = vld [vmem:[#allocation40_spill] sm:$0xff] }
 0x4e9   :  { %v8517_v55 = vpop.permute.xlu1 %3077  ;;  %v8519_v14 = vpop.permute.xlu0 %3074 }
 0x4ea   :  { %11003 = vst [vmem:[#allocation30_spill] sm:$0xff] %v8517_v55  ;;  %11004 = vst [vmem:[#allocation25_spill] sm:$0xff] %v8519_v14  ;;  %3263 = vperm.xlu1 %6882, %v2336_v56   ;;  %3260 = vperm.xlu0 %6881, %v2335_v4   ;;  %v11010_v55 = vld [vmem:[#allocation29_spill] sm:$0xff] }
 0x4eb   :  { %v2339_v14 = vmul.f32 %v8385_v17, %v11010_v55  ;;  %v2344_v55 = vmul.f32 %v8385_v17, %v11017_v26  ;;  %v11025_v26 = vld [vmem:[#allocation42_spill] sm:$0xff] }
 0x4ed   :  { %v8525_v53 = vpop.permute.xlu1 %3083  ;;  %v8527_v35 = vpop.permute.xlu0 %3080 }
 0x4ee   :  { %11007 = vst [vmem:[#allocation32_spill] sm:$0xff] %v8525_v53  ;;  %11008 = vst [vmem:[#allocation27_spill] sm:$0xff] %v8527_v35  ;;  %3269 = vperm.xlu1 %6882, %v2338_v45   ;;  %3266 = vperm.xlu0 %6881, %v2337_v20   ;;  %v11014_v53 = vld [vmem:[#allocation31_spill] sm:$0xff] }
 0x4ef   :  { %v2341_v35 = vmul.f32 %v8385_v17, %v11014_v53  ;;  %v2346_v53 = vmul.f32 %v8385_v17, %v11021_v37  ;;  %v11029_v37 = vld [vmem:[#allocation43_spill] sm:$0xff] }
 0x4f1   :  { %v8533_v56 = vpop.permute.xlu1 %3089  ;;  %v8535_v4 = vpop.permute.xlu0 %3086 }
 0x4f2   :  { %11011 = vst [vmem:[#allocation34_spill] sm:$0xff] %v8533_v56  ;;  %11012 = vst [vmem:[#allocation29_spill] sm:$0xff] %v8535_v4  ;;  %3275 = vperm.xlu1 %6882, %v2340_v12   ;;  %3272 = vperm.xlu0 %6881, %v2339_v14   ;;  %v11018_v56 = vld [vmem:[#allocation33_spill] sm:$0xff] }
 0x4f3   :  { %v2343_v4 = vmul.f32 %v8385_v17, %v11018_v56  ;;  %v2348_v56 = vmul.f32 %v8385_v17, %v11025_v26  ;;  %v11033_v26 = vld [vmem:[#allocation45_spill] sm:$0xff] }
 0x4f5   :  { %v8541_v45 = vpop.permute.xlu1 %3095  ;;  %v8543_v20 = vpop.permute.xlu0 %3092 }
 0x4f6   :  { %11015 = vst [vmem:[#allocation36_spill] sm:$0xff] %v8541_v45  ;;  %11016 = vst [vmem:[#allocation31_spill] sm:$0xff] %v8543_v20  ;;  %3281 = vperm.xlu1 %6882, %v2342_v18   ;;  %3278 = vperm.xlu0 %6881, %v2341_v35   ;;  %v11022_v45 = vld [vmem:[#allocation35_spill] sm:$0xff] }
 0x4f7   :  { %v2345_v20 = vmul.f32 %v8385_v17, %v11022_v45  ;;  %v2350_v45 = vmul.f32 %v8385_v17, %v11029_v37  ;;  %v11037_v37 = vld [vmem:[#allocation59_spill] sm:$0xff] }
 0x4f9   :  { %v8549_v12 = vpop.permute.xlu1 %3101  ;;  %v8551_v14 = vpop.permute.xlu0 %3098 }
 0x4fa   :  { %11019 = vst [vmem:[#allocation38_spill] sm:$0xff] %v8549_v12  ;;  %11020 = vst [vmem:[#allocation33_spill] sm:$0xff] %v8551_v14  ;;  %3287 = vperm.xlu1 %6882, %v2344_v55   ;;  %3284 = vperm.xlu0 %6881, %v2343_v4   ;;  %v11026_v12 = vld [vmem:[#allocation37_spill] sm:$0xff] }
 0x4fb   :  { %v2347_v14 = vmul.f32 %v8385_v17, %v11026_v12  ;;  %v2352_v12 = vmul.f32 %v8385_v17, %v11033_v26  ;;  %v11041_v26 = vld [vmem:[#allocation62_spill] sm:$0xff] }
 0x4fd   :  { %v8557_v18 = vpop.permute.xlu1 %3107  ;;  %v8559_v35 = vpop.permute.xlu0 %3104 }
 0x4fe   :  { %11023 = vst [vmem:[#allocation40_spill] sm:$0xff] %v8557_v18  ;;  %11024 = vst [vmem:[#allocation35_spill] sm:$0xff] %v8559_v35  ;;  %3293 = vperm.xlu1 %6882, %v2346_v53   ;;  %3290 = vperm.xlu0 %6881, %v2345_v20   ;;  %v11030_v18 = vld [vmem:[#allocation39_spill] sm:$0xff] }
 0x4ff   :  { %v2349_v35 = vmul.f32 %v8385_v17, %v11030_v18  ;;  %v2354_v18 = vmul.f32 %v8385_v17, %v11037_v37  ;;  %v11045_v37 = vld [vmem:[#allocation63_spill] sm:$0xff] }
 0x501   :  { %v8565_v55 = vpop.permute.xlu1 %3113  ;;  %v8567_v4 = vpop.permute.xlu0 %3110 }
 0x502   :  { %11027 = vst [vmem:[#allocation42_spill] sm:$0xff] %v8565_v55  ;;  %11028 = vst [vmem:[#allocation37_spill] sm:$0xff] %v8567_v4  ;;  %3299 = vperm.xlu1 %6882, %v2348_v56   ;;  %3296 = vperm.xlu0 %6881, %v2347_v14   ;;  %v11034_v55 = vld [vmem:[#allocation41_spill] sm:$0xff] }
 0x503   :  { %v2351_v4 = vmul.f32 %v8385_v17, %v11034_v55  ;;  %v2356_v55 = vmul.f32 %v8385_v17, %v11041_v26  ;;  %v11049_v26 = vld [vmem:[#allocation65_spill] sm:$0xff] }
 0x505   :  { %v8573_v53 = vpop.permute.xlu1 %3119  ;;  %v8575_v20 = vpop.permute.xlu0 %3116 }
 0x506   :  { %11031 = vst [vmem:[#allocation43_spill] sm:$0xff] %v8573_v53  ;;  %11032 = vst [vmem:[#allocation39_spill] sm:$0xff] %v8575_v20  ;;  %3305 = vperm.xlu1 %6882, %v2350_v45   ;;  %3302 = vperm.xlu0 %6881, %v2349_v35   ;;  %v11038_v53 = vld [vmem:[#allocation44_spill] sm:$0xff] }
 0x507   :  { %v2353_v20 = vmul.f32 %v8385_v17, %v11038_v53  ;;  %v2358_v53 = vmul.f32 %v8385_v17, %v11045_v37  ;;  %v11052_v37 = vld [vmem:[#allocation67_spill] sm:$0xff] }
 0x509   :  { %v8581_v56 = vpop.permute.xlu1 %3125  ;;  %v8583_v14 = vpop.permute.xlu0 %3122 }
 0x50a   :  { %11035 = vst [vmem:[#allocation45_spill] sm:$0xff] %v8581_v56  ;;  %11036 = vst [vmem:[#allocation41_spill] sm:$0xff] %v8583_v14  ;;  %3311 = vperm.xlu1 %6882, %v2352_v12   ;;  %3308 = vperm.xlu0 %6881, %v2351_v4   ;;  %v11042_v56 = vld [vmem:[#allocation46_spill] sm:$0xff] }
 0x50b   :  { %v2355_v14 = vmul.f32 %v8385_v17, %v11042_v56  ;;  %v2360_v56 = vmul.f32 %v8385_v17, %v11049_v26  ;;  %v11056_v26 = vld [vmem:[#allocation68_spill] sm:$0xff] }
 0x50d   :  { %v8589_v45 = vpop.permute.xlu1 %3131  ;;  %v8591_v35 = vpop.permute.xlu0 %3128 }
 0x50e   :  { %11039 = vst [vmem:[#allocation59_spill] sm:$0xff] %v8589_v45  ;;  %11040 = vst [vmem:[#allocation44_spill] sm:$0xff] %v8591_v35  ;;  %3317 = vperm.xlu1 %6882, %v2354_v18   ;;  %3314 = vperm.xlu0 %6881, %v2353_v20   ;;  %v11046_v45 = vld [vmem:[#allocation47_spill] sm:$0xff] }
 0x50f   :  { %v2357_v35 = vmul.f32 %v8385_v17, %v11046_v45  ;;  %v2362_v45 = vmul.f32 %v8385_v17, %v11052_v37  ;;  %v11058_v37 = vld [vmem:[#allocation70_spill] sm:$0xff] }
 0x511   :  { %v8597_v12 = vpop.permute.xlu1 %3137  ;;  %v8599_v4 = vpop.permute.xlu0 %3134 }
 0x512   :  { %11043 = vst [vmem:[#allocation62_spill] sm:$0xff] %v8597_v12  ;;  %11044 = vst [vmem:[#allocation46_spill] sm:$0xff] %v8599_v4  ;;  %3323 = vperm.xlu1 %6882, %v2356_v55   ;;  %3320 = vperm.xlu0 %6881, %v2355_v14   ;;  %v11050_v12 = vld [vmem:[#allocation48_spill] sm:$0xff] }
 0x513   :  { %v2359_v4 = vmul.f32 %v8385_v17, %v11050_v12  ;;  %v2364_v12 = vmul.f32 %v8385_v17, %v11056_v26  ;;  %v11062_v26 = vld [vmem:[#allocation52_spill] sm:$0xff] }
 0x515   :  { %v8605_v18 = vpop.permute.xlu1 %3143  ;;  %v8607_v20 = vpop.permute.xlu0 %3140 }
 0x516   :  { %11047 = vst [vmem:[#allocation63_spill] sm:$0xff] %v8605_v18  ;;  %11048 = vst [vmem:[#allocation47_spill] sm:$0xff] %v8607_v20  ;;  %3329 = vperm.xlu1 %6882, %v2358_v53   ;;  %3326 = vperm.xlu0 %6881, %v2357_v35   ;;  %v11053_v18 = vld [vmem:[#allocation49_spill] sm:$0xff] }
 0x517   :  { %v2361_v20 = vmul.f32 %v8385_v17, %v11053_v18  ;;  %v2366_v18 = vmul.f32 %v8385_v17, %v11058_v37  ;;  %v11063_v37 = vld [vmem:[#allocation53_spill] sm:$0xff] }
 0x519   :  { %v8613_v55 = vpop.permute.xlu1 %3149  ;;  %v8615_v14 = vpop.permute.xlu0 %3146 }
 0x51a   :  { %11051 = vst [vmem:[#allocation65_spill] sm:$0xff] %v8615_v14  ;;  %3335 = vperm.xlu1 %6882, %v2360_v56   ;;  %3332 = vperm.xlu0 %6881, %v2359_v4   ;;  %v2363_v14 = vmul.f32 %v8385_v17, %v10833_v50  ;;  %v2368_v50 = vmul.f32 %v8385_v17, %v7718_v31 }
 0x51b   :  { %v2372_v31 = vmul.f32 %v8385_v17, %v7727_v41  ;;  %v2376_v41 = vmul.f32 %v8385_v17, %v7739_v57  ;;  %v2380_v57 = vmul.f32 %v8385_v17, %v7749_v44  ;;  %v2384_v44 = vmul.f32 %v8385_v17, %v7759_v1 }
 0x51c   :  { %v2388_v1 = vmul.f32 %v8385_v17, %v7774_v6  ;;  %v2392_v6 = vmul.f32 %v8385_v17, %v7784_v23  ;;  %v2396_v23 = vmul.f32 %v8385_v17, %v7797_v8  ;;  %v2400_v8 = vmul.f32 %v8385_v17, %v7809_v62  ;;  %v11108_v62 = vld [vmem:[#allocation82_spill] sm:$0xff] }
 0x51d   :  { %v8621_v53 = vpop.permute.xlu1 %3155  ;;  %v8623_v35 = vpop.permute.xlu0 %3152 }
 0x51e   :  { %11054 = vst [vmem:[#allocation48_spill] sm:$0xff] %v8621_v53  ;;  %11055 = vst [vmem:[#allocation67_spill] sm:$0xff] %v8623_v35  ;;  %3341 = vperm.xlu1 %6882, %v2362_v45   ;;  %3338 = vperm.xlu0 %6881, %v2361_v20   ;;  %v11059_v53 = vld [vmem:[#allocation51_spill] sm:$0xff] }
 0x51f   :  { %v2365_v35 = vmul.f32 %v8385_v17, %v11059_v53  ;;  %v2370_v53 = vmul.f32 %v8385_v17, %v7722_v42  ;;  %v2374_v42 = vmul.f32 %v8385_v17, %v7733_v21  ;;  %v2378_v21 = vmul.f32 %v8385_v17, %v7743_v33 }
 0x520   :  { %v2382_v33 = vmul.f32 %v8385_v17, %v7755_v39  ;;  %v2386_v39 = vmul.f32 %v8385_v17, %v7768_v0  ;;  %v2390_v0 = vmul.f32 %v8385_v17, %v7778_v30  ;;  %v2394_v30 = vmul.f32 %v8385_v17, %v7793_v36 }
 0x521   :  { %v8629_v56 = vpop.permute.xlu1 %3161  ;;  %v8631_v4 = vpop.permute.xlu0 %3158  ;;  %v2398_v36 = vmul.f32 %v8385_v17, %v7803_v28  ;;  %v11105_v28 = vld [vmem:[#allocation74_spill] sm:$0xff] }
 0x522   :  { %11057 = vst [vmem:[#allocation49_spill] sm:$0xff] %v8629_v56  ;;  %3347 = vperm.xlu1 %6882, %v2364_v12   ;;  %3344 = vperm.xlu0 %6881, %v2363_v14   ;;  %v2367_v56 = vmul.f32 %v8385_v17, %v11062_v26  ;;  %v11065_v26 = vld [vmem:[#allocation54_spill] sm:$0xff] }
 0x525   :  { %v8637_v45 = vpop.permute.xlu1 %3167  ;;  %v8639_v20 = vpop.permute.xlu0 %3164 }
 0x526   :  { %11060 = vst [vmem:[#allocation68_spill] sm:$0xff] %v8637_v45  ;;  %11061 = vst [vmem:[#allocation70_spill] sm:$0xff] %v8639_v20  ;;  %3353 = vperm.xlu1 %6882, %v2366_v18   ;;  %3350 = vperm.xlu0 %6881, %v2365_v35   ;;  %v2369_v45 = vmul.f32 %v8385_v17, %v11063_v37  ;;  %v2371_v20 = vmul.f32 %v8385_v17, %v11065_v26  ;;  %v11068_v37 = vld [vmem:[#allocation55_spill] sm:$0xff]  ;;  %v11071_v26 = vld [vmem:[#allocation56_spill] sm:$0xff] }
 0x529   :  { %v8645_v12 = vpop.permute.xlu1 %3173  ;;  %v8647_v14 = vpop.permute.xlu0 %3170 }
 0x52a   :  { %3359 = vperm.xlu1 %6882, %v2368_v50   ;;  %3356 = vperm.xlu0 %6881, %v2367_v56  }
 0x52d   :  { %v8653_v18 = vpop.permute.xlu1 %3179  ;;  %v8655_v35 = vpop.permute.xlu0 %3176 }
 0x52e   :  { %11064 = vst [vmem:[#allocation51_spill] sm:$0xff] %v8653_v18  ;;  %3365 = vperm.xlu1 %6882, %v2370_v53   ;;  %3362 = vperm.xlu0 %6881, %v2369_v45   ;;  %v2373_v18 = vmul.f32 %v8385_v17, %v11068_v37  ;;  %v11072_v37 = vld [vmem:[#allocation57_spill] sm:$0xff] }
 0x531   :  { %v8661_v50 = vpop.permute.xlu1 %3185  ;;  %v8663_v56 = vpop.permute.xlu0 %3182 }
 0x532   :  { %11066 = vst [vmem:[#allocation52_spill] sm:$0xff] %v8661_v50  ;;  %11067 = vst [vmem:[#allocation53_spill] sm:$0xff] %v8663_v56  ;;  %3371 = vperm.xlu1 %6882, %v2372_v31   ;;  %3368 = vperm.xlu0 %6881, %v2371_v20   ;;  %v2375_v50 = vmul.f32 %v8385_v17, %v11071_v26  ;;  %v11075_v26 = vld [vmem:[#allocation58_spill] sm:$0xff] }
 0x535   :  { %v8669_v53 = vpop.permute.xlu1 %3191  ;;  %v8671_v45 = vpop.permute.xlu0 %3188 }
 0x536   :  { %11069 = vst [vmem:[#allocation54_spill] sm:$0xff] %v8669_v53  ;;  %11070 = vst [vmem:[#allocation55_spill] sm:$0xff] %v8671_v45  ;;  %3377 = vperm.xlu1 %6882, %v2374_v42   ;;  %3374 = vperm.xlu0 %6881, %v2373_v18   ;;  %v2377_v53 = vmul.f32 %v8385_v17, %v11072_v37  ;;  %v2379_v45 = vmul.f32 %v8385_v17, %v11075_v26  ;;  %v11078_v37 = vld [vmem:[#allocation60_spill] sm:$0xff]  ;;  %v11081_v26 = vld [vmem:[#allocation61_spill] sm:$0xff] }
 0x539   :  { %v8677_v31 = vpop.permute.xlu1 %3197  ;;  %v8679_v20 = vpop.permute.xlu0 %3194 }
 0x53a   :  { %3383 = vperm.xlu1 %6882, %v2376_v41   ;;  %3380 = vperm.xlu0 %6881, %v2375_v50  }
 0x53d   :  { %v8685_v42 = vpop.permute.xlu1 %3203  ;;  %v8687_v18 = vpop.permute.xlu0 %3200 }
 0x53e   :  { %11073 = vst [vmem:[#allocation56_spill] sm:$0xff] %v8685_v42  ;;  %11074 = vst [vmem:[#allocation57_spill] sm:$0xff] %v8687_v18  ;;  %3389 = vperm.xlu1 %6882, %v2378_v21   ;;  %3386 = vperm.xlu0 %6881, %v2377_v53   ;;  %v2381_v42 = vmul.f32 %v8385_v17, %v11078_v37  ;;  %v11084_v37 = vld [vmem:[#allocation64_spill] sm:$0xff] }
 0x541   :  { %v8693_v41 = vpop.permute.xlu1 %3209  ;;  %v8695_v50 = vpop.permute.xlu0 %3206 }
 0x542   :  { %11076 = vst [vmem:[#allocation58_spill] sm:$0xff] %v8693_v41  ;;  %11077 = vst [vmem:[#allocation183_spill] sm:$0xff] %v8695_v50  ;;  %3395 = vperm.xlu1 %6882, %v2380_v57   ;;  %3392 = vperm.xlu0 %6881, %v2379_v45   ;;  %v2383_v41 = vmul.f32 %v8385_v17, %v11081_v26  ;;  %v11087_v26 = vld [vmem:[#allocation66_spill] sm:$0xff] }
 0x545   :  { %v8701_v21 = vpop.permute.xlu1 %3215  ;;  %v8703_v53 = vpop.permute.xlu0 %3212 }
 0x546   :  { %11079 = vst [vmem:[#allocation60_spill] sm:$0xff] %v8701_v21  ;;  %11080 = vst [vmem:[#allocation184_spill] sm:$0xff] %v8703_v53  ;;  %3401 = vperm.xlu1 %6882, %v2382_v33   ;;  %3398 = vperm.xlu0 %6881, %v2381_v42   ;;  %v2385_v21 = vmul.f32 %v8385_v17, %v11084_v37  ;;  %v2387_v53 = vmul.f32 %v8385_v17, %v11087_v26  ;;  %v11090_v37 = vld [vmem:[#allocation69_spill] sm:$0xff]  ;;  %v11093_v26 = vld [vmem:[#allocation71_spill] sm:$0xff] }
 0x549   :  { %v8709_v57 = vpop.permute.xlu1 %3221  ;;  %v8711_v45 = vpop.permute.xlu0 %3218 }
 0x54a   :  { %11082 = vst [vmem:[#allocation61_spill] sm:$0xff] %v8709_v57  ;;  %11083 = vst [vmem:[#allocation185_spill] sm:$0xff] %v8711_v45  ;;  %3407 = vperm.xlu1 %6882, %v2384_v44   ;;  %3404 = vperm.xlu0 %6881, %v2383_v41  }
 0x54d   :  { %v8717_v33 = vpop.permute.xlu1 %3227  ;;  %v8719_v42 = vpop.permute.xlu0 %3224 }
 0x54e   :  { %11085 = vst [vmem:[#allocation64_spill] sm:$0xff] %v8717_v33  ;;  %11086 = vst [vmem:[#allocation186_spill] sm:$0xff] %v8719_v42  ;;  %3413 = vperm.xlu1 %6882, %v2386_v39   ;;  %3410 = vperm.xlu0 %6881, %v2385_v21   ;;  %v2389_v33 = vmul.f32 %v8385_v17, %v11090_v37  ;;  %v11096_v37 = vld [vmem:[#allocation72_spill] sm:$0xff] }
 0x551   :  { %v8725_v44 = vpop.permute.xlu1 %3233  ;;  %v8727_v41 = vpop.permute.xlu0 %3230 }
 0x552   :  { %11088 = vst [vmem:[#allocation66_spill] sm:$0xff] %v8725_v44  ;;  %11089 = vst [vmem:[#allocation187_spill] sm:$0xff] %v8727_v41  ;;  %3419 = vperm.xlu1 %6882, %v2388_v1   ;;  %3416 = vperm.xlu0 %6881, %v2387_v53   ;;  %v2391_v44 = vmul.f32 %v8385_v17, %v11093_v26  ;;  %v2395_v26 = vmul.f32 %v8385_v17, %v10877_v40 }
 0x553   :  { %v2399_v40 = vmul.f32 %v8385_v17, %v7746_v51  ;;  %v2404_v51 = vmul.f32 %v8385_v17, %v11108_v62  ;;  %v11116_v62 = vld [vmem:[#allocation85_spill] sm:$0xff] }
 0x555   :  { %v8733_v39 = vpop.permute.xlu1 %3239  ;;  %v8735_v21 = vpop.permute.xlu0 %3236 }
 0x556   :  { %11091 = vst [vmem:[#allocation69_spill] sm:$0xff] %v8733_v39  ;;  %11092 = vst [vmem:[#allocation188_spill] sm:$0xff] %v8735_v21  ;;  %3425 = vperm.xlu1 %6882, %v2390_v0   ;;  %3422 = vperm.xlu0 %6881, %v2389_v33   ;;  %v2393_v21 = vmul.f32 %v8385_v17, %v11096_v37  ;;  %v2397_v37 = vmul.f32 %v8385_v17, %v7737_v60  ;;  %v11125_v39 = vld [vmem:[#allocation79_spill] sm:$0xff] }
 0x557   :  { %v2402_v60 = vmul.f32 %v8385_v17, %v7813_v32  ;;  %v11112_v32 = vld [vmem:[#allocation84_spill] sm:$0xff] }
 0x559   :  { %v8741_v1 = vpop.permute.xlu1 %3245  ;;  %v8743_v53 = vpop.permute.xlu0 %3242 }
 0x55a   :  { %11094 = vst [vmem:[#allocation71_spill] sm:$0xff] %v8741_v1  ;;  %11095 = vst [vmem:[#allocation189_spill] sm:$0xff] %v8743_v53  ;;  %3431 = vperm.xlu1 %6882, %v2392_v6   ;;  %3428 = vperm.xlu0 %6881, %v2391_v44   ;;  %v11171_v1 = vld [vmem:[#allocation112_spill] sm:$0xff] }
 0x55d   :  { %v8749_v0 = vpop.permute.xlu1 %3251  ;;  %v8751_v33 = vpop.permute.xlu0 %3248 }
 0x55e   :  { %11097 = vst [vmem:[#allocation72_spill] sm:$0xff] %v8749_v0  ;;  %11098 = vst [vmem:[#allocation190_spill] sm:$0xff] %v8751_v33  ;;  %3437 = vperm.xlu1 %6882, %v2394_v30   ;;  %3434 = vperm.xlu0 %6881, %v2393_v21   ;;  %v2411_v0 = vmul.f32 %v8385_v17, %v11125_v39  ;;  %v11163_v33 = vld [vmem:[#allocation114_spill] sm:$0xff] }
 0x561   :  { %v8757_v6 = vpop.permute.xlu1 %3257  ;;  %v8759_v44 = vpop.permute.xlu0 %3254 }
 0x562   :  { %11099 = vst [vmem:[#allocation191_spill] sm:$0xff] %v8757_v6  ;;  %11100 = vst [vmem:[#allocation192_spill] sm:$0xff] %v8759_v44  ;;  %3443 = vperm.xlu1 %6882, %v2396_v23   ;;  %3440 = vperm.xlu0 %6881, %v2395_v26  }
 0x565   :  { %v8765_v30 = vpop.permute.xlu1 %3263  ;;  %v8767_v21 = vpop.permute.xlu0 %3260 }
 0x566   :  { %11101 = vst [vmem:[#allocation193_spill] sm:$0xff] %v8765_v30  ;;  %11102 = vst [vmem:[#allocation194_spill] sm:$0xff] %v8767_v21  ;;  %3449 = vperm.xlu1 %6882, %v2398_v36   ;;  %3446 = vperm.xlu0 %6881, %v2397_v37   ;;  %v2401_v30 = vmul.f32 %v8385_v17, %v11105_v28  ;;  %v11109_v21 = vld [vmem:[#allocation75_spill] sm:$0xff]  ;;  %v2406_v28 = vmul.f32 %v8385_v17, %v11112_v32 }
 0x567   :  { %v2403_v6 = vmul.f32 %v8385_v17, %v11109_v21  ;;  %v2408_v21 = vmul.f32 %v8385_v17, %v11116_v62  ;;  %v11120_v32 = vld [vmem:[#allocation87_spill] sm:$0xff]  ;;  %v11124_v62 = vld [vmem:[#allocation89_spill] sm:$0xff] }
 0x569   :  { %v8773_v23 = vpop.permute.xlu1 %3269  ;;  %v8775_v26 = vpop.permute.xlu0 %3266 }
 0x56a   :  { %11103 = vst [vmem:[#allocation195_spill] sm:$0xff] %v8773_v23  ;;  %11104 = vst [vmem:[#allocation196_spill] sm:$0xff] %v8775_v26  ;;  %3455 = vperm.xlu1 %6882, %v2400_v8   ;;  %3452 = vperm.xlu0 %6881, %v2399_v40  }
 0x56d   :  { %v8781_v36 = vpop.permute.xlu1 %3275  ;;  %v8783_v37 = vpop.permute.xlu0 %3272 }
 0x56e   :  { %11106 = vst [vmem:[#allocation74_spill] sm:$0xff] %v8781_v36  ;;  %11107 = vst [vmem:[#allocation197_spill] sm:$0xff] %v8783_v37  ;;  %3461 = vperm.xlu1 %6882, %v2402_v60   ;;  %3458 = vperm.xlu0 %6881, %v2401_v30   ;;  %v11113_v36 = vld [vmem:[#allocation76_spill] sm:$0xff] }
 0x56f   :  { %v2405_v44 = vmul.f32 %v8385_v17, %v11113_v36  ;;  %v2410_v36 = vmul.f32 %v8385_v17, %v11120_v32  ;;  %v11128_v32 = vld [vmem:[#allocation90_spill] sm:$0xff] }
 0x571   :  { %v8789_v8 = vpop.permute.xlu1 %3281  ;;  %v8791_v40 = vpop.permute.xlu0 %3278 }
 0x572   :  { %11110 = vst [vmem:[#allocation82_spill] sm:$0xff] %v8789_v8  ;;  %11111 = vst [vmem:[#allocation75_spill] sm:$0xff] %v8791_v40  ;;  %3467 = vperm.xlu1 %6882, %v2404_v51   ;;  %3464 = vperm.xlu0 %6881, %v2403_v6   ;;  %v11117_v8 = vld [vmem:[#allocation77_spill] sm:$0xff] }
 0x573   :  { %v2407_v40 = vmul.f32 %v8385_v17, %v11117_v8  ;;  %v2412_v8 = vmul.f32 %v8385_v17, %v11124_v62  ;;  %v11132_v62 = vld [vmem:[#allocation92_spill] sm:$0xff] }
 0x574   :  { %v2416_v39 = vmul.f32 %v8385_v17, %v11132_v62  ;;  %v11140_v62 = vld [vmem:[#allocation95_spill] sm:$0xff] }
 0x575   :  { %v8797_v60 = vpop.permute.xlu1 %3287  ;;  %v8799_v30 = vpop.permute.xlu0 %3284 }
 0x576   :  { %11114 = vst [vmem:[#allocation84_spill] sm:$0xff] %v8797_v60  ;;  %11115 = vst [vmem:[#allocation76_spill] sm:$0xff] %v8799_v30  ;;  %3473 = vperm.xlu1 %6882, %v2406_v28   ;;  %3470 = vperm.xlu0 %6881, %v2405_v44   ;;  %v11121_v60 = vld [vmem:[#allocation78_spill] sm:$0xff] }
 0x577   :  { %v2409_v30 = vmul.f32 %v8385_v17, %v11121_v60  ;;  %v2414_v60 = vmul.f32 %v8385_v17, %v11128_v32  ;;  %v11136_v32 = vld [vmem:[#allocation94_spill] sm:$0xff] }
 0x579   :  { %v8805_v51 = vpop.permute.xlu1 %3293  ;;  %v8807_v6 = vpop.permute.xlu0 %3290 }
 0x57a   :  { %11118 = vst [vmem:[#allocation85_spill] sm:$0xff] %v8805_v51  ;;  %11119 = vst [vmem:[#allocation77_spill] sm:$0xff] %v8807_v6  ;;  %3479 = vperm.xlu1 %6882, %v2408_v21   ;;  %3476 = vperm.xlu0 %6881, %v2407_v40   ;;  %v11151_v6 = vld [vmem:[#allocation100_spill] sm:$0xff]  ;;  %v11152_v51 = vld [vmem:[#allocation6_spill] sm:$0xff] }
 0x57b   :  { %v3636_v53 = vrot.slane %v11163_v33, %v11152_v51  ;;  %v8955_v33 = vmul.f32 %v8385_v17, %v8027_v13  ;;  %v11169_v13 = vld [vmem:[#allocation109_spill] sm:$0xff] }
 0x57d   :  { %v8813_v28 = vpop.permute.xlu1 %3299  ;;  %v8815_v44 = vpop.permute.xlu0 %3296 }
 0x57e   :  { %11122 = vst [vmem:[#allocation87_spill] sm:$0xff] %v8813_v28  ;;  %11123 = vst [vmem:[#allocation78_spill] sm:$0xff] %v8815_v44  ;;  %3485 = vperm.xlu1 %6882, %v2410_v36   ;;  %3482 = vperm.xlu0 %6881, %v2409_v30   ;;  %v11129_v28 = vld [vmem:[#allocation80_spill] sm:$0xff] }
 0x57f   :  { %v2413_v44 = vmul.f32 %v8385_v17, %v11129_v28  ;;  %v2418_v28 = vmul.f32 %v8385_v17, %v11136_v32  ;;  %v11144_v32 = vld [vmem:[#allocation97_spill] sm:$0xff] }
 0x581   :  { %v8821_v21 = vpop.permute.xlu1 %3305  ;;  %v8823_v40 = vpop.permute.xlu0 %3302 }
 0x582   :  { %11126 = vst [vmem:[#allocation89_spill] sm:$0xff] %v8821_v21  ;;  %11127 = vst [vmem:[#allocation79_spill] sm:$0xff] %v8823_v40  ;;  %3491 = vperm.xlu1 %6882, %v2412_v8   ;;  %3488 = vperm.xlu0 %6881, %v2411_v0   ;;  %v11133_v21 = vld [vmem:[#allocation81_spill] sm:$0xff] }
 0x583   :  { %v2415_v40 = vmul.f32 %v8385_v17, %v11133_v21  ;;  %v2420_v21 = vmul.f32 %v8385_v17, %v11140_v62  ;;  %v11148_v62 = vld [vmem:[#allocation91_spill] sm:$0xff] }
 0x585   :  { %v8829_v36 = vpop.permute.xlu1 %3311  ;;  %v8831_v30 = vpop.permute.xlu0 %3308 }
 0x586   :  { %11130 = vst [vmem:[#allocation90_spill] sm:$0xff] %v8829_v36  ;;  %11131 = vst [vmem:[#allocation80_spill] sm:$0xff] %v8831_v30  ;;  %3497 = vperm.xlu1 %6882, %v2414_v60   ;;  %3494 = vperm.xlu0 %6881, %v2413_v44   ;;  %v11137_v36 = vld [vmem:[#allocation83_spill] sm:$0xff] }
 0x587   :  { %v2417_v30 = vmul.f32 %v8385_v17, %v11137_v36  ;;  %v2422_v36 = vmul.f32 %v8385_v17, %v11144_v32  ;;  %v2426_v32 = vmul.f32 %v8385_v17, %v11151_v6  ;;  %v11157_v6 = vld [vmem:[#allocation108_spill] sm:$0xff] }
 0x588   :  { %v3612_v26 = vrot.slane %v11157_v6, %v11152_v51 }
 0x589   :  { %v8837_v8 = vpop.permute.xlu1 %3317  ;;  %v8839_v0 = vpop.permute.xlu0 %3314 }
 0x58a   :  { %11134 = vst [vmem:[#allocation92_spill] sm:$0xff] %v8837_v8  ;;  %11135 = vst [vmem:[#allocation81_spill] sm:$0xff] %v8839_v0  ;;  %3503 = vperm.xlu1 %6882, %v2416_v39   ;;  %3500 = vperm.xlu0 %6881, %v2415_v40   ;;  %v11141_v8 = vld [vmem:[#allocation86_spill] sm:$0xff] }
 0x58b   :  { %v2419_v0 = vmul.f32 %v8385_v17, %v11141_v8  ;;  %v2423_v8 = vmul.f32 %v8385_v17, %v11148_v62  ;;  %v11156_v62 = vld [vmem:[#allocation102_spill] sm:$0xff] }
 0x58d   :  { %v8845_v60 = vpop.permute.xlu1 %3323  ;;  %v8847_v44 = vpop.permute.xlu0 %3320 }
 0x58e   :  { %11138 = vst [vmem:[#allocation94_spill] sm:$0xff] %v8845_v60  ;;  %11139 = vst [vmem:[#allocation83_spill] sm:$0xff] %v8847_v44  ;;  %3509 = vperm.xlu1 %6882, %v2418_v28   ;;  %3506 = vperm.xlu0 %6881, %v2417_v30   ;;  %v11145_v60 = vld [vmem:[#allocation88_spill] sm:$0xff] }
 0x58f   :  { %v2421_v44 = vmul.f32 %v8385_v17, %v11145_v60  ;;  %v11153_v60 = vld [vmem:[#allocation50_spill] sm:$0xff] }
 0x590   :  { %v3608_v37 = vrot.slane %v11153_v60, %v11152_v51  ;;  %v8895_v60 = vmul.f32 %v8385_v17, %v10940_v7  ;;  %v8915_v7 = vmul.f32 %v8385_v17, %v7902_v49 }
 0x591   :  { %v8853_v39 = vpop.permute.xlu1 %3329  ;;  %v8855_v40 = vpop.permute.xlu0 %3326 }
 0x592   :  { %11142 = vst [vmem:[#allocation95_spill] sm:$0xff] %v8853_v39  ;;  %11143 = vst [vmem:[#allocation86_spill] sm:$0xff] %v8855_v40  ;;  %3515 = vperm.xlu1 %6882, %v2420_v21   ;;  %3512 = vperm.xlu0 %6881, %v2419_v0   ;;  %v11149_v39 = vld [vmem:[#allocation99_spill] sm:$0xff]  ;;  %v11150_v21 = vld [vmem:[#allocation93_spill] sm:$0xff] }
 0x593   :  { %v2424_v40 = vmul.f32 %v8385_v17, %v11149_v39  ;;  %v2425_v0 = vmul.f32 %v8385_v17, %v11150_v21  ;;  %v2428_v39 = vmul.f32 %v8385_v17, %v11156_v62  ;;  %v8885_v21 = vmul.f32 %v8385_v17, %v10936_v58 }
 0x594   :  { %v8903_v58 = vmul.f32 %v8385_v17, %v7995_v59  ;;  %v8907_v62 = vmul.f32 %v8385_v17, %v7900_v19  ;;  %v8923_v59 = vmul.f32 %v8385_v17, %v7904_v11  ;;  %v8927_v19 = vmul.f32 %v8385_v17, %v8017_v52 }
 0x595   :  { %v8861_v28 = vpop.permute.xlu1 %3335  ;;  %v8863_v30 = vpop.permute.xlu0 %3332 }
 0x596   :  { %11146 = vst [vmem:[#allocation97_spill] sm:$0xff] %v8861_v28  ;;  %11147 = vst [vmem:[#allocation88_spill] sm:$0xff] %v8863_v30  ;;  %3521 = vperm.xlu1 %6882, %v2422_v36   ;;  %3518 = vperm.xlu0 %6881, %v2421_v44   ;;  %v11154_v28 = vld [vmem:[#allocation106_spill] sm:$0xff]  ;;  %v2427_v44 = vmul.f32 %v8385_v17, %v10932_v25  ;;  %v8899_v25 = vmul.f32 %v8385_v17, %v10939_v48 }
 0x597   :  { %v3604_v30 = vrot.slane %v11154_v28, %v11152_v51  ;;  %v2430_v28 = vmul.f32 %v8385_v17, %v10935_v9  ;;  %v8911_v9 = vmul.f32 %v8385_v17, %v8001_v38  ;;  %v8919_v48 = vmul.f32 %v8385_v17, %v8011_v46  ;;  %v11159_v38 = vld [vmem:[#allocation107_spill] sm:$0xff]  ;;  %v11161_v46 = vld [vmem:[#allocation110_spill] sm:$0xff] }
 0x599   :  { %v8877_v36 = vpop.permute.xlu1 %3341  ;;  %v8889_v23 = vpop.permute.xlu0 %3338 }
 0x59a   :  { %11155 = vst [vmem:[#allocation91_spill] sm:$0xff] %v8877_v36  ;;  %11158 = vst [vmem:[#allocation99_spill] sm:$0xff] %v8889_v23  ;;  %3527 = vperm.xlu1 %6882, %v2424_v40   ;;  %3524 = vperm.xlu0 %6881, %v2423_v8   ;;  %v4753_v40 = vsel %vm547_vm1, %v3608_v37, %v3604_v30  ;;  %v3616_v8 = vrot.slane %v11159_v38, %v11152_v51  ;;  %v11162_v36 = vld [vmem:[#allocation113_spill] sm:$0xff]  ;;  %v11165_v30 = vld [vmem:[#allocation116_spill] sm:$0xff] }
 0x59b   :  { %v4754_v49 = vsel %vm549_vm2, %v3612_v26, %v4753_v40  ;;  %v3620_v23 = vrot.slane %v11161_v46, %v11152_v51  ;;  %v3640_v11 = vrot.slane %v11162_v36, %v11152_v51  ;;  %v8945_v37 = vmul.f32 %v8385_v17, %v7906_v2  ;;  %v11166_v26 = vld [vmem:[#allocation121_spill] sm:$0xff]  ;;  %v11167_v46 = vld [vmem:[#allocation122_spill] sm:$0xff]  ;;  %v11168_v36 = vld [vmem:[#allocation124_spill] sm:$0xff] }
 0x59c   :  { %v3644_v38 = vrot.slane %v11165_v30, %v11152_v51  ;;  %v3672_v40 = vrot.slane %v11166_v26, %v11152_v51  ;;  %v8963_v2 = vmul.f32 %v8385_v17, %v8035_v61  ;;  %v3676_v30 = vrot.slane %v11168_v36, %v11152_v51 }
 0x59d   :  { %v8932_v6 = vpop.permute.xlu1 %3347  ;;  %v8941_v52 = vpop.permute.xlu0 %3344  ;;  %v8969_v26 = vmul.f32 %v8385_v17, %v7910_v27  ;;  %v3628_v36 = vrot.slane %v11171_v1, %v11152_v51  ;;  %v4760_v41 = vsel %vm547_vm1, %v3640_v11, %v3636_v53  ;;  %v11172_v27 = vld [vmem:[#allocation115_spill] sm:$0xff]  ;;  %v11176_v53 = vld [vmem:[#allocation126_spill] sm:$0xff] }
 0x59e   :  { %11160 = vst [vmem:[#allocation93_spill] sm:$0xff] %v8932_v6  ;;  %11164 = vst [vmem:[#allocation100_spill] sm:$0xff] %v8941_v52  ;;  %3533 = vperm.xlu1 %6882, %v2426_v32   ;;  %v3668_v6 = vrot.slane %v11167_v46, %v11152_v51  ;;  %3530 = vperm.xlu0 %6881, %v2425_v0   ;;  %v8959_v32 = vmul.f32 %v8385_v17, %v7908_v54 }
 0x59f   :  { %v8973_v0 = vmul.f32 %v8385_v17, %v8043_v16  ;;  %v3624_v46 = vrot.slane %v11169_v13, %v11152_v51  ;;  %v4755_v54 = vsel %vm551_vm3, %v3616_v8, %v4754_v49  ;;  %v3648_v42 = vrot.slane %v11172_v27, %v11152_v51  ;;  %v11174_v13 = vld [vmem:[#allocation118_spill] sm:$0xff]  ;;  %v11177_v27 = vld [vmem:[#allocation129_spill] sm:$0xff] }
 0x5a0   :  { %v4756_v61 = vsel %vm553_vm4, %v3620_v23, %v4755_v54  ;;  %v4761_v16 = vsel %vm549_vm2, %v3644_v38, %v4760_v41  ;;  %v3652_v8 = vrot.slane %v11174_v13, %v11152_v51  ;;  %v4767_v49 = vsel %vm547_vm1, %v3672_v40, %v3668_v6  ;;  %v11175_v23 = vld [vmem:[#allocation123_spill] sm:$0xff] }
 0x5a1   :  { %v8978_v52 = vpop.permute.xlu1 %3353  ;;  %v8986_v45 = vpop.permute.xlu0 %3350  ;;  %v3680_v54 = vrot.slane %v11175_v23, %v11152_v51  ;;  %v4768_v1 = vsel %vm549_vm2, %v3676_v30, %v4767_v49  ;;  %v3684_v11 = vrot.slane %v11176_v53, %v11152_v51  ;;  %v9003_v38 = vmul.f32 %v8385_v17, %v7912_v10  ;;  %v11181_v49 = vld [vmem:[#allocation111_spill] sm:$0xff]  ;;  %v11182_v53 = vld [vmem:[#allocation117_spill] sm:$0xff] }
 0x5a2   :  { %11170 = vst [vmem:[#allocation50_spill] sm:$0xff] %v8978_v52  ;;  %11173 = vst [vmem:[#allocation106_spill] sm:$0xff] %v8986_v45  ;;  %3539 = vperm.xlu1 %6882, %v2428_v39   ;;  %3536 = vperm.xlu0 %6881, %v2427_v44   ;;  %v3704_v52 = vrot.slane %v11177_v27, %v11152_v51  ;;  %v11178_v39 = vld [vmem:[#allocation130_spill] sm:$0xff]  ;;  %v9007_v6 = vmul.f32 %v8385_v17, %v8051_v43  ;;  %v11179_v44 = vld [vmem:[#allocation132_spill] sm:$0xff] }
 0x5a3   :  { %v3700_v41 = vrot.slane %v11178_v39, %v11152_v51  ;;  %v3708_v40 = vrot.slane %v11179_v44, %v11152_v51  ;;  %v4757_v13 = vsel %vm555_vm5, %v3624_v46, %v4756_v61  ;;  %v3632_v23 = vrot.slane %v11181_v49, %v11152_v51  ;;  %v11184_v44 = vld [vmem:[#allocation120_spill] sm:$0xff]  ;;  %v11185_v46 = vld [vmem:[#allocation125_spill] sm:$0xff] }
 0x5a4   :  { %v3656_v27 = vrot.slane %v11182_v53, %v11152_v51  ;;  %v4762_v10 = vsel %vm551_vm3, %v3648_v42, %v4761_v16  ;;  %v4758_v43 = vsel %vm557_vm6, %v3628_v36, %v4757_v13  ;;  %v3688_v61 = vrot.slane %v11185_v46, %v11152_v51  ;;  %v11186_v42 = vld [vmem:[#allocation128_spill] sm:$0xff]  ;;  %v11187_v36 = vld [vmem:[#allocation131_spill] sm:$0xff] }
 0x5a5   :  { %v9011_v30 = vpop.permute.xlu1 %3359  ;;  %v9019_v39 = vpop.permute.xlu0 %3356  ;;  %v4763_v45 = vsel %vm553_vm4, %v3652_v8, %v4762_v10  ;;  %v4769_v49 = vsel %vm551_vm3, %v3680_v54, %v4768_v1  ;;  %v3692_v16 = vrot.slane %v11186_v42, %v11152_v51  ;;  %v3712_v8 = vrot.slane %v11187_v36, %v11152_v51  ;;  %v11188_v10 = vld [vmem:[#allocation133_spill] sm:$0xff]  ;;  %v11189_v46 = vld [vmem:[#allocation136_spill] sm:$0xff] }
 0x5a6   :  { %11180 = vst [vmem:[#allocation102_spill] sm:$0xff] %v9011_v30  ;;  %11183 = vst [vmem:[#allocation108_spill] sm:$0xff] %v9019_v39  ;;  %3545 = vperm.xlu1 %6882, %v2430_v28   ;;  %v3660_v30 = vrot.slane %v11184_v44, %v11152_v51  ;;  %3542 = vperm.xlu0 %6881, %v8885_v21   ;;  %v4770_v53 = vsel %vm553_vm4, %v3684_v11, %v4769_v49  ;;  %v11190_v21 = vld [vmem:[#allocation137_spill] sm:$0xff]  ;;  %v11192_v49 = vld [vmem:[#allocation139_spill] sm:$0xff] }
 0x5a7   :  { %v4774_v28 = vsel %vm547_vm1, %v3704_v52, %v3700_v41  ;;  %v3716_v44 = vrot.slane %v11188_v10, %v11152_v51  ;;  %v3736_v54 = vrot.slane %v11189_v46, %v11152_v51  ;;  %v3732_v1 = vrot.slane %v11190_v21, %v11152_v51  ;;  %v11193_v52 = vld [vmem:[#allocation144_spill] sm:$0xff]  ;;  %v11194_v36 = vld [vmem:[#allocation145_spill] sm:$0xff]  ;;  %v11196_v46 = vld [vmem:[#allocation119_spill] sm:$0xff] }
 0x5a8   :  { %v4775_v13 = vsel %vm549_vm2, %v3708_v40, %v4774_v28  ;;  %v3740_v42 = vrot.slane %v11192_v49, %v11152_v51  ;;  %v3768_v41 = vrot.slane %v11193_v52, %v11152_v51  ;;  %v3764_v40 = vrot.slane %v11194_v36, %v11152_v51  ;;  %v11197_v39 = vld [vmem:[#allocation147_spill] sm:$0xff]  ;;  %v11199_v21 = vld [vmem:[#allocation73_spill] sm:$0xff] }
 0x5a9   :  { %v9042_v11 = vpop.permute.xlu1 %3365  ;;  %v9050_v28 = vpop.permute.xlu0 %3362  ;;  %v9054_v10 = vsel %vm559_vm7, %v3632_v23, %v4758_v43  ;;  %v4771_v49 = vsel %vm555_vm5, %v3688_v61, %v4770_v53  ;;  %v4764_v52 = vsel %vm555_vm5, %v3656_v27, %v4763_v45  ;;  %v11198_v36 = vld [vmem:[#allocation127_spill] sm:$0xff]  ;;  %v4781_v61 = vsel %vm547_vm1, %v3736_v54, %v3732_v1  ;;  %v11200_v45 = vld [vmem:[#allocation138_spill] sm:$0xff]  ;;  %v11205_v54 = vld [vmem:[#allocation149_spill] sm:$0xff] }
 0x5aa   :  { %11191 = vst [vmem:[#allocation107_spill] sm:$0xff] %v9042_v11  ;;  %11195 = vst [vmem:[#allocation110_spill] sm:$0xff] %v9050_v28  ;;  %3551 = vperm.xlu1 %6882, %v8899_v25   ;;  %v3772_v11 = vrot.slane %v11197_v39, %v11152_v51  ;;  %3548 = vperm.xlu0 %6881, %v8895_v60   ;;  %v4776_v25 = vsel %vm551_vm3, %v3712_v8, %v4775_v13  ;;  %v11212_v28 = vld [vmem:[#allocation135_spill] sm:$0xff] }
 0x5ab   :  { %v9067_v23 = vsel %vm557_vm6, %v3692_v16, %v4771_v49  ;;  %v9070_v43 = vsel %vm557_vm6, %v3660_v30, %v4764_v52  ;;  %v3720_v39 = vrot.slane %v11199_v21, %v11152_v51  ;;  %v4777_v60 = vsel %vm553_vm4, %v3716_v44, %v4776_v25  ;;  %v11202_v16 = vld [vmem:[#allocation141_spill] sm:$0xff]  ;;  %v11203_v49 = vld [vmem:[#allocation146_spill] sm:$0xff]  ;;  %v11206_v25 = vld [vmem:[#allocation152_spill] sm:$0xff] }
 0x5ac   :  { %v3744_v27 = vrot.slane %v11200_v45, %v11152_v51  ;;  %v4782_v8 = vsel %vm549_vm2, %v3740_v42, %v4781_v61  ;;  %v3748_v13 = vrot.slane %v11202_v16, %v11152_v51  ;;  %v4788_v30 = vsel %vm547_vm1, %v3768_v41, %v3764_v40  ;;  %v11207_v61 = vld [vmem:[#allocation153_spill] sm:$0xff]  ;;  %v11208_v41 = vld [vmem:[#allocation134_spill] sm:$0xff]  ;;  %v11209_v16 = vld [vmem:[#allocation155_spill] sm:$0xff] }
 0x5ad   :  { %v9078_v53 = vpop.permute.xlu1 %3371  ;;  %v3776_v52 = vrot.slane %v11203_v49, %v11152_v51  ;;  %v9086_v21 = vpop.permute.xlu0 %3368  ;;  %v4789_v44 = vsel %vm549_vm2, %v3772_v11, %v4788_v30  ;;  %v3780_v1 = vrot.slane %v11205_v54, %v11152_v51  ;;  %v3800_v42 = vrot.slane %v11206_v25, %v11152_v51  ;;  %v11211_v30 = vld [vmem:[#allocation161_spill] sm:$0xff] }
 0x5ae   :  { %11201 = vst [vmem:[#allocation113_spill] sm:$0xff] %v9078_v53  ;;  %11204 = vst [vmem:[#allocation114_spill] sm:$0xff] %v9086_v21  ;;  %3557 = vperm.xlu1 %6882, %v8907_v62   ;;  %v3796_v45 = vrot.slane %v11207_v61, %v11152_v51  ;;  %3554 = vperm.xlu0 %6881, %v8903_v58   ;;  %v3728_v40 = vrot.slane %v11208_v41, %v11152_v51  ;;  %v11210_v62 = vld [vmem:[#allocation160_spill] sm:$0xff]  ;;  %v11214_v21 = vld [vmem:[#allocation163_spill] sm:$0xff] }
 0x5af   :  { %v3804_v49 = vrot.slane %v11209_v16, %v11152_v51  ;;  %v3832_v11 = vrot.slane %v11210_v62, %v11152_v51  ;;  %v3828_v54 = vrot.slane %v11211_v30, %v11152_v51  ;;  %v3724_v25 = vrot.slane %v11212_v28, %v11152_v51  ;;  %v11213_v53 = vld [vmem:[#allocation140_spill] sm:$0xff]  ;;  %v11215_v62 = vld [vmem:[#allocation143_spill] sm:$0xff] }
 0x5b0   :  { %v3752_v61 = vrot.slane %v11213_v53, %v11152_v51  ;;  %v4783_v58 = vsel %vm551_vm3, %v3744_v27, %v4782_v8  ;;  %v3836_v41 = vrot.slane %v11214_v21, %v11152_v51  ;;  %v3756_v50 = vrot.slane %v11215_v62, %v11152_v51  ;;  %v11216_v30 = vld [vmem:[#allocation148_spill] sm:$0xff]  ;;  %v11217_v53 = vld [vmem:[#allocation151_spill] sm:$0xff] }
 0x5b1   :  { %v9112_v57 = vpop.permute.xlu1 %3377  ;;  %v4784_v16 = vsel %vm553_vm4, %v3748_v13, %v4783_v58  ;;  %v3784_v56 = vrot.slane %v11216_v30, %v11152_v51  ;;  %v4790_v28 = vsel %vm551_vm3, %v3776_v52, %v4789_v44  ;;  %v9120_v18 = vpop.permute.xlu0 %3374  ;;  %v3788_v8 = vrot.slane %v11217_v53, %v11152_v51  ;;  %v11218_v13 = vld [vmem:[#allocation154_spill] sm:$0xff]  ;;  %v11219_v52 = vld [vmem:[#allocation157_spill] sm:$0xff]  ;;  %v11221_v53 = vld [vmem:[#allocation164_spill] sm:$0xff] }
 0x5b2   :  { %3563 = vperm.xlu1 %6882, %v8915_v7   ;;  %v4791_v27 = vsel %vm553_vm4, %v3780_v1, %v4790_v28  ;;  %v4795_v21 = vsel %vm547_vm1, %v3800_v42, %v3796_v45  ;;  %v3808_v58 = vrot.slane %v11218_v13, %v11152_v51  ;;  %3560 = vperm.xlu0 %6881, %v8911_v9   ;;  %v11220_v7 = vld [vmem:[#allocation162_spill] sm:$0xff] }
 0x5b3   :  { %v4796_v62 = vsel %vm549_vm2, %v3804_v49, %v4795_v21  ;;  %v3812_v44 = vrot.slane %v11219_v52, %v11152_v51  ;;  %v4802_v30 = vsel %vm547_vm1, %v3832_v11, %v3828_v54  ;;  %v3840_v1 = vrot.slane %v11220_v7, %v11152_v51  ;;  %v11222_v49 = vld [vmem:[#allocation142_spill] sm:$0xff] }
 0x5b4   :  { %v4803_v28 = vsel %vm549_vm2, %v3836_v41, %v4802_v30  ;;  %v3844_v42 = vrot.slane %v11221_v53, %v11152_v51  ;;  %v4778_v13 = vsel %vm555_vm5, %v3720_v39, %v4777_v60  ;;  %v4785_v9 = vsel %vm555_vm5, %v3752_v61, %v4784_v16  ;;  %v11223_v30 = vld [vmem:[#allocation150_spill] sm:$0xff]  ;;  %v11224_v39 = vld [vmem:[#allocation156_spill] sm:$0xff] }
 0x5b5   :  { %v9139_v45 = vpop.permute.xlu1 %3383  ;;  %v3760_v21 = vrot.slane %v11222_v49, %v11152_v51  ;;  %v9145_v52 = vpop.permute.xlu0 %3380  ;;  %v4779_v11 = vsel %vm557_vm6, %v3724_v25, %v4778_v13  ;;  %v4786_v54 = vsel %vm557_vm6, %v3756_v50, %v4785_v9  ;;  %v4792_v41 = vsel %vm555_vm5, %v3784_v56, %v4791_v27  ;;  %v11225_v25 = vld [vmem:[#allocation159_spill] sm:$0xff]  ;;  %v11226_v50 = vld [vmem:[#allocation96_spill] sm:$0xff]  ;;  %v11227_v9 = vld [vmem:[#allocation98_spill] sm:$0xff] }
 0x5b6   :  { %3569 = vperm.xlu1 %6882, %v8923_v59   ;;  %v3792_v7 = vrot.slane %v11223_v30, %v11152_v51  ;;  %v3816_v60 = vrot.slane %v11224_v39, %v11152_v51  ;;  %v4797_v61 = vsel %vm551_vm3, %v3808_v58, %v4796_v62  ;;  %3566 = vperm.xlu0 %6881, %v8919_v48   ;;  %v11228_v58 = vld [vmem:[#allocation104_spill] sm:$0xff]  ;;  %v11230_v30 = vld [vmem:[#allocation166_spill] sm:$0xff] }
 0x5b7   :  { %v4793_v16 = vsel %vm557_vm6, %v3788_v8, %v4792_v41  ;;  %v4798_v59 = vsel %vm553_vm4, %v3812_v44, %v4797_v61  ;;  %v3820_v53 = vrot.slane %v11225_v25, %v11152_v51  ;;  %v3848_v56 = vrot.slane %v11226_v50, %v11152_v51  ;;  %v11229_v8 = vld [vmem:[#allocation101_spill] sm:$0xff]  ;;  %v11233_v50 = vld [vmem:[#allocation158_spill] sm:$0xff] }
 0x5b8   :  { %v4804_v27 = vsel %vm551_vm3, %v3840_v1, %v4803_v28  ;;  %v3852_v49 = vrot.slane %v11227_v9, %v11152_v51  ;;  %v3864_v48 = vrot.slane %v11228_v58, %v11152_v51  ;;  %v3860_v62 = vrot.slane %v11229_v8, %v11152_v51  ;;  %v11234_v9 = vld [vmem:[#allocation103_spill] sm:$0xff]  ;;  %v11238_v58 = vld [vmem:[#allocation173_spill] sm:$0xff]  ;;  %v11239_v8 = vld [vmem:[#allocation178_spill] sm:$0xff] }
 0x5b9   :  { %v4805_v13 = vsel %vm553_vm4, %v3844_v42, %v4804_v27  ;;  %v9171_v44 = vpop.permute.xlu1 %3389  ;;  %v9175_v41 = vmul.f32 %v8385_v17, %v7914_v24  ;;  %v3868_v1 = vrot.slane %v11230_v30, %v11152_v51  ;;  %v9179_v28 = vpop.permute.xlu0 %3386  ;;  %v9184_v42 = vsel %vm586_vm8, %v9054_v10, 0.0 }
 0x5ba   :  { %3575 = vperm.xlu1 %6882, %v8945_v37   ;;  %v11231_v39 = vrot.slane %v11196_v46, %v11152_v51  ;;  %3572 = vperm.xlu0 %6881, %v8927_v19   ;;  %v11232_v24 = vrot.slane %v11198_v36, %v11152_v51  ;;  %v4780_v37 = vsel %vm559_vm7, %v3728_v40, %v4779_v11  ;;  %v11235_v40 = vld [vmem:[#allocation165_spill] sm:$0xff] }
 0x5bb   :  { %v4787_v25 = vsel %vm559_vm7, %v3760_v21, %v4786_v54  ;;  %v4799_v10 = vsel %vm555_vm5, %v3816_v60, %v4798_v59  ;;  %v3824_v27 = vrot.slane %v11233_v50, %v11152_v51  ;;  %v4794_v46 = vsel %vm559_vm7, %v3792_v7, %v4793_v16  ;;  %v11236_v7 = vld [vmem:[#allocation168_spill] sm:$0xff] }
 0x5bc   :  { %v4766_v61 = vsel %vm559_vm7, %v11231_v39, %v9070_v43  ;;  %v4773_v17 = vsel %vm559_vm7, %v11232_v24, %v9067_v23  ;;  %v4800_v43 = vsel %vm557_vm6, %v3820_v53, %v4799_v10  ;;  %v4806_v19 = vsel %vm555_vm5, %v3848_v56, %v4805_v13  ;;  %v11237_v53 = vld [vmem:[#allocation171_spill] sm:$0xff] }
 0x5bd   :  { %v3856_v36 = vrot.slane %v11234_v9, %v11152_v51  ;;  %v4809_v23 = vsel %vm547_vm1, %v3864_v48, %v3860_v62  ;;  %v3872_v11 = vrot.slane %v11235_v40, %v11152_v51  ;;  %v9210_v21 = vpop.permute.xlu1 %3395  ;;  %v4807_v54 = vsel %vm557_vm6, %v3852_v49, %v4806_v19  ;;  %v9220_v13 = vpop.permute.xlu0 %3392 }
 0x5be   :  { %v4810_v60 = vsel %vm549_vm2, %v3868_v1, %v4809_v23  ;;  %v3876_v16 = vrot.slane %v11236_v7, %v11152_v51  ;;  %v3896_v59 = vrot.slane %v8355_v34, %v11152_v51  ;;  %v3892_v56 = vrot.slane %v11237_v53, %v11152_v51  ;;  %3581 = vperm.xlu1 %6882, %v8959_v32   ;;  %v11246_v53 = vld [vmem:[#allocation174_spill] sm:$0xff] }
 0x5bf   :  { %v3900_v48 = vrot.slane %v11238_v58, %v11152_v51  ;;  %v3928_v49 = vrot.slane %v8389_v29, %v11152_v51  ;;  %v3924_v62 = vrot.slane %v11239_v8, %v11152_v51  ;;  %3578 = vperm.xlu0 %6881, %v8955_v33   ;;  %v9231_v34 = vsel %vm586_vm8, %v4766_v61, 0.0 }
 0x5c0   :  { %v3932_v30 = vrot.slane %v8399_v15, %v11152_v51  ;;  %v9236_v1 = vsel %vm586_vm8, %v4773_v17, 0.0  ;;  %v9239_v32 = vsel %vm586_vm8, %v4780_v37, 0.0  ;;  %v9242_v39 = vsel %vm586_vm8, %v4787_v25, 0.0  ;;  %v11240_v17 = vld [vmem:[#allocation167_spill] sm:$0xff]  ;;  %v11241_v25 = vld [vmem:[#allocation172_spill] sm:$0xff] }
 0x5c1   :  { %v4811_v29 = vsel %vm551_vm3, %v3872_v11, %v4810_v60  ;;  %v9245_v24 = vpop.permute.xlu1 %3401  ;;  %v9248_v33 = vsel %vm586_vm8, %v4794_v46, 0.0  ;;  %v4801_v61 = vsel %vm559_vm7, %v3824_v27, %v4800_v43  ;;  %v4808_v15 = vsel %vm559_vm7, %v3856_v36, %v4807_v54  ;;  %v9258_v9 = vpop.permute.xlu0 %3398  ;;  %v11242_v27 = vld [vmem:[#allocation175_spill] sm:$0xff]  ;;  %v11243_v60 = vld [vmem:[#allocation169_spill] sm:$0xff] }
 0x5c2   :  { %v3880_v10 = vrot.slane %v11240_v17, %v11152_v51  ;;  %v4812_v37 = vsel %vm553_vm4, %v3876_v16, %v4811_v29  ;;  %v4816_v50 = vsel %vm547_vm1, %v3896_v59, %v3892_v56  ;;  %v3904_v19 = vrot.slane %v11241_v25, %v11152_v51  ;;  %3587 = vperm.xlu1 %6882, %v8969_v26   ;;  %v11251_v25 = vld [vmem:[#allocation7_spill] sm:$0xff] }
 0x5c3   :  { %v4817_v46 = vsel %vm549_vm2, %v3900_v48, %v4816_v50  ;;  %v3908_v43 = vrot.slane %v11242_v27, %v11152_v51  ;;  %v4823_v36 = vsel %vm547_vm1, %v3928_v49, %v3924_v62  ;;  %v3936_v23 = vrot.slane %v8397_v47, %v11152_v51  ;;  %3584 = vperm.xlu0 %6881, %v8963_v2   ;;  %v11247_v49 = vld [vmem:[#allocation177_spill] sm:$0xff]  ;;  %v11248_v62 = vld [vmem:[#allocation179_spill] sm:$0xff] }
 0x5c4   :  { %v4824_v40 = vsel %vm549_vm2, %v3932_v30, %v4823_v36  ;;  %v3940_v11 = vrot.slane %v8407_v22, %v11152_v51  ;;  %v3960_v26 = vrot.slane %v8421_v5, %v11152_v51  ;;  %v3956_v54 = vrot.slane %v8423_v3, %v11152_v51  ;;  %v11245_v22 = vld [vmem:[#allocation170_spill] sm:$0xff] }
 0x5c5   :  { %v3888_v7 = vrot.slane %v11243_v60, %v11152_v51  ;;  %v3964_v16 = vrot.slane %v8431_v63, %v11152_v51  ;;  %v9279_v47 = vpop.permute.xlu1 %3407  ;;  %v9282_v2 = vsel %vm586_vm8, %v4801_v61, 0.0  ;;  %v9285_v59 = vsel %vm586_vm8, %v4808_v15, 0.0  ;;  %v9292_v58 = vpop.permute.xlu0 %3404  ;;  %v11249_v15 = vld [vmem:[#allocation181_spill] sm:$0xff] }
 0x5c6   :  { %11244 = vst [vmem:[#allocation116_spill] sm:$0xff] %v9279_v47  ;;  %v3884_v5 = vrot.slane %v11245_v22, %v11152_v51  ;;  %v3912_v3 = vrot.slane %v11246_v53, %v11152_v51  ;;  %v4818_v56 = vsel %vm551_vm3, %v3904_v19, %v4817_v46  ;;  %3593 = vperm.xlu1 %6882, %v9003_v38   ;;  %v11252_v46 = vld [vmem:[#allocation14_spill] sm:$0xff] }
 0x5c7   :  { %v4813_v63 = vsel %vm555_vm5, %v3880_v10, %v4812_v37  ;;  %v4819_v48 = vsel %vm553_vm4, %v3908_v43, %v4818_v56  ;;  %v3916_v8 = vrot.slane %v11247_v49, %v11152_v51  ;;  %v3944_v30 = vrot.slane %v11248_v62, %v11152_v51  ;;  %3590 = vperm.xlu0 %6881, %v8973_v0   ;;  %v11250_v10 = vld [vmem:[#allocation182_spill] sm:$0xff]  ;;  %v11253_v0 = vld [vmem:[#allocation9_spill] sm:$0xff] }
 0x5c8   :  { %v4825_v29 = vsel %vm551_vm3, %v3936_v23, %v4824_v40  ;;  %v3948_v17 = vrot.slane %v11249_v15, %v11152_v51  ;;  %v4830_v38 = vsel %vm547_vm1, %v3960_v26, %v3956_v54  ;;  %v3968_v37 = vrot.slane %v11250_v10, %v11152_v51  ;;  %v11254_v23 = vld [vmem:[#allocation176_spill] sm:$0xff]  ;;  %v11256_v22 = vld [vmem:[#allocation22_spill] sm:$0xff]  ;;  %v11257_v56 = vld [vmem:[#allocation17_spill] sm:$0xff] }
 0x5c9   :  { %v4826_v61 = vsel %vm553_vm4, %v3940_v11, %v4825_v29  ;;  %v4831_v50 = vsel %vm549_vm2, %v3964_v16, %v4830_v38  ;;  %v3972_v19 = vrot.slane %v11251_v25, %v11152_v51  ;;  %v3992_v27 = vrot.slane %v11252_v46, %v11152_v51  ;;  %v9316_v36 = vpop.permute.xlu1 %3413  ;;  %v11255_v11 = vld [vmem:[#allocation11_spill] sm:$0xff]  ;;  %v9322_v54 = vpop.permute.xlu0 %3410  ;;  %v11258_v15 = vld [vmem:[#allocation180_spill] sm:$0xff] }
 0x5ca   :  { %v3988_v43 = vrot.slane %v11253_v0, %v11152_v51  ;;  %v3920_v40 = vrot.slane %v11254_v23, %v11152_v51  ;;  %v3996_v26 = vrot.slane %v11255_v11, %v11152_v51  ;;  %3599 = vperm.xlu1 %6882, %v9175_v41   ;;  %v4814_v60 = vsel %vm557_vm6, %v3884_v5, %v4813_v63  ;;  %v11259_v5 = vld [vmem:[#allocation19_spill] sm:$0xff]  ;;  %v11263_v0 = vld [vmem:[#allocation30_spill] sm:$0xff]  ;;  %v11264_v23 = vld [vmem:[#allocation25_spill] sm:$0xff] }
 0x5cb   :  { %v4820_v16 = vsel %vm555_vm5, %v3912_v3, %v4819_v48  ;;  %v4024_v53 = vrot.slane %v11256_v22, %v11152_v51  ;;  %v4020_v49 = vrot.slane %v11257_v56, %v11152_v51  ;;  %3596 = vperm.xlu0 %6881, %v9007_v6   ;;  %v4827_v29 = vsel %vm555_vm5, %v3944_v30, %v4826_v61  ;;  %v11260_v48 = vld [vmem:[#allocation10_spill] sm:$0xff]  ;;  %v11266_v22 = vld [vmem:[#allocation27_spill] sm:$0xff] }
 0x5cc   :  { %v4821_v62 = vsel %vm557_vm6, %v3916_v8, %v4820_v16  ;;  %v3952_v38 = vrot.slane %v11258_v15, %v11152_v51  ;;  %v4832_v41 = vsel %vm551_vm3, %v3968_v37, %v4831_v50  ;;  %v4028_v3 = vrot.slane %v11259_v5, %v11152_v51  ;;  %v11261_v8 = vld [vmem:[#allocation16_spill] sm:$0xff]  ;;  %v11262_v37 = vld [vmem:[#allocation13_spill] sm:$0xff] }
 0x5cd   :  { %v4828_v63 = vsel %vm557_vm6, %v3948_v17, %v4827_v29  ;;  %v3976_v10 = vrot.slane %v11260_v48, %v11152_v51  ;;  %v4833_v25 = vsel %vm553_vm4, %v3972_v19, %v4832_v41  ;;  %v4837_v6 = vsel %vm547_vm1, %v3992_v27, %v3988_v43  ;;  %v9346_v61 = vpop.permute.xlu1 %3419  ;;  %v9355_v16 = vpop.permute.xlu0 %3416  ;;  %v11265_v27 = vld [vmem:[#allocation24_spill] sm:$0xff]  ;;  %v11267_v15 = vld [vmem:[#allocation21_spill] sm:$0xff] }
 0x5ce   :  { %v4000_v30 = vrot.slane %v11261_v8, %v11152_v51  ;;  %v4838_v46 = vsel %vm549_vm2, %v3996_v26, %v4837_v6  ;;  %v4004_v50 = vrot.slane %v11262_v37, %v11152_v51  ;;  %v4056_v17 = vrot.slane %v11263_v0, %v11152_v51  ;;  %v11268_v6 = vld [vmem:[#allocation8_spill] sm:$0xff] }
 0x5cf   :  { %v4052_v11 = vrot.slane %v11264_v23, %v11152_v51  ;;  %v4844_v19 = vsel %vm547_vm1, %v4024_v53, %v4020_v49  ;;  %v4032_v43 = vrot.slane %v11265_v27, %v11152_v51  ;;  %v4060_v56 = vrot.slane %v11266_v22, %v11152_v51  ;;  %v11269_v49 = vld [vmem:[#allocation18_spill] sm:$0xff]  ;;  %v11274_v22 = vld [vmem:[#allocation23_spill] sm:$0xff] }
 0x5d0   :  { %v4815_v26 = vsel %vm559_vm7, %v3888_v7, %v4814_v60  ;;  %v4845_v29 = vsel %vm549_vm2, %v4028_v3, %v4844_v19  ;;  %v4036_v41 = vrot.slane %v11267_v15, %v11152_v51  ;;  %v4822_v5 = vsel %vm559_vm7, %v3920_v40, %v4821_v62  ;;  %v11270_v3 = vld [vmem:[#allocation15_spill] sm:$0xff]  ;;  %v11271_v62 = vld [vmem:[#allocation32_spill] sm:$0xff]  ;;  %v11272_v19 = vld [vmem:[#allocation26_spill] sm:$0xff] }
 0x5d1   :  { %v4829_v48 = vsel %vm559_vm7, %v3952_v38, %v4828_v63  ;;  %v3980_v53 = vrot.slane %v11268_v6, %v11152_v51  ;;  %v4008_v8 = vrot.slane %v11269_v49, %v11152_v51  ;;  %v4839_v37 = vsel %vm551_vm3, %v4000_v30, %v4838_v46  ;;  %v9373_v0 = vpop.permute.xlu1 %3425  ;;  %v9382_v63 = vpop.permute.xlu0 %3422  ;;  %v11276_v6 = vld [vmem:[#allocation33_spill] sm:$0xff] }
 0x5d2   :  { %v4834_v7 = vsel %vm555_vm5, %v3976_v10, %v4833_v25  ;;  %v4840_v60 = vsel %vm553_vm4, %v4004_v50, %v4839_v37  ;;  %v4012_v23 = vrot.slane %v11270_v3, %v11152_v51  ;;  %v4851_v40 = vsel %vm547_vm1, %v4056_v17, %v4052_v11  ;;  %v11273_v10 = vld [vmem:[#allocation29_spill] sm:$0xff]  ;;  %v11275_v11 = vld [vmem:[#allocation38_spill] sm:$0xff]  ;;  %v11277_v37 = vld [vmem:[#allocation12_spill] sm:$0xff] }
 0x5d3   :  { %v4064_v38 = vrot.slane %v11271_v62, %v11152_v51  ;;  %v4040_v27 = vrot.slane %v11272_v19, %v11152_v51  ;;  %v4846_v30 = vsel %vm551_vm3, %v4032_v43, %v4845_v29  ;;  %v4852_v46 = vsel %vm549_vm2, %v4060_v56, %v4851_v40  ;;  %v11278_v43 = vld [vmem:[#allocation35_spill] sm:$0xff]  ;;  %v11280_v62 = vld [vmem:[#allocation20_spill] sm:$0xff] }
 0x5d4   :  { %v4068_v25 = vrot.slane %v11273_v10, %v11152_v51  ;;  %v4847_v50 = vsel %vm553_vm4, %v4036_v41, %v4846_v30  ;;  %v4044_v17 = vrot.slane %v11274_v22, %v11152_v51  ;;  %v4088_v15 = vrot.slane %v11275_v11, %v11152_v51  ;;  %v11281_v30 = vld [vmem:[#allocation34_spill] sm:$0xff] }
 0x5d5   :  { %v4084_v49 = vrot.slane %v11276_v6, %v11152_v51  ;;  %v3984_v3 = vrot.slane %v11277_v37, %v11152_v51  ;;  %v4092_v56 = vrot.slane %v11278_v43, %v11152_v51  ;;  %v9401_v29 = vpop.permute.xlu1 %3431  ;;  %v4835_v40 = vsel %vm557_vm6, %v3980_v53, %v4834_v7  ;;  %v9410_v11 = vpop.permute.xlu0 %3428  ;;  %v11283_v37 = vld [vmem:[#allocation28_spill] sm:$0xff]  ;;  %v11284_v53 = vld [vmem:[#allocation31_spill] sm:$0xff] }
 0x5d6   :  { %11279 = vst [vmem:[#allocation121_spill] sm:$0xff] %v9401_v29  ;;  %v4841_v41 = vsel %vm555_vm5, %v4008_v8, %v4840_v60  ;;  %v4016_v19 = vrot.slane %v11280_v62, %v11152_v51  ;;  %v4072_v10 = vrot.slane %v11281_v30, %v11152_v51  ;;  %v4853_v22 = vsel %vm551_vm3, %v4064_v38, %v4852_v46  ;;  %v11285_v62 = vld [vmem:[#allocation40_spill] sm:$0xff] }
 0x5d7   :  { %11282 = vst [vmem:[#allocation122_spill] sm:$0xff] %v9410_v11  ;;  %v4842_v6 = vsel %vm557_vm6, %v4012_v23, %v4841_v41  ;;  %v4048_v43 = vrot.slane %v11283_v37, %v11152_v51  ;;  %v4854_v29 = vsel %vm553_vm4, %v4068_v25, %v4853_v22  ;;  %v4076_v8 = vrot.slane %v11284_v53, %v11152_v51  ;;  %v11286_v41 = vld [vmem:[#allocation37_spill] sm:$0xff] }
 0x5d8   :  { %v4848_v7 = vsel %vm555_vm5, %v4040_v27, %v4847_v50  ;;  %v4858_v60 = vsel %vm547_vm1, %v4088_v15, %v4084_v49  ;;  %v4096_v30 = vrot.slane %v11285_v62, %v11152_v51  ;;  %v9423_v38 = vsel %vm586_vm8, %v4815_v26, 0.0  ;;  %v11287_v50 = vld [vmem:[#allocation36_spill] sm:$0xff]  ;;  %v11288_v53 = vld [vmem:[#allocation45_spill] sm:$0xff]  ;;  %v11290_v62 = vld [vmem:[#allocation42_spill] sm:$0xff] }
 0x5d9   :  { %v4849_v23 = vsel %vm557_vm6, %v4044_v17, %v4848_v7  ;;  %v4859_v46 = vsel %vm549_vm2, %v4092_v56, %v4858_v60  ;;  %v4100_v25 = vrot.slane %v11286_v41, %v11152_v51  ;;  %v9429_v22 = vpop.permute.xlu1 %3437  ;;  %v9432_v37 = vsel %vm586_vm8, %v4822_v5, 0.0  ;;  %v9437_v49 = vpop.permute.xlu0 %3434  ;;  %v11289_v5 = vld [vmem:[#allocation41_spill] sm:$0xff] }
 0x5da   :  { %v4836_v27 = vsel %vm559_vm7, %v3984_v3, %v4835_v40  ;;  %v4080_v15 = vrot.slane %v11287_v50, %v11152_v51  ;;  %v9440_v26 = vsel %vm586_vm8, %v4829_v48, 0.0  ;;  %v4843_v17 = vsel %vm559_vm7, %v4016_v19, %v4842_v6  ;;  %v11291_v50 = vld [vmem:[#allocation44_spill] sm:$0xff]  ;;  %v11292_v6 = vld [vmem:[#allocation39_spill] sm:$0xff] }
 0x5db   :  { %v4855_v56 = vsel %vm555_vm5, %v4072_v10, %v4854_v29  ;;  %v4120_v7 = vrot.slane %v11288_v53, %v11152_v51  ;;  %v4116_v60 = vrot.slane %v11289_v5, %v11152_v51  ;;  %v4850_v3 = vsel %vm559_vm7, %v4048_v43, %v4849_v23 }
 0x5dc   :  { %v4856_v40 = vsel %vm557_vm6, %v4076_v8, %v4855_v56  ;;  %v4104_v41 = vrot.slane %v11290_v62, %v11152_v51  ;;  %v4860_v48 = vsel %vm551_vm3, %v4096_v30, %v4859_v46  ;;  %v4124_v19 = vrot.slane %v11291_v50, %v11152_v51  ;;  %v11293_v8 = vld [vmem:[#allocation65_spill] sm:$0xff]  ;;  %v11295_v30 = vld [vmem:[#allocation67_spill] sm:$0xff] }
 0x5dd   :  { %v9456_v29 = vsel %vm586_vm8, %v4836_v27, 0.0  ;;  %v4861_v10 = vsel %vm553_vm4, %v4100_v25, %v4860_v48  ;;  %v4108_v53 = vrot.slane %v11292_v6, %v11152_v51  ;;  %v4152_v43 = vrot.slane %v8613_v55, %v11152_v51  ;;  %v9465_v56 = vpop.permute.xlu1 %3443  ;;  %v9469_v5 = vpop.permute.xlu0 %3440  ;;  %v11297_v48 = vld [vmem:[#allocation59_spill] sm:$0xff] }
 0x5de   :  { %v4148_v23 = vrot.slane %v11293_v8, %v11152_v51  ;;  %11294 = vst [vmem:[#allocation124_spill] sm:$0xff] %v9465_v56  ;;  %v4156_v46 = vrot.slane %v11295_v30, %v11152_v51  ;;  %11296 = vst [vmem:[#allocation109_spill] sm:$0xff] %v9469_v5  ;;  %v9472_v27 = vsel %vm586_vm8, %v4843_v17, 0.0  ;;  %v9475_v25 = vsel %vm586_vm8, %v4850_v3, 0.0  ;;  %v11298_v30 = vld [vmem:[#allocation46_spill] sm:$0xff] }
 0x5df   :  { %v9478_v62 = vsel %vm559_vm7, %v4080_v15, %v4856_v40  ;;  %v4865_v55 = vsel %vm547_vm1, %v4120_v7, %v4116_v60  ;;  %v4128_v50 = vrot.slane %v11297_v48, %v11152_v51  ;;  %v4184_v6 = vrot.slane %v8645_v12, %v11152_v51  ;;  %v11299_v7 = vld [vmem:[#allocation43_spill] sm:$0xff]  ;;  %v11300_v12 = vld [vmem:[#allocation48_spill] sm:$0xff] }
 0x5e0   :  { %v4180_v8 = vrot.slane %v8647_v14, %v11152_v51  ;;  %v4866_v17 = vsel %vm549_vm2, %v4124_v19, %v4865_v55  ;;  %v4132_v3 = vrot.slane %v11298_v30, %v11152_v51  ;;  %v4188_v15 = vrot.slane %v8655_v35, %v11152_v51  ;;  %v11303_v30 = vld [vmem:[#allocation51_spill] sm:$0xff] }
 0x5e1   :  { %v4862_v40 = vsel %vm555_vm5, %v4104_v41, %v4861_v10  ;;  %v4112_v60 = vrot.slane %v11299_v7, %v11152_v51  ;;  %v4872_v48 = vsel %vm547_vm1, %v4152_v43, %v4148_v23  ;;  %v4160_v56 = vrot.slane %v11300_v12, %v11152_v51  ;;  %v9498_v47 = vpop.permute.xlu1 %3449  ;;  %v9508_v10 = vpop.permute.xlu0 %3446 }
 0x5e2   :  { %11301 = vst [vmem:[#allocation112_spill] sm:$0xff] %v9498_v47  ;;  %v4863_v14 = vsel %vm557_vm6, %v4108_v53, %v4862_v40  ;;  %v4873_v19 = vsel %vm549_vm2, %v4156_v46, %v4872_v48  ;;  %v4164_v55 = vrot.slane %v8631_v4, %v11152_v51  ;;  %v4216_v35 = vrot.slane %v8677_v31, %v11152_v51  ;;  %v11304_v46 = vld [vmem:[#allocation57_spill] sm:$0xff]  ;;  %v11305_v4 = vld [vmem:[#allocation62_spill] sm:$0xff] }
 0x5e3   :  { %v4212_v41 = vrot.slane %v8679_v20, %v11152_v51  ;;  %11302 = vst [vmem:[#allocation115_spill] sm:$0xff] %v9508_v10  ;;  %v4867_v43 = vsel %vm551_vm3, %v4128_v50, %v4866_v17  ;;  %v4879_v23 = vsel %vm547_vm1, %v4184_v6, %v4180_v8  ;;  %v4192_v53 = vrot.slane %v11303_v30, %v11152_v51  ;;  %v11306_v20 = vld [vmem:[#allocation53_spill] sm:$0xff]  ;;  %v11307_v50 = vld [vmem:[#allocation63_spill] sm:$0xff] }
 0x5e4   :  { %v4220_v40 = vrot.slane %v11304_v46, %v11152_v51  ;;  %v4136_v7 = vrot.slane %v11305_v4, %v11152_v51  ;;  %v4868_v31 = vsel %vm553_vm4, %v4132_v3, %v4867_v43  ;;  %v4880_v48 = vsel %vm549_vm2, %v4188_v15, %v4879_v23  ;;  %v11308_v6 = vld [vmem:[#allocation47_spill] sm:$0xff]  ;;  %v11309_v30 = vld [vmem:[#allocation49_spill] sm:$0xff]  ;;  %v11311_v15 = vld [vmem:[#allocation70_spill] sm:$0xff] }
 0x5e5   :  { %v4196_v12 = vrot.slane %v11306_v20, %v11152_v51  ;;  %v4144_v17 = vrot.slane %v11307_v50, %v11152_v51  ;;  %v4140_v8 = vrot.slane %v11308_v6, %v11152_v51  ;;  %v4168_v47 = vrot.slane %v11309_v30, %v11152_v51  ;;  %v9529_v10 = vpop.permute.xlu1 %3455  ;;  %v11312_v4 = vld [vmem:[#allocation56_spill] sm:$0xff]  ;;  %v9537_v50 = vpop.permute.xlu0 %3452 }
 0x5e6   :  { %v4874_v46 = vsel %vm551_vm3, %v4160_v56, %v4873_v19  ;;  %11310 = vst [vmem:[#allocation118_spill] sm:$0xff] %v9529_v10  ;;  %v4172_v43 = vrot.slane %v11311_v15, %v11152_v51  ;;  %v4886_v23 = vsel %vm547_vm1, %v4216_v35, %v4212_v41  ;;  %v4224_v20 = vrot.slane %v11312_v4, %v11152_v51  ;;  %v11314_v6 = vld [vmem:[#allocation52_spill] sm:$0xff]  ;;  %v11315_v19 = vld [vmem:[#allocation183_spill] sm:$0xff]  ;;  %v11317_v41 = vld [vmem:[#allocation61_spill] sm:$0xff] }
 0x5e7   :  { %v4875_v3 = vsel %vm553_vm4, %v4164_v55, %v4874_v46  ;;  %11313 = vst [vmem:[#allocation123_spill] sm:$0xff] %v9537_v50  ;;  %v4200_v5 = vrot.slane %v11314_v6, %v11152_v51  ;;  %v4881_v30 = vsel %vm551_vm3, %v4192_v53, %v4880_v48  ;;  %v4887_v56 = vsel %vm549_vm2, %v4220_v40, %v4886_v23  ;;  %v11316_v15 = vld [vmem:[#allocation55_spill] sm:$0xff]  ;;  %v11318_v10 = vld [vmem:[#allocation185_spill] sm:$0xff]  ;;  %v11319_v6 = vld [vmem:[#allocation68_spill] sm:$0xff] }
 0x5e8   :  { %v4228_v55 = vrot.slane %v11315_v19, %v11152_v51  ;;  %v4882_v46 = vsel %vm553_vm4, %v4196_v12, %v4881_v30  ;;  %v4204_v35 = vrot.slane %v11316_v15, %v11152_v51  ;;  %v4248_v4 = vrot.slane %v11317_v41, %v11152_v51  ;;  %v11320_v53 = vld [vmem:[#allocation186_spill] sm:$0xff] }
 0x5e9   :  { %v4244_v50 = vrot.slane %v11318_v10, %v11152_v51  ;;  %v4176_v11 = vrot.slane %v11319_v6, %v11152_v51  ;;  %v4252_v40 = vrot.slane %v11320_v53, %v11152_v51  ;;  %v9556_v48 = vpop.permute.xlu1 %3461  ;;  %v4869_v23 = vsel %vm555_vm5, %v4136_v7, %v4868_v31  ;;  %v11322_v30 = vld [vmem:[#allocation58_spill] sm:$0xff]  ;;  %v9564_v10 = vpop.permute.xlu0 %3458 }
 0x5ea   :  { %11321 = vst [vmem:[#allocation126_spill] sm:$0xff] %v9556_v48  ;;  %v4876_v12 = vsel %vm555_vm5, %v4168_v47, %v4875_v3  ;;  %v4232_v19 = vrot.slane %v11322_v30, %v11152_v51  ;;  %v4888_v15 = vsel %vm551_vm3, %v4224_v20, %v4887_v56  ;;  %5042 = vadd.xlane.f32.xlu0 %v9184_v42  ;;  %v11323_v53 = vld [vmem:[#allocation54_spill] sm:$0xff]  ;;  %v11324_v47 = vld [vmem:[#allocation184_spill] sm:$0xff] }
 0x5eb   :  { %v4870_v41 = vsel %vm557_vm6, %v4140_v8, %v4869_v23  ;;  %v4877_v6 = vsel %vm557_vm6, %v4172_v43, %v4876_v12  ;;  %v4208_v48 = vrot.slane %v11323_v53, %v11152_v51  ;;  %v4889_v7 = vsel %vm553_vm4, %v4228_v55, %v4888_v15  ;;  %v11325_v42 = vld [vmem:[#allocation64_spill] sm:$0xff]  ;;  %v11326_v23 = vld [vmem:[#allocation187_spill] sm:$0xff] }
 0x5ec   :  { %v4236_v31 = vrot.slane %v11324_v47, %v11152_v51  ;;  %v4883_v3 = vsel %vm555_vm5, %v4200_v5, %v4882_v46  ;;  %v4893_v20 = vsel %vm547_vm1, %v4248_v4, %v4244_v50  ;;  %v4256_v56 = vrot.slane %v11325_v42, %v11152_v51  ;;  %v11327_v50 = vld [vmem:[#allocation71_spill] sm:$0xff]  ;;  %v11328_v4 = vld [vmem:[#allocation189_spill] sm:$0xff]  ;;  %v11331_v47 = vld [vmem:[#allocation66_spill] sm:$0xff] }
 0x5ed   :  { %v4864_v30 = vsel %vm559_vm7, %v4112_v60, %v4863_v14  ;;  %v4884_v8 = vsel %vm557_vm6, %v4204_v35, %v4883_v3  ;;  %v4894_v43 = vsel %vm549_vm2, %v4252_v40, %v4893_v20  ;;  %v4260_v12 = vrot.slane %v11326_v23, %v11152_v51  ;;  %v9582_v55 = vpop.permute.xlu1 %3467  ;;  %v9593_v14 = vpop.permute.xlu0 %3464  ;;  %v11334_v23 = vld [vmem:[#allocation197_spill] sm:$0xff] }
 0x5ee   :  { %v4871_v15 = vsel %vm559_vm7, %v4144_v17, %v4870_v41  ;;  %v9586_v5 = vsel %vm559_vm7, %v4176_v11, %v4877_v6  ;;  %v4280_v46 = vrot.slane %v11327_v50, %v11152_v51  ;;  %v4276_v60 = vrot.slane %v11328_v4, %v11152_v51  ;;  %5048 = vadd.xlane.f32.xlu0 %v9236_v1  ;;  %v11329_v11 = vld [vmem:[#allocation60_spill] sm:$0xff]  ;;  %v11330_v41 = vld [vmem:[#allocation190_spill] sm:$0xff] }
 0x5ef   :  { %5045 = vadd.xlane.f32.xlu1 %v9231_v34  ;;  %v9598_v35 = vsel %vm586_vm8, %v9478_v62, 0.0  ;;  %v4890_v17 = vsel %vm555_vm5, %v4232_v19, %v4889_v7  ;;  %v4240_v40 = vrot.slane %v11329_v11, %v11152_v51  ;;  %v4284_v6 = vrot.slane %v11330_v41, %v11152_v51  ;;  %v11332_v62 = vld [vmem:[#allocation195_spill] sm:$0xff]  ;;  %v11333_v19 = vld [vmem:[#allocation196_spill] sm:$0xff]  ;;  %v11339_v41 = vld [vmem:[#allocation78_spill] sm:$0xff] }
 0x5f0   :  { %v9606_v53 = vsel %vm559_vm7, %v4208_v48, %v4884_v8  ;;  %v4891_v1 = vsel %vm557_vm6, %v4236_v31, %v4890_v17  ;;  %v4264_v34 = vrot.slane %v11331_v47, %v11152_v51  ;;  %v4895_v3 = vsel %vm551_vm3, %v4256_v56, %v4894_v43  ;;  %v11335_v48 = vld [vmem:[#allocation85_spill] sm:$0xff]  ;;  %v11338_v43 = vld [vmem:[#allocation72_spill] sm:$0xff] }
 0x5f1   :  { %v4312_v20 = vrot.slane %v11332_v62, %v11152_v51  ;;  %v4308_v7 = vrot.slane %v11333_v19, %v11152_v51  ;;  %v4896_v42 = vsel %vm553_vm4, %v4260_v12, %v4895_v3  ;;  %v4316_v50 = vrot.slane %v11334_v23, %v11152_v51  ;;  %v11336_v31 = vld [vmem:[#allocation77_spill] sm:$0xff]  ;;  %v9623_v17 = vpop.permute.xlu1 %3473  ;;  %v9631_v12 = vpop.permute.xlu0 %3470 }
 0x5f2   :  { %v4344_v8 = vrot.slane %v11335_v48, %v11152_v51  ;;  %v4340_v4 = vrot.slane %v11336_v31, %v11152_v51  ;;  %11337 = vst [vmem:[#allocation129_spill] sm:$0xff] %v9623_v17  ;;  %v4900_v56 = vsel %vm547_vm1, %v4280_v46, %v4276_v60  ;;  %v4288_v11 = vrot.slane %v11338_v43, %v11152_v51  ;;  %v11340_v62 = vld [vmem:[#allocation69_spill] sm:$0xff]  ;;  %v11341_v60 = vld [vmem:[#allocation192_spill] sm:$0xff] }
 0x5f3   :  { %v4348_v47 = vrot.slane %v11339_v41, %v11152_v51  ;;  %5051 = vadd.xlane.f32.xlu0 %v9239_v32  ;;  %5054 = vadd.xlane.f32.xlu1 %v9242_v39  ;;  %v9635_v3 = vsel %vm586_vm8, %v4864_v30, 0.0  ;;  %v4901_v46 = vsel %vm549_vm2, %v4284_v6, %v4900_v56  ;;  %v4292_v23 = vrot.slane %v11341_v60, %v11152_v51  ;;  %v11342_v32 = vld [vmem:[#allocation188_spill] sm:$0xff]  ;;  %v11343_v39 = vld [vmem:[#allocation74_spill] sm:$0xff]  ;;  %v11344_v6 = vld [vmem:[#allocation75_spill] sm:$0xff] }
 0x5f4   :  { %v9643_v48 = vsel %vm559_vm7, %v4240_v40, %v4891_v1  ;;  %v4268_v31 = vrot.slane %v11342_v32, %v11152_v51  ;;  %v4907_v43 = vsel %vm547_vm1, %v4312_v20, %v4308_v7  ;;  %v4320_v30 = vrot.slane %v11343_v39, %v11152_v51  ;;  %v11345_v40 = vld [vmem:[#allocation87_spill] sm:$0xff] }
 0x5f5   :  { %v4897_v41 = vsel %vm555_vm5, %v4264_v34, %v4896_v42  ;;  %v4908_v19 = vsel %vm549_vm2, %v4316_v50, %v4907_v43  ;;  %v4324_v56 = vrot.slane %v11344_v6, %v11152_v51  ;;  %v4914_v60 = vsel %vm547_vm1, %v4344_v8, %v4340_v4  ;;  %v9657_v17 = vpop.permute.xlu1 %3479  ;;  %v11347_v7 = vld [vmem:[#allocation79_spill] sm:$0xff]  ;;  %v9664_v34 = vpop.permute.xlu0 %3476 }
 0x5f6   :  { %v4352_v1 = vrot.slane %v11345_v40, %v11152_v51  ;;  %11346 = vst [vmem:[#allocation130_spill] sm:$0xff] %v9657_v17  ;;  %v4902_v32 = vsel %vm551_vm3, %v4288_v11, %v4901_v46  ;;  %v4915_v20 = vsel %vm549_vm2, %v4348_v47, %v4914_v60  ;;  %v4356_v39 = vrot.slane %v11347_v7, %v11152_v51  ;;  %v11349_v50 = vld [vmem:[#allocation191_spill] sm:$0xff]  ;;  %v11350_v11 = vld [vmem:[#allocation92_spill] sm:$0xff]  ;;  %v11351_v46 = vld [vmem:[#allocation81_spill] sm:$0xff] }
 0x5f7   :  { %5057 = vadd.xlane.f32.xlu0 %v9248_v33  ;;  %11348 = vst [vmem:[#allocation132_spill] sm:$0xff] %v9664_v34  ;;  %5060 = vadd.xlane.f32.xlu1 %v9282_v2  ;;  %v9668_v42 = vsel %vm586_vm8, %v4871_v15, 0.0  ;;  %v4296_v8 = vrot.slane %v11349_v50, %v11152_v51  ;;  %v4903_v4 = vsel %vm553_vm4, %v4292_v23, %v4902_v32  ;;  %v11352_v33 = vld [vmem:[#allocation194_spill] sm:$0xff]  ;;  %v11354_v40 = vld [vmem:[#allocation83_spill] sm:$0xff]  ;;  %v11355_v23 = vld [vmem:[#allocation76_spill] sm:$0xff] }
 0x5f8   :  { %v4376_v47 = vrot.slane %v11350_v11, %v11152_v51  ;;  %v4372_v43 = vrot.slane %v11351_v46, %v11152_v51  ;;  %v4300_v6 = vrot.slane %v11352_v33, %v11152_v51  ;;  %v11353_v60 = vld [vmem:[#allocation82_spill] sm:$0xff]  ;;  %v4909_v15 = vsel %vm551_vm3, %v4320_v30, %v4908_v19  ;;  %v11356_v11 = vld [vmem:[#allocation89_spill] sm:$0xff] }
 0x5f9   :  { %v4328_v2 = vrot.slane %v11353_v60, %v11152_v51  ;;  %v4380_v7 = vrot.slane %v11354_v40, %v11152_v51  ;;  %v4910_v50 = vsel %vm553_vm4, %v4324_v56, %v4909_v15  ;;  %v4332_v32 = vrot.slane %v11355_v23, %v11152_v51  ;;  %v9690_v34 = vpop.permute.xlu1 %3485  ;;  %v11357_v60 = vld [vmem:[#allocation80_spill] sm:$0xff]  ;;  %v9696_v30 = vpop.permute.xlu0 %3482  ;;  %v11359_v40 = vld [vmem:[#allocation94_spill] sm:$0xff] }
 0x5fa   :  { %v4360_v17 = vrot.slane %v11356_v11, %v11152_v51  ;;  %v4916_v46 = vsel %vm551_vm3, %v4352_v1, %v4915_v20  ;;  %v4364_v19 = vrot.slane %v11357_v60, %v11152_v51  ;;  %v9701_v56 = vsel %vm586_vm8, %v9586_v5, 0.0  ;;  %v11358_v1 = vld [vmem:[#allocation193_spill] sm:$0xff] }
 0x5fb   :  { %v4917_v33 = vsel %vm553_vm4, %v4356_v39, %v4916_v46  ;;  %5063 = vadd.xlane.f32.xlu0 %v9285_v59  ;;  %5066 = vadd.xlane.f32.xlu1 %v9423_v38  ;;  %v4898_v15 = vsel %vm557_vm6, %v4268_v31, %v4897_v41  ;;  %v4304_v20 = vrot.slane %v11358_v1, %v11152_v51  ;;  %v11360_v38 = vld [vmem:[#allocation86_spill] sm:$0xff]  ;;  %v11361_v31 = vld [vmem:[#allocation84_spill] sm:$0xff] }
 0x5fc   :  { %v4921_v39 = vsel %vm547_vm1, %v4376_v47, %v4372_v43  ;;  %v4384_v23 = vrot.slane %v11359_v40, %v11152_v51  ;;  %v4904_v59 = vsel %vm555_vm5, %v4296_v8, %v4903_v4  ;;  %v4388_v46 = vrot.slane %v11360_v38, %v11152_v51  ;;  %v11362_v1 = vld [vmem:[#allocation90_spill] sm:$0xff]  ;;  %v11363_v4 = vld [vmem:[#allocation91_spill] sm:$0xff]  ;;  %v11366_v38 = vld [vmem:[#allocation100_spill] sm:$0xff] }
 0x5fd   :  { %v4922_v11 = vsel %vm549_vm2, %v4380_v7, %v4921_v39  ;;  %v4905_v5 = vsel %vm557_vm6, %v4300_v6, %v4904_v59  ;;  %v4911_v60 = vsel %vm555_vm5, %v4328_v2, %v4910_v50  ;;  %v4336_v41 = vrot.slane %v11361_v31, %v11152_v51  ;;  %v9719_v43 = vpop.permute.xlu1 %3491  ;;  %v11364_v39 = vld [vmem:[#allocation99_spill] sm:$0xff]  ;;  %v9728_v2 = vpop.permute.xlu0 %3488 }
 0x5fe   :  { %v4368_v47 = vrot.slane %v11362_v1, %v11152_v51  ;;  %v4912_v40 = vsel %vm557_vm6, %v4332_v32, %v4911_v60  ;;  %v4918_v8 = vsel %vm555_vm5, %v4360_v17, %v4917_v33  ;;  %v4408_v7 = vrot.slane %v11363_v4, %v11152_v51  ;;  %v11365_v17 = vld [vmem:[#allocation95_spill] sm:$0xff] }
 0x5ff   :  { %v4404_v6 = vrot.slane %v11364_v39, %v11152_v51  ;;  %5069 = vadd.xlane.f32.xlu0 %v9432_v37  ;;  %5072 = vadd.xlane.f32.xlu1 %v9440_v26  ;;  %v9733_v50 = vsel %vm586_vm8, %v9606_v53, 0.0  ;;  %v4919_v32 = vsel %vm557_vm6, %v4364_v19, %v4918_v8  ;;  %v4392_v33 = vrot.slane %v11365_v17, %v11152_v51  ;;  %v11368_v53 = vld [vmem:[#allocation107_spill] sm:$0xff]  ;;  %v11369_v19 = vld [vmem:[#allocation110_spill] sm:$0xff]  ;;  %v11371_v17 = vld [vmem:[#allocation97_spill] sm:$0xff] }
 0x600   :  { %v4923_v59 = vsel %vm551_vm3, %v4384_v23, %v4922_v11  ;;  %v4412_v60 = vrot.slane %v11366_v38, %v11152_v51  ;;  %v11367_v37 = vrot.slane %v11340_v62, %v11152_v51  ;;  %v4440_v1 = vrot.slane %v11368_v53, %v11152_v51  ;;  %v11370_v23 = vld [vmem:[#allocation114_spill] sm:$0xff] }
 0x601   :  { %v4924_v26 = vsel %vm553_vm4, %v4388_v46, %v4923_v59  ;;  %v4436_v8 = vrot.slane %v11369_v19, %v11152_v51  ;;  %v9752_v4 = vsel %vm586_vm8, %v9643_v48, 0.0  ;;  %v4444_v11 = vrot.slane %v11370_v23, %v11152_v51  ;;  %v9756_v39 = vpop.permute.xlu1 %3497  ;;  %v11372_v48 = vld [vmem:[#allocation93_spill] sm:$0xff]  ;;  %v9769_v53 = vpop.permute.xlu0 %3494  ;;  %v11376_v23 = vld [vmem:[#allocation50_spill] sm:$0xff] }
 0x602   :  { %v4899_v31 = vsel %vm559_vm7, %v11367_v37, %v4898_v15  ;;  %v4906_v62 = vsel %vm559_vm7, %v4304_v20, %v4905_v5  ;;  %v4913_v15 = vsel %vm559_vm7, %v4336_v41, %v4912_v40  ;;  %v9761_v46 = vsel %vm559_vm7, %v4368_v47, %v4919_v32  ;;  %v11373_v5 = vld [vmem:[#allocation88_spill] sm:$0xff]  ;;  %v11374_v40 = vld [vmem:[#allocation106_spill] sm:$0xff] }
 0x603   :  { %v4400_v59 = vrot.slane %v11371_v17, %v11152_v51  ;;  %v4928_v38 = vsel %vm547_vm1, %v4408_v7, %v4404_v6  ;;  %v4416_v37 = vrot.slane %v11372_v48, %v11152_v51  ;;  %5075 = vadd.xlane.f32.xlu0 %v9456_v29  ;;  %5078 = vadd.xlane.f32.xlu1 %v9472_v27  ;;  %v9773_v20 = vsel %vm586_vm8, %v4899_v31, 0.0  ;;  %v11375_v29 = vld [vmem:[#allocation113_spill] sm:$0xff] }
 0x604   :  { %v4396_v41 = vrot.slane %v11373_v5, %v11152_v51  ;;  %v4929_v47 = vsel %vm549_vm2, %v4412_v60, %v4928_v38  ;;  %v4420_v7 = vrot.slane %v11374_v40, %v11152_v51  ;;  %v4925_v6 = vsel %vm555_vm5, %v4392_v33, %v4924_v26 }
 0x605   :  { %v4935_v32 = vsel %vm547_vm1, %v4440_v1, %v4436_v8  ;;  %v4448_v19 = vrot.slane %v11375_v29, %v11152_v51  ;;  %v4472_v27 = vrot.slane %v9171_v44, %v11152_v51  ;;  %v4468_v31 = vrot.slane %v9179_v28, %v11152_v51  ;;  %v9795_v26 = vpop.permute.xlu1 %3503  ;;  %v9803_v8 = vpop.permute.xlu0 %3500  ;;  %v11378_v29 = vld [vmem:[#allocation102_spill] sm:$0xff] }
 0x606   :  { %v4424_v48 = vrot.slane %v11376_v23, %v11152_v51  ;;  %v4936_v60 = vsel %vm549_vm2, %v4444_v11, %v4935_v32  ;;  %v4452_v38 = vrot.slane %v9120_v18, %v11152_v51  ;;  %v4476_v33 = vrot.slane %v9220_v13, %v11152_v51  ;;  %v11377_v11 = vld [vmem:[#allocation108_spill] sm:$0xff] }
 0x607   :  { %v4930_v1 = vsel %vm551_vm3, %v4416_v37, %v4929_v47  ;;  %v4504_v44 = vrot.slane %v9316_v36, %v11152_v51  ;;  %v4500_v28 = vrot.slane %v9322_v54, %v11152_v51  ;;  %5081 = vadd.xlane.f32.xlu0 %v9475_v25  ;;  %5084 = vadd.xlane.f32.xlu1 %v9598_v35  ;;  %v9807_v18 = vsel %vm586_vm8, %v4906_v62, 0.0 }
 0x608   :  { %v4931_v13 = vsel %vm553_vm4, %v4420_v7, %v4930_v1  ;;  %v4428_v37 = vrot.slane %v11377_v11, %v11152_v51  ;;  %v4508_v36 = vrot.slane %v9355_v16, %v11152_v51  ;;  %v4926_v5 = vsel %vm557_vm6, %v4396_v41, %v4925_v6 }
 0x609   :  { %v4456_v54 = vrot.slane %v9112_v57, %v11152_v51  ;;  %v4937_v25 = vsel %vm551_vm3, %v4448_v19, %v4936_v60  ;;  %v4942_v35 = vsel %vm547_vm1, %v4472_v27, %v4468_v31  ;;  %v4480_v62 = vrot.slane %v9210_v21, %v11152_v51  ;;  %v9827_v41 = vpop.permute.xlu1 %3509  ;;  %v9833_v21 = vpop.permute.xlu0 %3506 }
 0x60a   :  { %v4938_v47 = vsel %vm553_vm4, %v4452_v38, %v4937_v25  ;;  %v4460_v40 = vrot.slane %v9145_v52, %v11152_v51  ;;  %v4943_v7 = vsel %vm549_vm2, %v4476_v33, %v4942_v35  ;;  %v4484_v16 = vrot.slane %v9258_v9, %v11152_v51 }
 0x60b   :  { %v4949_v57 = vsel %vm547_vm1, %v4504_v44, %v4500_v28  ;;  %v4512_v6 = vrot.slane %v9346_v61, %v11152_v51  ;;  %5087 = vadd.xlane.f32.xlu0 %v9635_v3  ;;  %5090 = vadd.xlane.f32.xlu1 %v9668_v42  ;;  %v5107_v52 = vsel %vm586_vm8, %v4913_v15, 0.0  ;;  %v4932_v32 = vsel %vm555_vm5, %v4424_v48, %v4931_v13  ;;  %v11379_v44 = vld [vmem:[#allocation122_spill] sm:$0xff]  ;;  %v11380_v13 = vld [vmem:[#allocation109_spill] sm:$0xff] }
 0x60c   :  { %v4432_v9 = vrot.slane %v11378_v29, %v11152_v51  ;;  %v4950_v19 = vsel %vm549_vm2, %v4508_v36, %v4949_v57  ;;  %v4516_v27 = vrot.slane %v9382_v63, %v11152_v51  ;;  %v4933_v61 = vsel %vm557_vm6, %v4428_v37, %v4932_v32  ;;  %v11382_v36 = vld [vmem:[#allocation116_spill] sm:$0xff] }
 0x60d   :  { %v4464_v3 = vrot.slane %v9139_v45, %v11152_v51  ;;  %v4488_v42 = vrot.slane %v9245_v24, %v11152_v51  ;;  %v4944_v15 = vsel %vm551_vm3, %v4480_v62, %v4943_v7  ;;  %v4939_v31 = vsel %vm555_vm5, %v4456_v54, %v4938_v47  ;;  %v9855_v60 = vpop.permute.xlu1 %3515  ;;  %v9864_v1 = vpop.permute.xlu0 %3512  ;;  %v11384_v7 = vld [vmem:[#allocation121_spill] sm:$0xff] }
 0x60e   :  { %v4945_v23 = vsel %vm553_vm4, %v4484_v16, %v4944_v15  ;;  %v4492_v48 = vrot.slane %v9292_v58, %v11152_v51  ;;  %v4520_v63 = vrot.slane %v9373_v0, %v11152_v51  ;;  %v4940_v38 = vsel %vm557_vm6, %v4460_v40, %v4939_v31 }
 0x60f   :  { %v4951_v45 = vsel %vm551_vm3, %v4512_v6, %v4950_v19  ;;  %v4536_v24 = vrot.slane %v9429_v22, %v11152_v51  ;;  %v4532_v33 = vrot.slane %v9437_v49, %v11152_v51  ;;  %5093 = vadd.xlane.f32.xlu0 %v9701_v56  ;;  %5096 = vadd.xlane.f32.xlu1 %v9733_v50  ;;  %v5110_v58 = vsel %vm586_vm8, %v9761_v46, 0.0  ;;  %v11381_v56 = vld [vmem:[#allocation126_spill] sm:$0xff]  ;;  %v11385_v6 = vld [vmem:[#allocation115_spill] sm:$0xff] }
 0x610   :  { %v4952_v0 = vsel %vm553_vm4, %v4516_v27, %v4951_v45  ;;  %v4524_v28 = vrot.slane %v11379_v44, %v11152_v51  ;;  %v4540_v22 = vrot.slane %v11380_v13, %v11152_v51  ;;  %v4927_v49 = vsel %vm559_vm7, %v4400_v59, %v4926_v5 }
 0x611   :  { %v4568_v11 = vrot.slane %v11381_v56, %v11152_v51  ;;  %v4564_v50 = vrot.slane %v9564_v10, %v11152_v51  ;;  %v4934_v46 = vsel %vm559_vm7, %v4432_v9, %v4933_v61  ;;  %v4946_v37 = vsel %vm555_vm5, %v4488_v42, %v4945_v23  ;;  %v9888_v35 = vpop.permute.xlu1 %3521  ;;  %v11383_v10 = vld [vmem:[#allocation124_spill] sm:$0xff]  ;;  %v9896_v47 = vpop.permute.xlu0 %3518 }
 0x612   :  { %v4496_v54 = vrot.slane %v11382_v36, %v11152_v51  ;;  %v4572_v25 = vrot.slane %v9593_v14, %v11152_v51  ;;  %v4941_v17 = vsel %vm559_vm7, %v4464_v3, %v4940_v38  ;;  %v4947_v59 = vsel %vm557_vm6, %v4492_v48, %v4946_v37  ;;  %v11387_v38 = vld [vmem:[#allocation123_spill] sm:$0xff] }
 0x613   :  { %v4956_v5 = vsel %vm547_vm1, %v4536_v24, %v4532_v33  ;;  %v4544_v62 = vrot.slane %v11383_v10, %v11152_v51  ;;  %5099 = vadd.xlane.f32.xlu0 %v9752_v4  ;;  %5102 = vadd.xlane.f32.xlu1 %v9773_v20  ;;  %v5113_v40 = vsel %vm586_vm8, %v4927_v49, 0.0  ;;  %v4953_v14 = vsel %vm555_vm5, %v4520_v63, %v4952_v0  ;;  %v11389_v0 = vld [vmem:[#allocation132_spill] sm:$0xff] }
 0x614   :  { %v4528_v16 = vrot.slane %v11384_v7, %v11152_v51  ;;  %v4957_v57 = vsel %vm549_vm2, %v4540_v22, %v4956_v5  ;;  %v4548_v32 = vrot.slane %v11385_v6, %v11152_v51  ;;  %v4954_v29 = vsel %vm557_vm6, %v4524_v28, %v4953_v14 }
 0x615   :  { %v4963_v4 = vsel %vm547_vm1, %v4568_v11, %v4564_v50  ;;  %v4576_v9 = vrot.slane %v9582_v55, %v11152_v51  ;;  %v4600_v20 = vrot.slane %v9690_v34, %v11152_v51  ;;  %v4596_v19 = vrot.slane %v9696_v30, %v11152_v51  ;;  %v9919_v42 = vpop.permute.xlu1 %3527  ;;  %v9928_v31 = vpop.permute.xlu0 %3524 }
 0x616   :  { %v4964_v27 = vsel %vm549_vm2, %v4572_v25, %v4963_v4  ;;  %v4580_v61 = vrot.slane %v9631_v12, %v11152_v51  ;;  %v4604_v3 = vrot.slane %v9728_v2, %v11152_v51  ;;  %v4948_v15 = vsel %vm559_vm7, %v4496_v54, %v4947_v59  ;;  %v11386_v2 = vld [vmem:[#allocation112_spill] sm:$0xff] }
 0x617   :  { %v4958_v55 = vsel %vm551_vm3, %v4544_v62, %v4957_v57  ;;  %v4632_v34 = vrot.slane %v9827_v41, %v11152_v51  ;;  %v4628_v30 = vrot.slane %v9833_v21, %v11152_v51  ;;  %5105 = vadd.xlane.f32.xlu0 %v9807_v18  ;;  %5108 = vadd.xlane.f32.xlu1 %v5107_v52  ;;  %v5116_v12 = vsel %vm586_vm8, %v4934_v46, 0.0  ;;  %v11388_v18 = vld [vmem:[#allocation129_spill] sm:$0xff]  ;;  %v11390_v46 = vld [vmem:[#allocation118_spill] sm:$0xff] }
 0x618   :  { %v4552_v23 = vrot.slane %v11386_v2, %v11152_v51  ;;  %v4959_v48 = vsel %vm553_vm4, %v4548_v32, %v4958_v55  ;;  %v4636_v63 = vrot.slane %v9864_v1, %v11152_v51  ;;  %v4955_v41 = vsel %vm559_vm7, %v4528_v16, %v4954_v29 }
 0x619   :  { %v4556_v21 = vrot.slane %v11387_v38, %v11152_v51  ;;  %v4584_v45 = vrot.slane %v11388_v18, %v11152_v51  ;;  %v4965_v52 = vsel %vm551_vm3, %v4576_v9, %v4964_v27  ;;  %v4970_v24 = vsel %vm547_vm1, %v4600_v20, %v4596_v19  ;;  %v3534_v13 = vpop.permute.xlu1 %3533  ;;  %v3531_v11 = vpop.permute.xlu0 %3530 }
 0x61a   :  { %v4966_v33 = vsel %vm553_vm4, %v4580_v61, %v4965_v52  ;;  %v4588_v44 = vrot.slane %v11389_v0, %v11152_v51  ;;  %v4608_v1 = vrot.slane %v9719_v43, %v11152_v51  ;;  %v4971_v28 = vsel %vm549_vm2, %v4604_v3, %v4970_v24 }
 0x61b   :  { %v4612_v22 = vrot.slane %v9769_v53, %v11152_v51  ;;  %v4977_v49 = vsel %vm547_vm1, %v4632_v34, %v4628_v30  ;;  %v4640_v56 = vrot.slane %v9855_v60, %v11152_v51  ;;  %5111 = vadd.xlane.f32.xlu0 %v5110_v58  ;;  %5114 = vadd.xlane.f32.xlu1 %v5113_v40  ;;  %v5119_v50 = vsel %vm586_vm8, %v4941_v17, 0.0  ;;  %v11391_v17 = vld [vmem:[#allocation130_spill] sm:$0xff] }
 0x61c   :  { %v4560_v37 = vrot.slane %v11390_v46, %v11152_v51  ;;  %v4978_v43 = vsel %vm549_vm2, %v4636_v63, %v4977_v49  ;;  %v4644_v36 = vrot.slane %v9896_v47, %v11152_v51  ;;  %v4960_v53 = vsel %vm555_vm5, %v4552_v23, %v4959_v48 }
 0x61d   :  { %v4664_v54 = vrot.slane %v3534_v13, %v11152_v51  ;;  %v4660_v25 = vrot.slane %v3531_v11, %v11152_v51  ;;  %v4961_v60 = vsel %vm557_vm6, %v4556_v21, %v4960_v53  ;;  %v4967_v58 = vsel %vm555_vm5, %v4584_v45, %v4966_v33  ;;  %v3540_v62 = vpop.permute.xlu1 %3539  ;;  %v3537_v16 = vpop.permute.xlu0 %3536 }
 0x61e   :  { %v4592_v59 = vrot.slane %v11391_v17, %v11152_v51  ;;  %v4616_v5 = vrot.slane %v9756_v39, %v11152_v51  ;;  %v4972_v10 = vsel %vm551_vm3, %v4608_v1, %v4971_v28  ;;  %v4968_v47 = vsel %vm557_vm6, %v4588_v44, %v4967_v58 }
 0x61f   :  { %v4973_v40 = vsel %vm553_vm4, %v4612_v22, %v4972_v10  ;;  %v4648_v14 = vrot.slane %v9888_v35, %v11152_v51  ;;  %v4979_v7 = vsel %vm551_vm3, %v4640_v56, %v4978_v43  ;;  %5117 = vadd.xlane.f32.xlu0 %v5116_v12  ;;  %5120 = vadd.xlane.f32.xlu1 %v5119_v50  ;;  %v5122_v35 = vsel %vm586_vm8, %v4948_v15, 0.0 }
 0x620   :  { %v4620_v57 = vrot.slane %v9803_v8, %v11152_v51  ;;  %v4980_v39 = vsel %vm553_vm4, %v4644_v36, %v4979_v7  ;;  %v4652_v6 = vrot.slane %v9928_v31, %v11152_v51  ;;  %v4668_v32 = vrot.slane %v3537_v16, %v11152_v51 }
 0x621   :  { %v4984_v29 = vsel %vm547_vm1, %v4664_v54, %v4660_v25  ;;  %v4672_v4 = vrot.slane %v3540_v62, %v11152_v51  ;;  %v5125_v9 = vsel %vm586_vm8, %v4955_v41, 0.0  ;;  %v4624_v20 = vrot.slane %v9795_v26, %v11152_v51  ;;  %v3546_v19 = vpop.permute.xlu1 %3545  ;;  %v3543_v55 = vpop.permute.xlu0 %3542 }
 0x622   :  { %v4985_v8 = vsel %vm549_vm2, %v4668_v32, %v4984_v29  ;;  %v4962_v27 = vsel %vm559_vm7, %v4560_v37, %v4961_v60  ;;  %v4969_v61 = vsel %vm559_vm7, %v4592_v59, %v4968_v47  ;;  %v4656_v3 = vrot.slane %v9919_v42, %v11152_v51 }
 0x623   :  { %5123 = vadd.xlane.f32.xlu0 %v5122_v35  ;;  %5126 = vadd.xlane.f32.xlu1 %v5125_v9  ;;  %v4974_v15 = vsel %vm555_vm5, %v4616_v5, %v4973_v40  ;;  %v4981_v34 = vsel %vm555_vm5, %v4648_v14, %v4980_v39  ;;  %v4676_v30 = vrot.slane %v3543_v55, %v11152_v51  ;;  %v5128_v48 = vsel %vm586_vm8, %v4962_v27, 0.0 }
 0x624   :  { %v4975_v26 = vsel %vm557_vm6, %v4620_v57, %v4974_v15  ;;  %v4982_v31 = vsel %vm557_vm6, %v4652_v6, %v4981_v34  ;;  %v4680_v12 = vrot.slane %v3546_v19, %v11152_v51  ;;  %v4986_v2 = vsel %vm551_vm3, %v4672_v4, %v4985_v8 }
 0x625   :  { %v4987_v23 = vsel %vm553_vm4, %v4676_v30, %v4986_v2  ;;  %v3552_v42 = vpop.permute.xlu1 %3551  ;;  %v5131_v63 = vsel %vm586_vm8, %v4969_v61, 0.0  ;;  %v3549_v38 = vpop.permute.xlu0 %3548  ;;  %v4976_v21 = vsel %vm559_vm7, %v4624_v20, %v4975_v26  ;;  %v4983_v18 = vsel %vm559_vm7, %v4656_v3, %v4982_v31  ;;  %v5149_v30 = vld [vmem:[%s10571_s7] sm:$0x3]  ;;  %v11392_v2 = vld [vmem:[#allocation3_spill] sm:$0xff] }
 0x626   :  { %v4688_v41 = vrot.slane %v3552_v42, %v11152_v51  ;;  %v4684_v45 = vrot.slane %v3549_v38, %v11152_v51  ;;  %v4988_v52 = vsel %vm555_vm5, %v4680_v12, %v4987_v23  ;;  %v5134_v33 = vsel %vm586_vm8, %v4976_v21, 0.0 }
 0x627   :  { %5129 = vadd.xlane.f32.xlu0 %v5128_v48  ;;  %5132 = vadd.xlane.f32.xlu1 %v5131_v63  ;;  %v5137_v0 = vsel %vm586_vm8, %v4983_v18, 0.0  ;;  %v5154_v23 = vrot.slane %v5149_v30, %v11392_v2  ;;  %v11393_v63 = vld [vmem:[#allocation4_spill] sm:$0xff] }
 0x628   :  { %v4989_v44 = vsel %vm557_vm6, %v4684_v45, %v4988_v52 }
 0x629   :  { %v3558_v24 = vpop.permute.xlu1 %3557  ;;  %v3555_v1 = vpop.permute.xlu0 %3554  ;;  %v4990_v28 = vsel %vm559_vm7, %v4688_v41, %v4989_v44  ;;  %v5158_v41 = vrot.slane %v5149_v30, %v11393_v63 }
 0x62a   :  { %v4696_v13 = vrot.slane %v3558_v24, %v11152_v51  ;;  %v4692_v22 = vrot.slane %v3555_v1, %v11152_v51  ;;  %v5140_v56 = vsel %vm586_vm8, %v4990_v28, 0.0 }
 0x62b   :  { %5135 = vadd.xlane.f32.xlu0 %v5134_v33  ;;  %5138 = vadd.xlane.f32.xlu1 %v5137_v0 }
 0x62c   :  { %v4991_v46 = vsel %vm547_vm1, %v4696_v13, %v4692_v22 }
 0x62d   :  { %v3564_v49 = vpop.permute.xlu1 %3563  ;;  %v3561_v11 = vpop.permute.xlu0 %3560 }
 0x62e   :  { %v4700_v50 = vrot.slane %v3561_v11, %v11152_v51  ;;  %v4704_v37 = vrot.slane %v3564_v49, %v11152_v51 }
 0x62f   :  { %5141 = vadd.xlane.f32.xlu0 %v5140_v56 }
 0x630   :  { %v4992_v43 = vsel %vm549_vm2, %v4700_v50, %v4991_v46 }
 0x631   :  { %v3570_v36 = vpop.permute.xlu1 %3569  ;;  %v3567_v53 = vpop.permute.xlu0 %3566  ;;  %v4993_v60 = vsel %vm551_vm3, %v4704_v37, %v4992_v43 }
 0x632   :  { %v4708_v54 = vrot.slane %v3567_v53, %v11152_v51  ;;  %v4712_v25 = vrot.slane %v3570_v36, %v11152_v51 }
 0x634   :  { %v4994_v58 = vsel %vm553_vm4, %v4708_v54, %v4993_v60 }
 0x635   :  { %v3576_v17 = vpop.permute.xlu1 %3575  ;;  %v3573_v5 = vpop.permute.xlu0 %3572  ;;  %v4995_v62 = vsel %vm555_vm5, %v4712_v25, %v4994_v58 }
 0x636   :  { %v4720_v59 = vrot.slane %v3576_v17, %v11152_v51  ;;  %v4716_v10 = vrot.slane %v3573_v5, %v11152_v51  ;;  %v6908_v5 = vmov 1983009808  }
 0x638   :  { %v4996_v40 = vsel %vm557_vm6, %v4716_v10, %v4995_v62  ;;  %v5321_v10 = vunpack.c.l.s4 %v6908_v5 }
 0x639   :  { %v3582_v47 = vpop.permute.xlu1 %3581  ;;  %v4997_v7 = vsel %vm559_vm7, %v4720_v59, %v4996_v40 }
 0x63a   :  { %v3579_v14 = vpop.permute.xlu0 %3578  ;;  %v5143_v16 = vsel %vm586_vm8, %v4997_v7, 0.0  ;;  %v4728_v57 = vrot.slane %v3582_v47, %v11152_v51  ;;  %v5322_v47 = vunpack.c.0.s8 %v5321_v10  ;;  %v11397_v7 = vld [vmem:[#allocation2_spill] sm:$0xff] }
 0x63b   :  { %v4724_v39 = vrot.slane %v3579_v14, %v11152_v51  ;;  %5144 = vadd.xlane.f32.xlu1 %v5143_v16 }
 0x63c   :  { %v10102_v16 = vsub.s32 %v5322_v47, %v11397_v7 }
 0x63d   :  { %v3588_v6 = vpop.permute.xlu1 %3587  ;;  %v4998_v4 = vsel %vm547_vm1, %v4728_v57, %v4724_v39 }
 0x63e   :  { %v3585_v32 = vpop.permute.xlu0 %3584  ;;  %v4736_v35 = vrot.slane %v3588_v6, %v11152_v51 }
 0x63f   :  { %v4732_v29 = vrot.slane %v3585_v32, %v11152_v51 }
 0x641   :  { %v4999_v9 = vsel %vm549_vm2, %v4732_v29, %v4998_v4  ;;  %v3594_v20 = vpop.permute.xlu1 %3593  ;;  %vm6679_vm2 = vcmask 326912  }
 0x642   :  { %v3591_v8 = vpop.permute.xlu0 %3590  ;;  %v4744_v27 = vrot.slane %v3594_v20, %v11152_v51  ;;  %v5000_v61 = vsel %vm551_vm3, %v4736_v35, %v4999_v9  ;;  %vm6686_vm3 = vcmask 392512  }
 0x643   :  { %v4740_v19 = vrot.slane %v3591_v8, %v11152_v51 }
 0x645   :  { %v5001_v3 = vsel %vm553_vm4, %v4740_v19, %v5000_v61  ;;  %v3600_v55 = vpop.permute.xlu1 %3599  ;;  %vm6693_vm4 = vcmask 458112  }
 0x646   :  { %v4752_v15 = vrot.slane %v3600_v55, %v11152_v51  ;;  %v3597_v34 = vpop.permute.xlu0 %3596  ;;  %v5002_v31 = vsel %vm555_vm5, %v4744_v27, %v5001_v3  ;;  %vm6700_vm5 = vcmask 523712  }
 0x647   :  { %v4748_v26 = vrot.slane %v3597_v34, %v11152_v51 }
 0x649   :  { %v5003_v12 = vsel %vm557_vm6, %v4748_v26, %v5002_v31  ;;  %vm6707_vm6 = vcmask 589312  }
 0x64a   :  { %v5004_v42 = vsel %vm559_vm7, %v4752_v15, %v5003_v12  ;;  %vm6714_vm7 = vcmask 654912  }
 0x64b   :  { %v5146_v48 = vsel %vm586_vm8, %v5004_v42, 0.0  ;;  %vm6721_vm8 = vcmask 720512  }
 0x64c   :  { %5147 = vadd.xlane.f32.xlu0 %v5146_v48  ;;  %5160 = vbcast.lane.b32.xlu1 %v5154_v23, 256 }
 0x650   :  { %5168 = vbcast.lane.b32.xlu1 %v5154_v23, 272 }
 0x654   :  { %5172 = vbcast.lane.b32.xlu1 %v5154_v23, 280 }
 0x658   :  { %5180 = vbcast.lane.b32.xlu1 %v5154_v23, 296 }
 0x65c   :  { %5188 = vbcast.lane.b32.xlu1 %v5154_v23, 312 }
 0x660   :  { %5196 = vbcast.lane.b32.xlu1 %v5154_v23, 328 }
 0x662   :  { %5164 = vbcast.lane.b32.xlu0 %v5154_v23, 264 }
 0x664   :  { %5204 = vbcast.lane.b32.xlu1 %v5154_v23, 344 }
 0x666   :  { %5176 = vbcast.lane.b32.xlu0 %v5154_v23, 288 }
 0x668   :  { %5212 = vbcast.lane.b32.xlu1 %v5154_v23, 360 }
 0x66a   :  { %5184 = vbcast.lane.b32.xlu0 %v5154_v23, 304 }
 0x66c   :  { %5220 = vbcast.lane.b32.xlu1 %v5154_v23, 376 }
 0x66e   :  { %5192 = vbcast.lane.b32.xlu0 %v5154_v23, 320 }
 0x670   :  { %5227 = vbcast.lane.b32.xlu1 %v5158_v41, 264 }
 0x672   :  { %5200 = vbcast.lane.b32.xlu0 %v5154_v23, 336 }
 0x673   :  { %v5043_v38 = vpop.xlane.xlu0 %5042 }
 0x676   :  { %5208 = vbcast.lane.b32.xlu0 %v5154_v23, 352 }
 0x677   :  { %v5049_v45 = vpop.xlane.xlu0 %5048 }
 0x678   :  { %v10049_v21 = vpop.xlane.xlu1 %5045 }
 0x67a   :  { %5216 = vbcast.lane.b32.xlu0 %v5154_v23, 368 }
 0x67c   :  { %v10051_v18 = vpop.xlane.xlu1 %5054  ;;  %v10055_v24 = vpop.xlane.xlu0 %5051 }
 0x67e   :  { %5223 = vbcast.lane.b32.xlu0 %v5158_v41, 256 }
 0x680   :  { %v10053_v52 = vpop.xlane.xlu1 %5060  ;;  %v10061_v44 = vpop.xlane.xlu0 %5057 }
 0x684   :  { %v10057_v33 = vpop.xlane.xlu1 %5066  ;;  %v10065_v28 = vpop.xlane.xlu0 %5063 }
 0x688   :  { %v10059_v0 = vpop.xlane.xlu1 %5072  ;;  %v10071_v49 = vpop.xlane.xlu0 %5069 }
 0x68c   :  { %v10063_v1 = vpop.xlane.xlu1 %5078  ;;  %v10073_v11 = vpop.xlane.xlu0 %5075 }
 0x690   :  { %v10067_v13 = vpop.xlane.xlu1 %5084  ;;  %v10075_v46 = vpop.xlane.xlu0 %5081 }
 0x694   :  { %v10069_v22 = vpop.xlane.xlu1 %5090  ;;  %v10079_v43 = vpop.xlane.xlu0 %5087 }
 0x695   :  { %11394 = vst [vmem:[#allocation111_spill] sm:$0xff] %v10069_v22 }
 0x698   :  { %v5097_v56 = vpop.xlane.xlu1 %5096  ;;  %v10083_v53 = vpop.xlane.xlu0 %5093 }
 0x699   :  { %11395 = vst [vmem:[#allocation117_spill] sm:$0xff] %v10083_v53 }
 0x69c   :  { %v5103_v50 = vpop.xlane.xlu1 %5102  ;;  %v10087_v25 = vpop.xlane.xlu0 %5099 }
 0x6a0   :  { %v10077_v37 = vpop.xlane.xlu1 %5108  ;;  %v5106_v58 = vpop.xlane.xlu0 %5105 }
 0x6a4   :  { %v10081_v36 = vpop.xlane.xlu1 %5114  ;;  %v10093_v59 = vpop.xlane.xlu0 %5111 }
 0x6a8   :  { %v10085_v54 = vpop.xlane.xlu1 %5120  ;;  %v10097_v40 = vpop.xlane.xlu0 %5117 }
 0x6ac   :  { %v10089_v60 = vpop.xlane.xlu1 %5126  ;;  %v10104_v32 = vpop.xlane.xlu0 %5123 }
 0x6b0   :  { %v10091_v17 = vpop.xlane.xlu1 %5132  ;;  %v10108_v61 = vpop.xlane.xlu0 %5129 }
 0x6b4   :  { %v10095_v62 = vpop.xlane.xlu1 %5138  ;;  %v10111_v30 = vpop.xlane.xlu0 %5135 }
 0x6b8   :  { %v10116_v42 = vpop.xlane.xlu0 %5141 }
 0x6b9   :  { %11398 = vst [vmem:[#allocation125_spill] sm:$0xff] %v10116_v42 }
 0x6c4   :  { %v10099_v14 = vpop.xlane.xlu1 %5144 }
 0x6c5   :  { %11396 = vst [vmem:[#allocation120_spill] sm:$0xff] %v10099_v14 }
 0x6c8   :  { %v5161_v57 = vpop.permute.xlu1 %5160 }
 0x6c9   :  { %v5247_v39 = vmul.f32 %v5161_v57, %v5043_v38  ;;  %v5265_v6 = vmul.f32 %v5161_v57, %v5097_v56 }
 0x6cb   :  { %v5319_v29 = vcombine.high %v5247_v39, %v5247_v39  ;;  %v5326_v4 = vrot.slane %v5247_v39, %v10102_v16  ;;  %v5625_v10 = vcombine.high %v5265_v6, %v5265_v6  ;;  %v5632_v39 = vrot.slane %v5265_v6, %v10102_v16 }
 0x6cc   :  { %v5169_v35 = vpop.permute.xlu1 %5168 }
 0x6cd   :  { %v5333_v9 = vrot.slane %v5319_v29, %v10102_v16  ;;  %v5334_v20 = vcombine.high %v5326_v4, %v5326_v4  ;;  %v5267_v8 = vmul.f32 %v5169_v35, %v5103_v50  ;;  %v5249_v27 = vmul.f32 %v5169_v35, %v5049_v45 }
 0x6ce   :  { %v5639_v29 = vrot.slane %v5625_v10, %v10102_v16 }
 0x6cf   :  { %v5335_v19 = vcombine.high %v5333_v9, %v5333_v9  ;;  %v5931_v55 = vcombine.low %v5326_v4, %v5334_v20  ;;  %v5353_v15 = vcombine.high %v5249_v27, %v5249_v27  ;;  %v5360_v2 = vrot.slane %v5249_v27, %v10102_v16 }
 0x6d0   :  { %v5173_v57 = vpop.permute.xlu1 %5172  ;;  %v5659_v35 = vcombine.high %v5267_v8, %v5267_v8 }
 0x6d1   :  { %v5932_v3 = vcombine.low %v5333_v9, %v5335_v19  ;;  %v5939_v26 = vrot.slane %v5931_v55, %v10102_v16  ;;  %v5367_v31 = vrot.slane %v5353_v15, %v10102_v16  ;;  %v5368_v48 = vcombine.high %v5360_v2, %v5360_v2 }
 0x6d2   :  { %v5666_v9 = vrot.slane %v5267_v8, %v10102_v16  ;;  %v5250_v20 = vmul.f32 %v5173_v57, %v10055_v24  ;;  %v5640_v19 = vcombine.high %v5632_v39, %v5632_v39  ;;  %v5268_v27 = vmul.f32 %v5173_v57, %v5106_v58 }
 0x6d3   :  { %v5946_v34 = vrot.slane %v5932_v3, %v10102_v16  ;;  %v5369_v23 = vcombine.high %v5367_v31, %v5367_v31  ;;  %v5965_v38 = vcombine.low %v5360_v2, %v5368_v48  ;;  %v5641_v55 = vcombine.high %v5639_v29, %v5639_v29 }
 0x6d4   :  { %v5181_v3 = vpop.permute.xlu1 %5180  ;;  %v5377_v8 = vrot.slane %v5250_v20, %v10102_v16  ;;  %v5676_v2 = vcombine.high %v5268_v27, %v5268_v27 }
 0x6d5   :  { %v5947_v12 = vcombine.low %v5939_v26, %v5946_v34  ;;  %v5966_v63 = vcombine.low %v5367_v31, %v5369_v23  ;;  %v10118_v41 = vpop.xlane.xlu0 %5147  ;;  %v5973_v56 = vrot.slane %v5965_v38, %v10102_v16  ;;  %v5674_v34 = vcombine.high %v5666_v9, %v5666_v9 }
 0x6d6   :  { %11399 = vst [vmem:[#allocation128_spill] sm:$0xff] %v10118_v41  ;;  %v5370_v26 = vcombine.high %v5250_v20, %v5250_v20  ;;  %v5252_v24 = vmul.f32 %v5181_v3, %v10061_v44  ;;  %v10139_v58 = vcombine.low %v5639_v29, %v5641_v55  ;;  %v5385_v57 = vcombine.high %v5377_v8, %v5377_v8 }
 0x6d7   :  { %6544 = vperm.xlu0 %6881, %v5947_v12   ;;  %v5980_v45 = vrot.slane %v5966_v63, %v10102_v16  ;;  %v10135_v12 = vcombine.low %v5632_v39, %v5640_v19  ;;  %v10141_v63 = vcombine.low %v5666_v9, %v5674_v34  ;;  %v5690_v39 = vrot.slane %v5676_v2, %v10102_v16 }
 0x6d8   :  { %v5384_v38 = vrot.slane %v5370_v26, %v10102_v16  ;;  %v5404_v29 = vcombine.high %v5252_v24, %v5252_v24  ;;  %v5411_v55 = vrot.slane %v5252_v24, %v10102_v16 }
 0x6d9   :  { %v10122_v50 = vpop.permute.xlu0 %5164  ;;  %v5981_v5 = vcombine.low %v5973_v56, %v5980_v45  ;;  %v5683_v45 = vrot.slane %v5268_v27, %v10102_v16  ;;  %v5189_v56 = vpop.permute.xlu1 %5188  ;;  %v5692_v2 = vcombine.high %v5690_v39, %v5690_v39 }
 0x6da   :  { %v5248_v47 = vmul.f32 %v10122_v50, %v10049_v21  ;;  %v5673_v21 = vrot.slane %v5659_v35, %v10102_v16  ;;  %v5272_v35 = vmul.f32 %v5189_v56, %v10097_v40  ;;  %v5386_v27 = vcombine.high %v5384_v38, %v5384_v38 }
 0x6db   :  { %6550 = vperm.xlu0 %6881, %v5981_v5   ;;  %v5270_v5 = vmul.f32 %v5181_v3, %v10093_v59  ;;  %v5691_v3 = vcombine.high %v5683_v45, %v5683_v45  ;;  %v10162_v40 = vcombine.low %v5377_v8, %v5385_v57  ;;  %v5419_v8 = vcombine.high %v5411_v55, %v5411_v55 }
 0x6dc   :  { %v5336_v4 = vcombine.high %v5248_v47, %v5248_v47  ;;  %v5343_v6 = vrot.slane %v5248_v47, %v10102_v16  ;;  %v5675_v48 = vcombine.high %v5673_v21, %v5673_v21  ;;  %v5983_v44 = vcombine.low %v5384_v38, %v5386_v27 }
 0x6dd   :  { %v10133_v31 = vpop.permute.xlu0 %5176  ;;  %v5710_v34 = vcombine.high %v5270_v5, %v5270_v5  ;;  %v10168_v59 = vcombine.low %v5683_v45, %v5691_v3  ;;  %v10183_v3 = vcombine.low %v5690_v39, %v5692_v2  ;;  %v10187_v7 = vcombine.low %v5411_v55, %v5419_v8 }
 0x6de   :  { %v5350_v15 = vrot.slane %v5336_v4, %v10102_v16  ;;  %v5351_v10 = vcombine.high %v5343_v6, %v5343_v6  ;;  %v5251_v47 = vmul.f32 %v10133_v31, %v10051_v18  ;;  %v5254_v4 = vmul.f32 %v5189_v56, %v10065_v28 }
 0x6df   :  { %v10157_v19 = vcombine.low %v5673_v21, %v5675_v48  ;;  %v5744_v48 = vcombine.high %v5272_v35, %v5272_v35 }
 0x6e0   :  { %v5352_v23 = vcombine.high %v5350_v15, %v5350_v15  ;;  %v5948_v26 = vcombine.low %v5343_v6, %v5351_v10  ;;  %v5387_v28 = vcombine.high %v5251_v47, %v5251_v47  ;;  %v5438_v56 = vcombine.high %v5254_v4, %v5254_v4 }
 0x6e1   :  { %v10153_v20 = vpop.permute.xlu0 %5184  ;;  %v5445_v21 = vrot.slane %v5254_v4, %v10102_v16  ;;  %v5266_v6 = vmul.f32 %v10122_v50, %v10087_v25  ;;  %v5394_v24 = vrot.slane %v5251_v47, %v10102_v16  ;;  %v5724_v10 = vrot.slane %v5710_v34, %v10102_v16 }
 0x6e2   :  { %v5949_v9 = vcombine.low %v5350_v15, %v5352_v23  ;;  %v5418_v15 = vrot.slane %v5404_v29, %v10102_v16  ;;  %v5717_v23 = vrot.slane %v5270_v5, %v10102_v16  ;;  %v5956_v57 = vrot.slane %v5948_v26, %v10102_v16 }
 0x6e3   :  { %v5401_v5 = vrot.slane %v5387_v28, %v10102_v16  ;;  %v5990_v4 = vrot.slane %v10162_v40, %v10102_v16  ;;  %v5452_v25 = vrot.slane %v5438_v56, %v10102_v16  ;;  %v5453_v50 = vcombine.high %v5445_v21, %v5445_v21  ;;  %v5197_v40 = vpop.permute.xlu1 %5196 }
 0x6e4   :  { %v5963_v18 = vrot.slane %v5949_v9, %v10102_v16  ;;  %v5420_v38 = vcombine.high %v5418_v15, %v5418_v15  ;;  %v5725_v45 = vcombine.high %v5717_v23, %v5717_v23  ;;  %v5751_v9 = vrot.slane %v5272_v35, %v10102_v16 }
 0x6e5   :  { %v10176_v29 = vpop.permute.xlu0 %5192  ;;  %v5758_v47 = vrot.slane %v5744_v48, %v10102_v16  ;;  %v5642_v26 = vcombine.high %v5266_v6, %v5266_v6  ;;  %v5402_v28 = vcombine.high %v5394_v24, %v5394_v24  ;;  %v5726_v51 = vcombine.high %v5724_v10, %v5724_v10 }
 0x6e6   :  { %v5964_v27 = vcombine.low %v5956_v57, %v5963_v18  ;;  %v5403_v41 = vcombine.high %v5401_v5, %v5401_v5  ;;  %v5253_v35 = vmul.f32 %v10153_v20, %v10053_v52  ;;  %v10191_v56 = vcombine.low %v5418_v15, %v5420_v38 }
 0x6e7   :  { %v10193_v48 = vcombine.low %v5717_v23, %v5725_v45  ;;  %v5759_v39 = vcombine.high %v5751_v9, %v5751_v9  ;;  %v5255_v18 = vmul.f32 %v10176_v29, %v10057_v33  ;;  %v5454_v2 = vcombine.high %v5452_v25, %v5452_v25 }
 0x6e8   :  { %6547 = vperm.xlu1 %6882, %v5964_v27   ;;  %v5760_v57 = vcombine.high %v5758_v47, %v5758_v47  ;;  %v10197_v34 = vcombine.low %v5445_v21, %v5453_v50  ;;  %v5649_v55 = vrot.slane %v5266_v6, %v10102_v16  ;;  %v5656_v14 = vrot.slane %v5642_v26, %v10102_v16 }
 0x6e9   :  { %11400 = vst [vmem:[#allocation131_spill] sm:$0xff] %v10193_v48  ;;  %v10200_v8 = vpop.permute.xlu0 %5200  ;;  %v5256_v52 = vmul.f32 %v5197_v40, %v10071_v49  ;;  %v5274_v15 = vmul.f32 %v5197_v40, %v10104_v32  ;;  %v5999_v23 = vcombine.low %v5394_v24, %v5402_v28  ;;  %v6000_v45 = vcombine.low %v5401_v5, %v5403_v41  ;;  %v5205_v41 = vpop.permute.xlu1 %5204 }
 0x6ea   :  { %v5421_v33 = vcombine.high %v5253_v35, %v5253_v35  ;;  %v5997_v27 = vrot.slane %v5983_v44, %v10102_v16  ;;  %v10208_v21 = vcombine.low %v5724_v10, %v5726_v51  ;;  %v10212_v50 = vcombine.low %v5751_v9, %v5759_v39 }
 0x6eb   :  { %v5455_v26 = vcombine.high %v5255_v18, %v5255_v18  ;;  %v10214_v22 = vcombine.low %v5452_v25, %v5454_v2  ;;  %v10218_v32 = vcombine.low %v5758_v47, %v5760_v57  ;;  %v5657_v24 = vcombine.high %v5649_v55, %v5649_v55 }
 0x6ec   :  { %11401 = vst [vmem:[#allocation133_spill] sm:$0xff] %v10212_v50  ;;  %v5658_v5 = vcombine.high %v5656_v14, %v5656_v14  ;;  %v5472_v28 = vcombine.high %v5256_v52, %v5256_v52  ;;  %v5778_v44 = vcombine.high %v5274_v15, %v5274_v15  ;;  %v6007_v51 = vrot.slane %v5999_v23, %v10102_v16 }
 0x6ed   :  { %11402 = vst [vmem:[#allocation136_spill] sm:$0xff] %v10218_v32  ;;  %v5428_v10 = vrot.slane %v5253_v35, %v10102_v16  ;;  %v5435_v9 = vrot.slane %v5421_v33, %v10102_v16  ;;  %v5998_v40 = vcombine.low %v5990_v4, %v5997_v27  ;;  %v6014_v25 = vrot.slane %v6000_v45, %v10102_v16  ;;  %v10224_v39 = vpop.permute.xlu0 %5208 }
 0x6ee   :  { %v5479_v2 = vrot.slane %v5256_v52, %v10102_v16  ;;  %v5785_v47 = vrot.slane %v5274_v15, %v10102_v16  ;;  %v5462_v57 = vrot.slane %v5255_v18, %v10102_v16  ;;  %v5469_v6 = vrot.slane %v5455_v26, %v10102_v16 }
 0x6ef   :  { %v10230_v49 = vcombine.low %v5649_v55, %v5657_v24  ;;  %v5269_v35 = vmul.f32 %v10133_v31, %v10077_v37  ;;  %v5257_v4 = vmul.f32 %v10200_v8, %v10059_v0  ;;  %6553 = vperm.xlu1 %6882, %v5998_v40   ;;  %v6015_v23 = vcombine.low %v6007_v51, %v6014_v25  ;;  %v10247_v0 = vpop.permute.xlu1 %5212 }
 0x6f0   :  { %v5486_v52 = vrot.slane %v5472_v28, %v10102_v16  ;;  %v5258_v15 = vmul.f32 %v5205_v41, %v10073_v11  ;;  %v5259_v18 = vmul.f32 %v10224_v39, %v10063_v1  ;;  %v10242_v55 = vcombine.low %v5656_v14, %v5658_v5 }
 0x6f1   :  { %v10245_v33 = vrot.slane %v5778_v44, %v10102_v16  ;;  %v5436_v37 = vcombine.high %v5428_v10, %v5428_v10  ;;  %v5437_v31 = vcombine.high %v5435_v9, %v5435_v9  ;;  %6556 = vperm.xlu0 %6881, %v6015_v23   ;;  %v5487_v27 = vcombine.high %v5479_v2, %v5479_v2  ;;  %v10264_v53 = vpop.permute.xlu0 %5216 }
 0x6f2   :  { %v5793_v26 = vcombine.high %v5785_v47, %v5785_v47  ;;  %v5470_v24 = vcombine.high %v5462_v57, %v5462_v57  ;;  %v5471_v51 = vcombine.high %v5469_v6, %v5469_v6  ;;  %v5693_v28 = vcombine.high %v5269_v35, %v5269_v35 }
 0x6f3   :  { %v10252_v1 = vrot.slane %v5269_v35, %v10102_v16  ;;  %v5489_v14 = vcombine.high %v5257_v4, %v5257_v4  ;;  %v5488_v5 = vcombine.high %v5486_v52, %v5486_v52  ;;  %v5506_v44 = vcombine.high %v5258_v15, %v5258_v15 }
 0x6f4   :  { %v5260_v40 = vmul.f32 %v10247_v0, %v10075_v46  ;;  %v5523_v25 = vcombine.high %v5259_v18, %v5259_v18  ;;  %v5794_v23 = vcombine.high %v10245_v33, %v10245_v33  ;;  %v6033_v45 = vcombine.low %v5428_v10, %v5436_v37 }
 0x6f5   :  { %v6034_v38 = vcombine.low %v5435_v9, %v5437_v31  ;;  %v6031_v50 = vrot.slane %v10191_v56, %v10102_v16  ;;  %v10260_v11 = vcombine.low %v5479_v2, %v5487_v27  ;;  %v10262_v32 = vcombine.low %v5785_v47, %v5793_v26 }
 0x6f6   :  { %v6067_v35 = vcombine.low %v5462_v57, %v5470_v24  ;;  %v6068_v48 = vcombine.low %v5469_v6, %v5471_v51  ;;  %v10267_v42 = vrot.slane %v5693_v28, %v10102_v16  ;;  %v10270_v46 = vmul.f32 %v5205_v41, %v10108_v61 }
 0x6f7   :  { %v5496_v10 = vrot.slane %v5257_v4, %v10102_v16  ;;  %v5503_v9 = vrot.slane %v5489_v14, %v10102_v16  ;;  %v5520_v56 = vrot.slane %v5506_v44, %v10102_v16  ;;  %v5540_v2 = vcombine.high %v5260_v40, %v5260_v40 }
 0x6f8   :  { %v5530_v47 = vrot.slane %v5259_v18, %v10102_v16  ;;  %v5537_v57 = vrot.slane %v5523_v25, %v10102_v16  ;;  %v6041_v6 = vrot.slane %v6033_v45, %v10102_v16  ;;  %v11403_v37 = vrot.slane %v10187_v7, %v10102_v16 }
 0x6f9   :  { %v6048_v61 = vrot.slane %v6034_v38, %v10102_v16  ;;  %v5261_v41 = vmul.f32 %v10264_v53, %v10067_v13  ;;  %v5513_v4 = vrot.slane %v5258_v15, %v10102_v16  ;;  %v6075_v27 = vrot.slane %v6067_v35, %v10102_v16 }
 0x6fa   :  { %v6032_v31 = vcombine.low %v11403_v37, %v6031_v50  ;;  %v6065_v18 = vrot.slane %v10214_v22, %v10102_v16  ;;  %v6082_v26 = vrot.slane %v6068_v48, %v10102_v16  ;;  %v5504_v24 = vcombine.high %v5496_v10, %v5496_v10 }
 0x6fb   :  { %v5505_v45 = vcombine.high %v5503_v9, %v5503_v9  ;;  %v6049_v51 = vcombine.low %v6041_v6, %v6048_v61  ;;  %v5557_v7 = vcombine.high %v5261_v41, %v5261_v41  ;;  %v5522_v50 = vcombine.high %v5520_v56, %v5520_v56 }
 0x6fc   :  { %6559 = vperm.xlu1 %6882, %v6032_v31   ;;  %v5554_v38 = vrot.slane %v5540_v2, %v10102_v16  ;;  %v5538_v28 = vcombine.high %v5530_v47, %v5530_v47  ;;  %v5539_v14 = vcombine.high %v5537_v57, %v5537_v57  ;;  %v5564_v13 = vrot.slane %v5261_v41, %v10102_v16 }
 0x6fd   :  { %6562 = vperm.xlu0 %6881, %v6049_v51   ;;  %v5571_v15 = vrot.slane %v5557_v7, %v10102_v16  ;;  %v11404_v22 = vrot.slane %v10197_v34, %v10102_v16  ;;  %v6083_v48 = vcombine.low %v6075_v27, %v6082_v26  ;;  %v6085_v25 = vcombine.low %v5486_v52, %v5488_v5 }
 0x6fe   :  { %v5708_v35 = vcombine.high %v10252_v1, %v10252_v1  ;;  %v5521_v6 = vcombine.high %v5513_v4, %v5513_v4  ;;  %v5547_v37 = vrot.slane %v5260_v40, %v10102_v16  ;;  %v6092_v2 = vrot.slane %v10260_v11, %v10102_v16 }
 0x6ff   :  { %v6066_v44 = vcombine.low %v11404_v22, %v6065_v18  ;;  %v6101_v31 = vcombine.low %v5496_v10, %v5504_v24  ;;  %v6102_v61 = vcombine.low %v5503_v9, %v5505_v45  ;;  %v5573_v41 = vcombine.high %v5571_v15, %v5571_v15 }
 0x700   :  { %v5271_v51 = vmul.f32 %v10153_v20, %v10081_v36  ;;  %v5556_v34 = vcombine.high %v5554_v38, %v5554_v38  ;;  %v6135_v18 = vcombine.low %v5530_v47, %v5538_v28  ;;  %v6136_v27 = vcombine.low %v5537_v57, %v5539_v14 }
 0x701   :  { %6565 = vperm.xlu1 %6882, %v6066_v44   ;;  %v5709_v52 = vcombine.high %v10267_v42, %v10267_v42  ;;  %v5812_v5 = vcombine.high %v10270_v46, %v10270_v46  ;;  %v6119_v40 = vcombine.low %v5520_v56, %v5522_v50  ;;  %v5572_v26 = vcombine.high %v5564_v13, %v5564_v13 }
 0x702   :  { %6568 = vperm.xlu0 %6881, %v6083_v48   ;;  %v5819_v11 = vrot.slane %v10270_v46, %v10102_v16  ;;  %v6118_v10 = vcombine.low %v5513_v4, %v5521_v6  ;;  %v5278_v9 = vmul.f32 %v10247_v0, %v10111_v30  ;;  %v5555_v36 = vcombine.high %v5547_v37, %v5547_v37 }
 0x703   :  { %v6109_v20 = vrot.slane %v6101_v31, %v10102_v16  ;;  %v6170_v47 = vcombine.low %v5571_v15, %v5573_v41  ;;  %v6099_v57 = vrot.slane %v6085_v25, %v10102_v16  ;;  %v6116_v24 = vrot.slane %v6102_v61, %v10102_v16 }
 0x704   :  { %v5727_v45 = vcombine.high %v5271_v51, %v5271_v51  ;;  %v6153_v7 = vcombine.low %v5554_v38, %v5556_v34  ;;  %v6143_v56 = vrot.slane %v6135_v18, %v10102_v16  ;;  %v6150_v50 = vrot.slane %v6136_v27, %v10102_v16 }
 0x705   :  { %v6169_v28 = vcombine.low %v5564_v13, %v5572_v26  ;;  %v6100_v46 = vcombine.low %v6092_v2, %v6099_v57  ;;  %v6117_v4 = vcombine.low %v6109_v20, %v6116_v24  ;;  %v6133_v14 = vrot.slane %v6119_v40, %v10102_v16 }
 0x706   :  { %v6126_v30 = vrot.slane %v6118_v10, %v10102_v16  ;;  %v5734_v0 = vrot.slane %v5271_v51, %v10102_v16  ;;  %v5846_v15 = vcombine.high %v5278_v9, %v5278_v9  ;;  %v5273_v22 = vmul.f32 %v10176_v29, %v10085_v54 }
 0x707   :  { %v6152_v44 = vcombine.low %v5547_v37, %v5555_v36  ;;  %6571 = vperm.xlu1 %6882, %v6100_v46   ;;  %6574 = vperm.xlu0 %6881, %v6117_v4   ;;  %v6151_v38 = vcombine.low %v6143_v56, %v6150_v50  ;;  %v6184_v48 = vrot.slane %v6170_v47, %v10102_v16 }
 0x708   :  { %v10322_v13 = vcombine.low %v10252_v1, %v5708_v35  ;;  %v5826_v25 = vrot.slane %v5812_v5, %v10102_v16  ;;  %v5827_v6 = vcombine.high %v5819_v11, %v5819_v11  ;;  %v5853_v2 = vrot.slane %v5278_v9, %v10102_v16 }
 0x709   :  { %v5741_v31 = vrot.slane %v5727_v45, %v10102_v16  ;;  %v6177_v61 = vrot.slane %v6169_v28, %v10102_v16  ;;  %v6134_v41 = vcombine.low %v6126_v30, %v6133_v14  ;;  %v6167_v54 = vrot.slane %v6153_v7, %v10102_v16 }
 0x70a   :  { %v5742_v29 = vcombine.high %v5734_v0, %v5734_v0  ;;  %v5860_v37 = vrot.slane %v5846_v15, %v10102_v16  ;;  %v5761_v51 = vcombine.high %v5273_v22, %v5273_v22  ;;  %v5768_v34 = vrot.slane %v5273_v22, %v10102_v16 }
 0x70b   :  { %v6160_v1 = vrot.slane %v6152_v44, %v10102_v16  ;;  %v5275_v35 = vmul.f32 %v10200_v8, %v10089_v60  ;;  %6577 = vperm.xlu1 %6882, %v6134_v41   ;;  %6580 = vperm.xlu0 %6881, %v6151_v38   ;;  %v6185_v18 = vcombine.low %v6177_v61, %v6184_v48  ;;  %v5221_v60 = vpop.permute.xlu1 %5220  ;;  %v5224_v44 = vpop.permute.xlu0 %5223  ;;  %v11410_v61 = vld [vmem:[#allocation125_spill] sm:$0xff] }
 0x70c   :  { %v10338_v27 = vcombine.low %v10245_v33, %v5794_v23  ;;  %v6398_v5 = vrot.slane %v10262_v32, %v10102_v16  ;;  %v5828_v40 = vcombine.high %v5826_v25, %v5826_v25  ;;  %v5861_v26 = vcombine.high %v5853_v2, %v5853_v2 }
 0x70d   :  { %v6306_v10 = vcombine.low %v10267_v42, %v5709_v52  ;;  %v6313_v9 = vrot.slane %v10322_v13, %v10102_v16  ;;  %v6168_v8 = vcombine.low %v6160_v1, %v6167_v54  ;;  %v6269_v36 = vrot.slane %v10242_v55, %v10102_v16 }
 0x70e   :  { %v10347_v20 = vcombine.low %v5819_v11, %v5827_v6  ;;  %v5743_v47 = vcombine.high %v5741_v31, %v5741_v31  ;;  %v10349_v33 = vcombine.low %v5734_v0, %v5742_v29  ;;  %v5775_v23 = vrot.slane %v5761_v51, %v10102_v16  ;;  %v11411_v29 = vld [vmem:[#allocation117_spill] sm:$0xff] }
 0x70f   :  { %v5862_v57 = vcombine.high %v5860_v37, %v5860_v37  ;;  %v5776_v24 = vcombine.high %v5768_v34, %v5768_v34  ;;  %v5795_v45 = vcombine.high %v5275_v35, %v5275_v35  ;;  %6583 = vperm.xlu1 %6882, %v6168_v8   ;;  %6586 = vperm.xlu0 %6881, %v6185_v18  }
 0x710   :  { %v10352_v42 = vcombine.low %v5826_v25, %v5828_v40  ;;  %v10354_v52 = vcombine.low %v5853_v2, %v5861_v26  ;;  %v5262_v7 = vmul.f32 %v5221_v60, %v10079_v43  ;;  %v5277_v55 = vmul.f32 %v10224_v39, %v10091_v17  ;;  %v11413_v40 = vld [vmem:[#allocation131_spill] sm:$0xff] }
 0x711   :  { %v11405_v11 = vrot.slane %v10139_v58, %v10102_v16  ;;  %v11406_v56 = vrot.slane %v10135_v12, %v10102_v16  ;;  %v11407_v28 = vrot.slane %v10230_v49, %v10102_v16  ;;  %v6286_v4 = vrot.slane %v10157_v19, %v10102_v16 }
 0x712   :  { %v6303_v43 = vrot.slane %v10183_v3, %v10102_v16  ;;  %v6432_v17 = vrot.slane %v10347_v20, %v10102_v16  ;;  %v6340_v39 = vcombine.low %v5741_v31, %v5743_v47  ;;  %v6347_v58 = vrot.slane %v10349_v33, %v10102_v16  ;;  %v5228_v3 = vpop.permute.xlu1 %5227 }
 0x713   :  { %v6253_v50 = vcombine.low %v11406_v56, %v11405_v11  ;;  %v6270_v46 = vcombine.low %v11407_v28, %v6269_v36  ;;  %v5777_v14 = vcombine.high %v5775_v23, %v5775_v23  ;;  %v10376_v12 = vcombine.low %v5860_v37, %v5862_v57  ;;  %v11416_v11 = vld [vmem:[#allocation120_spill] sm:$0xff] }
 0x714   :  { %v6373_v30 = vcombine.low %v5768_v34, %v5776_v24  ;;  %v5809_v49 = vrot.slane %v5795_v45, %v10102_v16  ;;  %v6466_v19 = vrot.slane %v10354_v52, %v10102_v16  ;;  %v5574_v0 = vcombine.high %v5262_v7, %v5262_v7  ;;  %v11412_v34 = vld [vmem:[#allocation111_spill] sm:$0xff] }
 0x715   :  { %6598 = vperm.xlu1 %6882, %v6253_v50   ;;  %6601 = vperm.xlu0 %6881, %v6270_v46   ;;  %v5829_v15 = vcombine.high %v5277_v55, %v5277_v55  ;;  %v5279_v22 = vmul.f32 %v10264_v53, %v10095_v62  ;;  %v11408_v38 = vrot.slane %v10141_v63, %v10102_v16  ;;  %v11417_v46 = vld [vmem:[#allocation133_spill] sm:$0xff] }
 0x716   :  { %v11409_v13 = vrot.slane %v10168_v59, %v10102_v16  ;;  %v6320_v6 = vrot.slane %v6306_v10, %v10102_v16  ;;  %v6337_v2 = vrot.slane %v10208_v21, %v10102_v16  ;;  %v6374_v31 = vcombine.low %v5775_v23, %v5777_v14 }
 0x717   :  { %v6287_v48 = vcombine.low %v11408_v38, %v6286_v4  ;;  %v5280_v41 = vmul.f32 %v5221_v60, %v11410_v61  ;;  %v10394_v54 = vrot.slane %v5262_v7, %v10102_v16  ;;  %v5802_v53 = vrot.slane %v5275_v35, %v10102_v16  ;;  %v11415_v60 = vld [vmem:[#allocation136_spill] sm:$0xff] }
 0x718   :  { %v6304_v25 = vcombine.low %v11409_v13, %v6303_v43  ;;  %v6381_v62 = vrot.slane %v6373_v30, %v10102_v16  ;;  %v5811_v63 = vcombine.high %v5809_v49, %v5809_v49  ;;  %v5264_v37 = vmul.f32 %v5228_v3, %v11411_v29 }
 0x719   :  { %6604 = vperm.xlu1 %6882, %v6287_v48   ;;  %v5588_v59 = vrot.slane %v5574_v0, %v10102_v16  ;;  %v5843_v51 = vrot.slane %v5829_v15, %v10102_v16  ;;  %v5863_v21 = vcombine.high %v5279_v22, %v5279_v22  ;;  %v5263_v1 = vmul.f32 %v5224_v44, %v11412_v34  ;;  %v11419_v15 = vld [vmem:[#allocation128_spill] sm:$0xff] }
 0x71a   :  { %6607 = vperm.xlu0 %6881, %v6304_v25   ;;  %v6321_v18 = vcombine.low %v6313_v9, %v6320_v6  ;;  %v11414_v26 = vrot.slane %v11413_v40, %v10102_v16  ;;  %v6354_v35 = vrot.slane %v6340_v39, %v10102_v16  ;;  %v6371_v8 = vrot.slane %v11415_v60, %v10102_v16 }
 0x71b   :  { %v5589_v36 = vcombine.high %v10394_v54, %v10394_v54  ;;  %v5880_v47 = vcombine.high %v5280_v41, %v5280_v41  ;;  %v5810_v33 = vcombine.high %v5802_v53, %v5802_v53  ;;  %v5836_v23 = vrot.slane %v5277_v55, %v10102_v16 }
 0x71c   :  { %v6338_v10 = vcombine.low %v11414_v26, %v6337_v2  ;;  %v10412_v57 = vrot.slane %v5280_v41, %v10102_v16  ;;  %v6408_v9 = vcombine.low %v5809_v49, %v5811_v63  ;;  %v5608_v24 = vcombine.high %v5264_v37, %v5264_v37 }
 0x71d   :  { %6610 = vperm.xlu1 %6882, %v6321_v18   ;;  %v5845_v45 = vcombine.high %v5843_v51, %v5843_v51  ;;  %v5877_v7 = vrot.slane %v5863_v21, %v10102_v16  ;;  %v5281_v56 = vmul.f32 %v5224_v44, %v11416_v11  ;;  %v5591_v50 = vcombine.high %v5263_v1, %v5263_v1 }
 0x71e   :  { %6613 = vperm.xlu0 %6881, %v6338_v10   ;;  %v6355_v28 = vcombine.low %v6347_v58, %v6354_v35  ;;  %v11418_v4 = vrot.slane %v11417_v46, %v10102_v16  ;;  %v6388_v55 = vrot.slane %v6374_v31, %v10102_v16  ;;  %v6405_v39 = vrot.slane %v10338_v27, %v10102_v16 }
 0x71f   :  { %v5590_v14 = vcombine.high %v5588_v59, %v5588_v59  ;;  %v5894_v30 = vrot.slane %v5880_v47, %v10102_v16  ;;  %v6407_v49 = vcombine.low %v5802_v53, %v5810_v33  ;;  %v5844_v0 = vcombine.high %v5836_v23, %v5836_v23 }
 0x720   :  { %v6372_v43 = vcombine.low %v11418_v4, %v6371_v8  ;;  %v5282_v38 = vmul.f32 %v5228_v3, %v11419_v15  ;;  %v5622_v44 = vrot.slane %v5608_v24, %v10102_v16  ;;  %v5870_v58 = vrot.slane %v5279_v22, %v10102_v16 }
 0x721   :  { %6616 = vperm.xlu1 %6882, %v6355_v28   ;;  %v6442_v48 = vcombine.low %v5843_v51, %v5845_v45  ;;  %v5879_v13 = vcombine.high %v5877_v7, %v5877_v7  ;;  %v5605_v25 = vrot.slane %v5591_v50, %v10102_v16  ;;  %v5897_v6 = vcombine.high %v5281_v56, %v5281_v56 }
 0x722   :  { %6619 = vperm.xlu0 %6881, %v6372_v43   ;;  %v6389_v2 = vcombine.low %v6381_v62, %v6388_v55  ;;  %v6406_v27 = vcombine.low %v6398_v5, %v6405_v39  ;;  %v6422_v31 = vrot.slane %v6408_v9, %v10102_v16  ;;  %v6439_v3 = vrot.slane %v10352_v42, %v10102_v16 }
 0x723   :  { %v6187_v61 = vcombine.low %v5588_v59, %v5590_v14  ;;  %v6415_v22 = vrot.slane %v6407_v49, %v10102_v16  ;;  %v5615_v41 = vrot.slane %v5264_v37, %v10102_v16  ;;  %v6441_v53 = vcombine.low %v5836_v23, %v5844_v0 }
 0x724   :  { %v5914_v63 = vcombine.high %v5282_v38, %v5282_v38  ;;  %v5878_v29 = vcombine.high %v5870_v58, %v5870_v58  ;;  %v5598_v51 = vrot.slane %v5263_v1, %v10102_v16  ;;  %v5624_v62 = vcombine.high %v5622_v44, %v5622_v44 }
 0x725   :  { %6622 = vperm.xlu1 %6882, %v6389_v2   ;;  %v6476_v32 = vcombine.low %v5877_v7, %v5879_v13  ;;  %v5607_v5 = vcombine.high %v5605_v25, %v5605_v25  ;;  %v5911_v21 = vrot.slane %v5897_v6, %v10102_v16  ;;  %v6423_v34 = vcombine.low %v6415_v22, %v6422_v31 }
 0x726   :  { %6625 = vperm.xlu0 %6881, %v6406_v27   ;;  %v6440_v42 = vcombine.low %v6432_v17, %v6439_v3  ;;  %v6456_v59 = vrot.slane %v6442_v48, %v10102_v16  ;;  %v6473_v37 = vrot.slane %v10376_v12, %v10102_v16  ;;  %v5896_v18 = vcombine.high %v5894_v30, %v5894_v30 }
 0x727   :  { %v6186_v1 = vcombine.low %v10394_v54, %v5589_v36  ;;  %v5623_v40 = vcombine.high %v5615_v41, %v5615_v41  ;;  %v6449_v26 = vrot.slane %v6441_v53, %v10102_v16  ;;  %v6475_v10 = vcombine.low %v5870_v58, %v5878_v29 }
 0x728   :  { %v5606_v35 = vcombine.high %v5598_v51, %v5598_v51  ;;  %v5904_v60 = vrot.slane %v5281_v56, %v10102_v16  ;;  %v5928_v20 = vrot.slane %v5914_v63, %v10102_v16  ;;  %v6221_v17 = vcombine.low %v5622_v44, %v5624_v62 }
 0x729   :  { %6628 = vperm.xlu1 %6882, %v6423_v34   ;;  %v5913_v8 = vcombine.high %v5911_v21, %v5911_v21  ;;  %v6204_v47 = vcombine.low %v5605_v25, %v5607_v5  ;;  %v6457_v33 = vcombine.low %v6449_v26, %v6456_v59  ;;  %v6474_v12 = vcombine.low %v6466_v19, %v6473_v37  ;;  %v11420_v26 = vld [vmem:[#allocation5_spill] sm:$0xff] }
 0x72a   :  { %6631 = vperm.xlu0 %6881, %v6440_v42   ;;  %v6490_v54 = vrot.slane %v6476_v32, %v10102_v16  ;;  %v6201_v36 = vrot.slane %v6187_v61, %v10102_v16  ;;  %v5895_v23 = vcombine.high %v10412_v57, %v10412_v57  ;;  %v6194_v9 = vrot.slane %v6186_v1, %v10102_v16 }
 0x72b   :  { %v5921_v24 = vrot.slane %v5282_v38, %v10102_v16  ;;  %v6220_v45 = vcombine.low %v5615_v41, %v5623_v40  ;;  %v6483_v7 = vrot.slane %v6475_v10, %v10102_v16  ;;  %v5912_v11 = vcombine.high %v5904_v60, %v5904_v60 }
 0x72c   :  { %v6203_v56 = vcombine.low %v5598_v51, %v5606_v35  ;;  %v6493_v52 = vcombine.low %v5894_v30, %v5896_v18  ;;  %v5930_v19 = vcombine.high %v5928_v20, %v5928_v20  ;;  %v6510_v50 = vcombine.low %v5911_v21, %v5913_v8  ;;  %v11421_v8 = vld [vmem:[#allocation2_spill] sm:$0xff] }
 0x72d   :  { %6634 = vperm.xlu1 %6882, %v6457_v33   ;;  %v6491_v28 = vcombine.low %v6483_v7, %v6490_v54  ;;  %v6202_v46 = vcombine.low %v6194_v9, %v6201_v36  ;;  %v6235_v4 = vrot.slane %v6221_v17, %v10102_v16  ;;  %v6218_v43 = vrot.slane %v6204_v47, %v10102_v16  ;;  %v11422_v33 = vld [vmem:[#allocation105_spill] sm:$0xff] }
 0x72e   :  { %6637 = vperm.xlu0 %6881, %v6474_v12   ;;  %v6492_v55 = vcombine.low %v10412_v57, %v5895_v23  ;;  %v5929_v39 = vcombine.high %v5921_v24, %v5921_v24  ;;  %v6228_v14 = vrot.slane %v6220_v45, %v10102_v16  ;;  %v6211_v49 = vrot.slane %v6203_v56, %v10102_v16  ;;  %v11423_v23 = vld [vmem:[#allocation6_spill] sm:$0xff] }
 0x72f   :  { %v6509_v0 = vcombine.low %v5904_v60, %v5912_v11  ;;  %v6527_v15 = vcombine.low %v5928_v20, %v5930_v19  ;;  %v6524_v44 = vrot.slane %v6510_v50, %v10102_v16  ;;  %v6507_v58 = vrot.slane %v6493_v52, %v10102_v16 }
 0x730   :  { %v6236_v30 = vcombine.low %v6228_v14, %v6235_v4  ;;  %v6219_v38 = vcombine.low %v6211_v49, %v6218_v43  ;;  %v6500_v48 = vrot.slane %v6492_v55, %v10102_v16  ;;  %v6526_v13 = vcombine.low %v5921_v24, %v5929_v39 }
 0x731   :  { %6640 = vperm.xlu1 %6882, %v6491_v28   ;;  %v6517_v57 = vrot.slane %v6509_v0, %v10102_v16  ;;  %v6541_v2 = vrot.slane %v6527_v15, %v10102_v16  ;;  %v6660_v10 = vadd.s32 4294967280, %v11420_v26  ;;  %v6667_v35 = vadd.s32 4294967272, %v11420_v26 }
 0x732   :  { %6589 = vperm.xlu0 %6881, %v6202_v46   ;;  %v6508_v6 = vcombine.low %v6500_v48, %v6507_v58  ;;  %v6534_v27 = vrot.slane %v6526_v13, %v10102_v16  ;;  %v6674_v17 = vadd.s32 4294967264, %v11420_v26  ;;  %v6681_v36 = vadd.s32 4294967256, %v11420_v26 }
 0x733   :  { %v6525_v25 = vcombine.low %v6517_v57, %v6524_v44  ;;  %v6663_v47 = vsub.s32 %v6660_v10, %v11421_v8  ;;  %v6670_v54 = vsub.s32 %v6667_v35, %v11421_v8  ;;  %v6688_v19 = vadd.s32 4294967248, %v11420_v26 }
 0x734   :  { %v6542_v31 = vcombine.low %v6534_v27, %v6541_v2  ;;  %v6677_v52 = vsub.s32 %v6674_v17, %v11421_v8  ;;  %v6684_v46 = vsub.s32 %v6681_v36, %v11421_v8  ;;  %v6695_v4 = vadd.s32 4294967240, %v11420_v26 }
 0x735   :  { %6592 = vperm.xlu1 %6882, %v6219_v38   ;;  %v6691_v44 = vsub.s32 %v6688_v19, %v11421_v8  ;;  %v6702_v58 = vadd.s32 4294967232, %v11420_v26 }
 0x736   :  { %6595 = vperm.xlu0 %6881, %v6236_v30   ;;  %v6698_v57 = vsub.s32 %v6695_v4, %v11421_v8 }
 0x739   :  { %6643 = vperm.xlu1 %6882, %v6508_v6  }
 0x73a   :  { %6646 = vperm.xlu0 %6881, %v6525_v25   ;;  %v6709_v25 = vadd.s32 4294967224, %v11420_v26 }
 0x73d   :  { %6649 = vperm.xlu1 %6882, %v6542_v31  }
 0x752   :  { %v6545_v3 = vpop.permute.xlu0 %6544 }
 0x753   :  { %v6654_v45 = vrot.slane %v6545_v3, %v11423_v23 }
 0x756   :  { %v6551_v22 = vpop.permute.xlu0 %6550 }
 0x757   :  { %v6664_v43 = vrot.slane %v6551_v22, %v6663_v47 }
 0x763   :  { %v6548_v61 = vpop.permute.xlu1 %6547 }
 0x764   :  { %v6658_v12 = vrot.slane %v6548_v61, %v11422_v33 }
 0x766   :  { %v6659_v50 = vsel %vm869_vm13, %v6658_v12, %v6654_v45  ;;  %v6737_v45 = vadd.s32 4294967192, %v11420_v26 }
 0x767   :  { %v6666_v30 = vsel %vm6665_vm15, %v6664_v43, %v6659_v50 }
 0x768   :  { %v6740_v43 = vsub.s32 %v6737_v45, %v11421_v8 }
 0x76a   :  { %v6554_v41 = vpop.permute.xlu1 %6553 }
 0x76b   :  { %v6671_v28 = vrot.slane %v6554_v41, %v6670_v54 }
 0x76c   :  { %v10468_v53 = vpop.permute.xlu0 %6556 }
 0x76d   :  { %v6678_v38 = vrot.slane %v10468_v53, %v6677_v52  ;;  %v6673_v48 = vsel %vm6672_vm0, %v6671_v28, %v6666_v30  ;;  %v6705_v53 = vsub.s32 %v6702_v58, %v11421_v8 }
 0x76f   :  { %v6680_v22 = vsel %vm6679_vm2, %v6678_v38, %v6673_v48 }
 0x777   :  { %v10470_v63 = vpop.permute.xlu1 %6559 }
 0x778   :  { %v10472_v29 = vpop.permute.xlu0 %6562  ;;  %v6685_v13 = vrot.slane %v10470_v63, %v6684_v46  ;;  %v6716_v63 = vadd.s32 4294967216, %v11420_v26 }
 0x779   :  { %v6692_v41 = vrot.slane %v10472_v29, %v6691_v44 }
 0x77c   :  { %v10474_v51 = vpop.permute.xlu1 %6565 }
 0x77d   :  { %v10476_v62 = vpop.permute.xlu0 %6568 }
 0x77e   :  { %v6706_v12 = vrot.slane %v10476_v62, %v6705_v53 }
 0x782   :  { %v10478_v32 = vpop.permute.xlu1 %6571  ;;  %v10480_v5 = vpop.permute.xlu0 %6574 }
 0x786   :  { %v10482_v21 = vpop.permute.xlu1 %6577  ;;  %v10484_v34 = vpop.permute.xlu0 %6580 }
 0x78a   :  { %v10486_v42 = vpop.permute.xlu1 %6583  ;;  %v10488_v59 = vpop.permute.xlu0 %6586 }
 0x790   :  { %v6599_v37 = vpop.permute.xlu1 %6598  ;;  %v6602_v18 = vpop.permute.xlu0 %6601 }
 0x791   :  { %v6770_v9 = vrot.slane %v6599_v37, %v11423_v23  ;;  %v6774_v24 = vrot.slane %v6602_v18, %v11422_v33  ;;  %v6687_v37 = vsel %vm6686_vm3, %v6685_v13, %v6680_v22  ;;  %v6699_v18 = vrot.slane %v10474_v51, %v6698_v57 }
 0x792   :  { %v6719_v51 = vsub.s32 %v6716_v63, %v11421_v8 }
 0x793   :  { %v6775_v55 = vsel %vm869_vm13, %v6774_v24, %v6770_v9 }
 0x794   :  { %v6605_v1 = vpop.permute.xlu1 %6604  ;;  %v6720_v28 = vrot.slane %v10480_v5, %v6719_v51 }
 0x795   :  { %v6608_v40 = vpop.permute.xlu0 %6607  ;;  %v6779_v7 = vrot.slane %v6605_v1, %v6663_v47  ;;  %v6712_v1 = vsub.s32 %v6709_v25, %v11421_v8  ;;  %v6694_v47 = vsel %vm6693_vm4, %v6692_v41, %v6687_v37 }
 0x796   :  { %v6784_v39 = vrot.slane %v6608_v40, %v6670_v54  ;;  %v6723_v40 = vadd.s32 4294967208, %v11420_v26  ;;  %v6730_v54 = vadd.s32 4294967200, %v11420_v26  ;;  %v6701_v36 = vsel %vm6700_vm5, %v6699_v18, %v6694_v47 }
 0x797   :  { %v6780_v14 = vsel %vm6665_vm15, %v6779_v7, %v6775_v55  ;;  %v6713_v9 = vrot.slane %v10478_v32, %v6712_v1  ;;  %v6708_v50 = vsel %vm6707_vm6, %v6706_v12, %v6701_v36  ;;  %v6744_v55 = vadd.s32 4294967184, %v11420_v26 }
 0x798   :  { %v6611_v60 = vpop.permute.xlu1 %6610  ;;  %v6785_v6 = vsel %vm6672_vm0, %v6784_v39, %v6780_v14  ;;  %v6726_v24 = vsub.s32 %v6723_v40, %v11421_v8  ;;  %v6733_v32 = vsub.s32 %v6730_v54, %v11421_v8  ;;  %vm6866_vm15 = vcmask 1041408  }
 0x799   :  { %v6614_v20 = vpop.permute.xlu0 %6613  ;;  %v6789_v49 = vrot.slane %v6611_v60, %v6677_v52  ;;  %v6747_v48 = vsub.s32 %v6744_v55, %v11421_v8  ;;  %vm6867_vm0 = vcmask 125954  }
 0x79a   :  { %v6794_v2 = vrot.slane %v6614_v20, %v6684_v46  ;;  %v6715_v46 = vsel %vm6714_vm7, %v6713_v9, %v6708_v50  ;;  %v6727_v4 = vrot.slane %v10482_v21, %v6726_v24  ;;  %v6741_v21 = vrot.slane %v10486_v42, %v6740_v43 }
 0x79b   :  { %v6790_v27 = vsel %vm6679_vm2, %v6789_v49, %v6785_v6  ;;  %v6751_v49 = vadd.s32 4294967176, %v11420_v26  ;;  %v6722_v38 = vsel %vm6721_vm8, %v6720_v28, %v6715_v46  ;;  %vm6868_vm2 = vmor %vm6867_vm0, %vm6866_vm15 }
 0x79c   :  { %v6617_v11 = vpop.permute.xlu1 %6616  ;;  %v6795_v10 = vsel %vm6686_vm3, %v6794_v2, %v6790_v27  ;;  %v6729_v58 = vsel %vm6728_vm9, %v6727_v4, %v6722_v38 }
 0x79d   :  { %v6620_v56 = vpop.permute.xlu0 %6619  ;;  %v6799_v31 = vrot.slane %v6617_v11, %v6691_v44  ;;  %v6734_v44 = vrot.slane %v10484_v34, %v6733_v32  ;;  %v6754_v25 = vsub.s32 %v6751_v49, %v11421_v8  ;;  %v6748_v34 = vrot.slane %v10488_v59, %v6747_v48 }
 0x79e   :  { %v6804_v35 = vrot.slane %v6620_v56, %v6698_v57 }
 0x79f   :  { %v6800_v60 = vsel %vm6693_vm4, %v6799_v31, %v6795_v10  ;;  %v6736_v27 = vsel %vm6735_vm10, %v6734_v44, %v6729_v58 }
 0x7a0   :  { %v6623_v0 = vpop.permute.xlu1 %6622  ;;  %v6805_v7 = vsel %vm6700_vm5, %v6804_v35, %v6800_v60 }
 0x7a1   :  { %v6626_v15 = vpop.permute.xlu0 %6625  ;;  %v6809_v29 = vrot.slane %v6623_v0, %v6705_v53 }
 0x7a2   :  { %v6814_v11 = vrot.slane %v6626_v15, %v6712_v1 }
 0x7a3   :  { %v6810_v56 = vsel %vm6707_vm6, %v6809_v29, %v6805_v7 }
 0x7a4   :  { %v6629_v3 = vpop.permute.xlu1 %6628  ;;  %v6815_v39 = vsel %vm6714_vm7, %v6814_v11, %v6810_v56 }
 0x7a5   :  { %v6632_v61 = vpop.permute.xlu0 %6631  ;;  %v6819_v52 = vrot.slane %v6629_v3, %v6719_v51  ;;  %v6743_v3 = vsel %vm6742_vm11, %v6741_v21, %v6736_v27 }
 0x7a6   :  { %v6824_v14 = vrot.slane %v6632_v61, %v6726_v24  ;;  %v6750_v40 = vsel %vm6749_vm12, %v6748_v34, %v6743_v3 }
 0x7a7   :  { %v6820_v0 = vsel %vm6721_vm8, %v6819_v52, %v6815_v39 }
 0x7a8   :  { %v6635_v20 = vpop.permute.xlu1 %6634  ;;  %v6825_v13 = vsel %vm6728_vm9, %v6824_v14, %v6820_v0 }
 0x7a9   :  { %v6638_v17 = vpop.permute.xlu0 %6637  ;;  %v6829_v15 = vrot.slane %v6635_v20, %v6733_v32 }
 0x7aa   :  { %v6834_v57 = vrot.slane %v6638_v17, %v6740_v43 }
 0x7ab   :  { %v6830_v6 = vsel %vm6735_vm10, %v6829_v15, %v6825_v13 }
 0x7ac   :  { %v6641_v62 = vpop.permute.xlu1 %6640  ;;  %v6835_v22 = vsel %vm6742_vm11, %v6834_v57, %v6830_v6 }
 0x7ad   :  { %v6590_v19 = vpop.permute.xlu0 %6589  ;;  %v6839_v26 = vrot.slane %v6641_v62, %v6747_v48 }
 0x7ae   :  { %v6755_v41 = vrot.slane %v6590_v19, %v6754_v25 }
 0x7af   :  { %v6840_v63 = vsel %vm6749_vm12, %v6839_v26, %v6835_v22 }
 0x7b0   :  { %v6593_v30 = vpop.permute.xlu1 %6592  ;;  %v6757_v10 = vsel %vm6756_vm14, %v6755_v41, %v6750_v40 }
 0x7b1   :  { %v6596_v5 = vpop.permute.xlu0 %6595  ;;  %v6761_v42 = vrot.slane %v6593_v30, %v11423_v23 }
 0x7b2   :  { %v6765_v53 = vrot.slane %v6596_v5, %v11422_v33 }
 0x7b4   :  { %v6644_v2 = vpop.permute.xlu1 %6643  ;;  %v6766_v59 = vsel %vm869_vm13, %v6765_v53, %v6761_v42 }
 0x7b5   :  { %v6844_v31 = vrot.slane %v6644_v2, %v6754_v25  ;;  %v6647_v61 = vpop.permute.xlu0 %6646 }
 0x7b6   :  { %v6849_v18 = vrot.slane %v6647_v61, %v11423_v23 }
 0x7b7   :  { %v6845_v8 = vsel %vm6756_vm14, %v6844_v31, %v6840_v63 }
 0x7b8   :  { %v6650_v37 = vpop.permute.xlu1 %6649  ;;  %v6855_v60 = vsel %vm547_vm1, %v6845_v8, %v6757_v10 }
 0x7b9   :  { %v6853_v1 = vrot.slane %v6650_v37, %v11422_v33 }
 0x7bb   :  { %v6854_v35 = vsel %vm869_vm13, %v6853_v1, %v6849_v18 }
 0x7bc   :  { %v6856_v29 = vsel %vm547_vm1, %v6854_v35, %v6766_v59 }
 0x7bd   :  { %v6857_v20 = vcombine.low %v6855_v60, %v6856_v29 }
 0x7bf   :  { %v6864_v17 = vrot.slane %v6857_v20, %v10102_v16 }
 0x7c1   :  { %6869 = vst.msk [vmem:[%s10572_s9] sm:$0xf] %vm6868_vm2, %v6864_v17 }

</bundles_post_ra>
